<compile_context>
chip_gen: v6e
topology: v6e:2x2x1
jax: 0.10.0
libtpu: 0.0.40
codegen_flags: <defaults>
</compile_context>

<pallas_src>
import functools

import jax
import jax.numpy as jnp
from jax.experimental import pallas as pl
from jax.experimental.pallas import tpu as pltpu


def _round_up(x, m):
    return ((x + m - 1) // m) * m


def _conv_relu_gap_kernel(x_ref, w_ref, b_ref, m_ref, out_ref, *,
                          nb, spatial, w_stride, rows):
    # x_ref:   (R_blk, C_in_pad)      bf16  flattened padded-NHWC pixels for nb images
    # w_ref:   (9, C_in_pad, C_pad)   bf16  per-tap conv weights (dh-major)
    # b_ref:   (1, C_pad)             f32   bias row
    # m_ref:   (rows, 1)              f32   pooling mask: 1/HW at valid pixels, 0 elsewhere
    # out_ref: (nb, C_pad)            f32   pooled features per image
    c_pad = out_ref.shape[-1]

    # 3x3 conv as 9 shift-accumulate matmuls (tap t = (dh, dw); shift = dh*Wp + dw).
    acc = jnp.dot(x_ref[pl.ds(0, rows), :], w_ref[0],
                  preferred_element_type=jnp.float32)
    for t in range(1, 9):
        dh, dw = divmod(t, 3)
        off = dh * w_stride + dw
        acc = acc + jnp.dot(x_ref[pl.ds(off, rows), :], w_ref[t],
                            preferred_element_type=jnp.float32)

    # bias + ReLU + masked mean (1/HW folded into the mask); all f32, no MXU pooling.
    act = jnp.maximum(acc + b_ref[...], 0.0) * m_ref[...]
    out_ref[...] = act.reshape(nb, spatial, c_pad).sum(axis=1)


def feature_extractor_forward(x, conv_w, conv_b, *, max_rows_per_step=16384):
    """x: (N, C_in, H, W) float32; conv_w: (C_out, C_in, 3, 3); conv_b: (C_out,)."""
    N, C_in, H, W = x.shape
    C_out = conv_w.shape[0]
    HW = H * W

    C_in_pad = _round_up(C_in, 16)        # bf16 sublane tile for each per-tap weight
    C_pad = _round_up(C_out, 128)         # lane-dense weights / output

    Wp = _round_up(W + 2, 8)              # padded width (mult of 8 keeps P 8-aligned)
    Hp = H + 2
    P = Hp * Wp                           # padded pixels per image

    # Images per grid step: biggest blocks under the row budget (normalized so the
    # f32 accumulator stays ~constant for wide C_out; fits v7x's 64 MiB VMEM), while
    # guaranteeing >= 2 grid steps whenever N > 1 so v7x's two TensorCores share work.
    row_cap = max(1, (max_rows_per_step * 128) // C_pad)
    nb_cap = max(1, row_cap // P)
    nb = min(nb_cap, -(-N // 2)) if N > 1 else 1
    n_steps = -(-N // nb)
    N_pad = n_steps * nb
    rows = nb * P                                   # conv-output rows per step
    R_blk = _round_up(rows + 2 * Wp + 2, 8)         # + room for the largest tap shift
    # TODO(synk): for very large H*W (rows = P > row_cap) add spatial tiling of a
    # single image across grid steps instead of one big block.

    # ---- glue: O(input bytes), bf16 early, NHWC-first (no 9x expansion) ----
    xb = x.astype(jnp.bfloat16).transpose(0, 2, 3, 1)              # (N, H, W, C_in)
    xb = jnp.pad(xb, ((0, N_pad - N), (1, Hp - H - 1),
                      (1, Wp - W - 1), (0, C_in_pad - C_in)))      # (N_pad, Hp, Wp, Cp)
    x_steps = xb.reshape(n_steps, rows, C_in_pad)
    x_steps = jnp.pad(x_steps, ((0, 0), (0, R_blk - rows), (0, 0)))

    # Per-tap weights (dh-major), bias row (f32), pooling mask with 1/HW folded in.
    w_taps = jnp.transpose(conv_w.astype(jnp.float32), (2, 3, 1, 0))   # (3,3,Ci,Co)
    w_taps = w_taps.reshape(9, C_in, C_out)
    w_taps = jnp.pad(w_taps, ((0, 0), (0, C_in_pad - C_in),
                              (0, C_pad - C_out))).astype(jnp.bfloat16)
    b_row = jnp.pad(conv_b.astype(jnp.float32).reshape(1, C_out),
                    ((0, 0), (0, C_pad - C_out)))

    q = jnp.arange(rows, dtype=jnp.int32)
    valid = (((q % P) // Wp) < H) & ((q % Wp) < W)
    pool_mask = jnp.where(valid, 1.0 / HW, 0.0).astype(jnp.float32).reshape(rows, 1)

    kernel = functools.partial(_conv_relu_gap_kernel,
                               nb=nb, spatial=P, w_stride=Wp, rows=rows)

    flops = 2 * 9 * n_steps * rows * C_in_pad * C_pad + 4 * n_steps * rows * C_pad
    bytes_accessed = (x_steps.size * 2 + w_taps.size * 2 + b_row.size * 4
                      + pool_mask.size * 4 + n_steps * nb * C_pad * 4)

    out = pl.pallas_call(
        kernel,
        out_shape=jax.ShapeDtypeStruct((n_steps, nb, C_pad), jnp.float32),
        grid_spec=pltpu.PrefetchScalarGridSpec(
            num_scalar_prefetch=0,
            grid=(n_steps,),
            in_specs=[
                pl.BlockSpec((None, R_blk, C_in_pad), lambda g: (g, 0, 0)),
                pl.BlockSpec((9, C_in_pad, C_pad), lambda g: (0, 0, 0)),
                pl.BlockSpec((1, C_pad), lambda g: (0, 0)),
                pl.BlockSpec((rows, 1), lambda g: (0, 0)),
            ],
            out_specs=pl.BlockSpec((None, nb, C_pad), lambda g: (g, 0, 0)),
        ),
        compiler_params=pltpu.CompilerParams(
            dimension_semantics=("parallel",),
            vmem_limit_bytes=48 * 1024 * 1024,
        ),
        cost_estimate=pl.CostEstimate(flops=flops, transcendentals=0,
                                      bytes_accessed=bytes_accessed),
    )(x_steps, w_taps, b_row, pool_mask)

    # forward(): self.features(x).view(x.size(0), -1)  -> (N, C_out)
    return out.reshape(N_pad, C_pad)[:N, :C_out]


def _reference_forward(x, conv_w, conv_b):
    # Pure-JAX f32 reference (NCHW conv, padding=1) for verification.
    y = jax.lax.conv_general_dilated(
        x, conv_w, window_strides=(1, 1), padding="SAME",
        dimension_numbers=("NCHW", "OIHW", "NCHW"))
    y = y + conv_b.reshape(1, -1, 1, 1)
    y = jnp.maximum(y, 0.0)
    y = jnp.mean(y, axis=(2, 3))               # AdaptiveAvgPool2d((1,1)) + flatten
    return y


if __name__ == "__main__":
    key = jax.random.PRNGKey(0)
    k_x, k_w, k_b = jax.random.split(key, 3)

    N, C_in, H, W = 2, 4, 16, 16
    C_out = 32

    x = jax.random.normal(k_x, (N, C_in, H, W), dtype=jnp.float32)
    conv_w = jax.random.normal(k_w, (C_out, C_in, 3, 3), dtype=jnp.float32) * 0.1
    conv_b = jax.random.normal(k_b, (C_out,), dtype=jnp.float32) * 0.1

    out = feature_extractor_forward(x, conv_w, conv_b)
    out = jax.block_until_ready(out)

    ref = jax.block_until_ready(_reference_forward(x, conv_w, conv_b))
    assert out.shape == (N, C_out), out.shape
    # bf16 operands vs f32 reference -> loosened tolerance.
    assert jnp.allclose(out, ref, atol=2e-2, rtol=2e-2), "mismatch vs reference"

    print("KERNEL_OK")
</pallas_src>

<mosaic_0001>
module attributes {stable_mosaic.version = 11 : i64} {
  func.func @_conv_relu_gap_kernel(%arg0: i32, %arg1: memref<1x488x16xbf16, #tpu.memory_space<vmem>>, %arg2: memref<9x16x128xbf16, #tpu.memory_space<vmem>>, %arg3: memref<1x128xf32, #tpu.memory_space<vmem>>, %arg4: memref<432x1xf32, #tpu.memory_space<vmem>>, %arg5: memref<1x1x128xf32, #tpu.memory_space<vmem>>) attributes {dimension_semantics = [#tpu.dimension_semantics<parallel>], iteration_bounds = array<i64: 2>, scalar_prefetch = 0 : i64, scratch_operands = 0 : i64, tpu.core_type = #tpu.core_type<tc>, window_params = [{transform_indices = @transform_0, window_bounds = array<i64: 1, 488, 16>}, {pipeline_mode = #tpu.pipeline_mode<synchronous>, transform_indices = @transform_1, window_bounds = array<i64: 9, 16, 128>}, {pipeline_mode = #tpu.pipeline_mode<synchronous>, transform_indices = @transform_2, window_bounds = array<i64: 1, 128>}, {pipeline_mode = #tpu.pipeline_mode<synchronous>, transform_indices = @transform_3, window_bounds = array<i64: 432, 1>}, {transform_indices = @transform_4, window_bounds = array<i64: 1, 1, 128>}]} {
    %c0 = arith.constant 0 : index
    %c0_0 = arith.constant 0 : index
    %c0_1 = arith.constant 0 : index
    %0 = vector.load %arg1[%c0, %c0_0, %c0_1] : memref<1x488x16xbf16, #tpu.memory_space<vmem>>, vector<1x432x16xbf16>
    %1 = vector.shape_cast %0 : vector<1x432x16xbf16> to vector<432x16xbf16>
    %c0_2 = arith.constant 0 : index
    %c0_3 = arith.constant 0 : index
    %c0_4 = arith.constant 0 : index
    %2 = vector.load %arg2[%c0_2, %c0_3, %c0_4] : memref<9x16x128xbf16, #tpu.memory_space<vmem>>, vector<1x16x128xbf16>
    %3 = vector.shape_cast %2 : vector<1x16x128xbf16> to vector<16x128xbf16>
    %cst = arith.constant dense<0.000000e+00> : vector<432x128xf32>
    %4 = tpu.matmul %1, %3, %cst {dimension_numbers = #tpu.dot_dimension_numbers<[1], [0], [0], [1], [0, 0, 1, 1], [], []>} : vector<432x16xbf16>, vector<16x128xbf16>, vector<432x128xf32> -> vector<432x128xf32>
    %c0_5 = arith.constant 0 : index
    %c1 = arith.constant 1 : index
    %c0_6 = arith.constant 0 : index
    %5 = vector.load %arg1[%c0_5, %c1, %c0_6] : memref<1x488x16xbf16, #tpu.memory_space<vmem>>, vector<1x432x16xbf16>
    %6 = vector.shape_cast %5 : vector<1x432x16xbf16> to vector<432x16xbf16>
    %c1_7 = arith.constant 1 : index
    %c0_8 = arith.constant 0 : index
    %c0_9 = arith.constant 0 : index
    %7 = vector.load %arg2[%c1_7, %c0_8, %c0_9] : memref<9x16x128xbf16, #tpu.memory_space<vmem>>, vector<1x16x128xbf16>
    %8 = vector.shape_cast %7 : vector<1x16x128xbf16> to vector<16x128xbf16>
    %cst_10 = arith.constant dense<0.000000e+00> : vector<432x128xf32>
    %9 = tpu.matmul %6, %8, %cst_10 {dimension_numbers = #tpu.dot_dimension_numbers<[1], [0], [0], [1], [0, 0, 1, 1], [], []>} : vector<432x16xbf16>, vector<16x128xbf16>, vector<432x128xf32> -> vector<432x128xf32>
    %10 = arith.addf %4, %9 : vector<432x128xf32>
    %c0_11 = arith.constant 0 : index
    %c2 = arith.constant 2 : index
    %c0_12 = arith.constant 0 : index
    %11 = vector.load %arg1[%c0_11, %c2, %c0_12] : memref<1x488x16xbf16, #tpu.memory_space<vmem>>, vector<1x432x16xbf16>
    %12 = vector.shape_cast %11 : vector<1x432x16xbf16> to vector<432x16xbf16>
    %c2_13 = arith.constant 2 : index
    %c0_14 = arith.constant 0 : index
    %c0_15 = arith.constant 0 : index
    %13 = vector.load %arg2[%c2_13, %c0_14, %c0_15] : memref<9x16x128xbf16, #tpu.memory_space<vmem>>, vector<1x16x128xbf16>
    %14 = vector.shape_cast %13 : vector<1x16x128xbf16> to vector<16x128xbf16>
    %cst_16 = arith.constant dense<0.000000e+00> : vector<432x128xf32>
    %15 = tpu.matmul %12, %14, %cst_16 {dimension_numbers = #tpu.dot_dimension_numbers<[1], [0], [0], [1], [0, 0, 1, 1], [], []>} : vector<432x16xbf16>, vector<16x128xbf16>, vector<432x128xf32> -> vector<432x128xf32>
    %16 = arith.addf %10, %15 : vector<432x128xf32>
    %c0_17 = arith.constant 0 : index
    %c24 = arith.constant 24 : index
    %c0_18 = arith.constant 0 : index
    %17 = vector.load %arg1[%c0_17, %c24, %c0_18] : memref<1x488x16xbf16, #tpu.memory_space<vmem>>, vector<1x432x16xbf16>
    %18 = vector.shape_cast %17 : vector<1x432x16xbf16> to vector<432x16xbf16>
    %c3 = arith.constant 3 : index
    %c0_19 = arith.constant 0 : index
    %c0_20 = arith.constant 0 : index
    %19 = vector.load %arg2[%c3, %c0_19, %c0_20] : memref<9x16x128xbf16, #tpu.memory_space<vmem>>, vector<1x16x128xbf16>
    %20 = vector.shape_cast %19 : vector<1x16x128xbf16> to vector<16x128xbf16>
    %cst_21 = arith.constant dense<0.000000e+00> : vector<432x128xf32>
    %21 = tpu.matmul %18, %20, %cst_21 {dimension_numbers = #tpu.dot_dimension_numbers<[1], [0], [0], [1], [0, 0, 1, 1], [], []>} : vector<432x16xbf16>, vector<16x128xbf16>, vector<432x128xf32> -> vector<432x128xf32>
    %22 = arith.addf %16, %21 : vector<432x128xf32>
    %c0_22 = arith.constant 0 : index
    %c25 = arith.constant 25 : index
    %c0_23 = arith.constant 0 : index
    %23 = vector.load %arg1[%c0_22, %c25, %c0_23] : memref<1x488x16xbf16, #tpu.memory_space<vmem>>, vector<1x432x16xbf16>
    %24 = vector.shape_cast %23 : vector<1x432x16xbf16> to vector<432x16xbf16>
    %c4 = arith.constant 4 : index
    %c0_24 = arith.constant 0 : index
    %c0_25 = arith.constant 0 : index
    %25 = vector.load %arg2[%c4, %c0_24, %c0_25] : memref<9x16x128xbf16, #tpu.memory_space<vmem>>, vector<1x16x128xbf16>
    %26 = vector.shape_cast %25 : vector<1x16x128xbf16> to vector<16x128xbf16>
    %cst_26 = arith.constant dense<0.000000e+00> : vector<432x128xf32>
    %27 = tpu.matmul %24, %26, %cst_26 {dimension_numbers = #tpu.dot_dimension_numbers<[1], [0], [0], [1], [0, 0, 1, 1], [], []>} : vector<432x16xbf16>, vector<16x128xbf16>, vector<432x128xf32> -> vector<432x128xf32>
    %28 = arith.addf %22, %27 : vector<432x128xf32>
    %c0_27 = arith.constant 0 : index
    %c26 = arith.constant 26 : index
    %c0_28 = arith.constant 0 : index
    %29 = vector.load %arg1[%c0_27, %c26, %c0_28] : memref<1x488x16xbf16, #tpu.memory_space<vmem>>, vector<1x432x16xbf16>
    %30 = vector.shape_cast %29 : vector<1x432x16xbf16> to vector<432x16xbf16>
    %c5 = arith.constant 5 : index
    %c0_29 = arith.constant 0 : index
    %c0_30 = arith.constant 0 : index
    %31 = vector.load %arg2[%c5, %c0_29, %c0_30] : memref<9x16x128xbf16, #tpu.memory_space<vmem>>, vector<1x16x128xbf16>
    %32 = vector.shape_cast %31 : vector<1x16x128xbf16> to vector<16x128xbf16>
    %cst_31 = arith.constant dense<0.000000e+00> : vector<432x128xf32>
    %33 = tpu.matmul %30, %32, %cst_31 {dimension_numbers = #tpu.dot_dimension_numbers<[1], [0], [0], [1], [0, 0, 1, 1], [], []>} : vector<432x16xbf16>, vector<16x128xbf16>, vector<432x128xf32> -> vector<432x128xf32>
    %34 = arith.addf %28, %33 : vector<432x128xf32>
    %c0_32 = arith.constant 0 : index
    %c48 = arith.constant 48 : index
    %c0_33 = arith.constant 0 : index
    %35 = vector.load %arg1[%c0_32, %c48, %c0_33] : memref<1x488x16xbf16, #tpu.memory_space<vmem>>, vector<1x432x16xbf16>
    %36 = vector.shape_cast %35 : vector<1x432x16xbf16> to vector<432x16xbf16>
    %c6 = arith.constant 6 : index
    %c0_34 = arith.constant 0 : index
    %c0_35 = arith.constant 0 : index
    %37 = vector.load %arg2[%c6, %c0_34, %c0_35] : memref<9x16x128xbf16, #tpu.memory_space<vmem>>, vector<1x16x128xbf16>
    %38 = vector.shape_cast %37 : vector<1x16x128xbf16> to vector<16x128xbf16>
    %cst_36 = arith.constant dense<0.000000e+00> : vector<432x128xf32>
    %39 = tpu.matmul %36, %38, %cst_36 {dimension_numbers = #tpu.dot_dimension_numbers<[1], [0], [0], [1], [0, 0, 1, 1], [], []>} : vector<432x16xbf16>, vector<16x128xbf16>, vector<432x128xf32> -> vector<432x128xf32>
    %40 = arith.addf %34, %39 : vector<432x128xf32>
    %c0_37 = arith.constant 0 : index
    %c49 = arith.constant 49 : index
    %c0_38 = arith.constant 0 : index
    %41 = vector.load %arg1[%c0_37, %c49, %c0_38] : memref<1x488x16xbf16, #tpu.memory_space<vmem>>, vector<1x432x16xbf16>
    %42 = vector.shape_cast %41 : vector<1x432x16xbf16> to vector<432x16xbf16>
    %c7 = arith.constant 7 : index
    %c0_39 = arith.constant 0 : index
    %c0_40 = arith.constant 0 : index
    %43 = vector.load %arg2[%c7, %c0_39, %c0_40] : memref<9x16x128xbf16, #tpu.memory_space<vmem>>, vector<1x16x128xbf16>
    %44 = vector.shape_cast %43 : vector<1x16x128xbf16> to vector<16x128xbf16>
    %cst_41 = arith.constant dense<0.000000e+00> : vector<432x128xf32>
    %45 = tpu.matmul %42, %44, %cst_41 {dimension_numbers = #tpu.dot_dimension_numbers<[1], [0], [0], [1], [0, 0, 1, 1], [], []>} : vector<432x16xbf16>, vector<16x128xbf16>, vector<432x128xf32> -> vector<432x128xf32>
    %46 = arith.addf %40, %45 : vector<432x128xf32>
    %c0_42 = arith.constant 0 : index
    %c50 = arith.constant 50 : index
    %c0_43 = arith.constant 0 : index
    %47 = vector.load %arg1[%c0_42, %c50, %c0_43] : memref<1x488x16xbf16, #tpu.memory_space<vmem>>, vector<1x432x16xbf16>
    %48 = vector.shape_cast %47 : vector<1x432x16xbf16> to vector<432x16xbf16>
    %c8 = arith.constant 8 : index
    %c0_44 = arith.constant 0 : index
    %c0_45 = arith.constant 0 : index
    %49 = vector.load %arg2[%c8, %c0_44, %c0_45] : memref<9x16x128xbf16, #tpu.memory_space<vmem>>, vector<1x16x128xbf16>
    %50 = vector.shape_cast %49 : vector<1x16x128xbf16> to vector<16x128xbf16>
    %cst_46 = arith.constant dense<0.000000e+00> : vector<432x128xf32>
    %51 = tpu.matmul %48, %50, %cst_46 {dimension_numbers = #tpu.dot_dimension_numbers<[1], [0], [0], [1], [0, 0, 1, 1], [], []>} : vector<432x16xbf16>, vector<16x128xbf16>, vector<432x128xf32> -> vector<432x128xf32>
    %52 = arith.addf %46, %51 : vector<432x128xf32>
    %c0_47 = arith.constant 0 : index
    %c0_48 = arith.constant 0 : index
    %53 = vector.load %arg3[%c0_47, %c0_48] : memref<1x128xf32, #tpu.memory_space<vmem>>, vector<1x128xf32>
    %54 = vector.broadcast %53 : vector<1x128xf32> to vector<432x128xf32>
    %55 = arith.addf %52, %54 : vector<432x128xf32>
    %cst_49 = arith.constant 0.000000e+00 : f32
    %56 = vector.broadcast %cst_49 : f32 to vector<432x128xf32>
    %57 = arith.maximumf %55, %56 : vector<432x128xf32>
    %c0_50 = arith.constant 0 : index
    %c0_51 = arith.constant 0 : index
    %58 = vector.load %arg4[%c0_50, %c0_51] : memref<432x1xf32, #tpu.memory_space<vmem>>, vector<432x1xf32>
    %59 = vector.broadcast %58 : vector<432x1xf32> to vector<432x128xf32>
    %60 = arith.mulf %57, %59 : vector<432x128xf32>
    %61 = vector.shape_cast %60 : vector<432x128xf32> to vector<1x432x128xf32>
    %cst_52 = arith.constant dense<0.000000e+00> : vector<1x128xf32>
    %62 = vector.multi_reduction <add>, %61, %cst_52 [1] : vector<1x432x128xf32> to vector<1x128xf32>
    %c0_53 = arith.constant 0 : index
    %c0_54 = arith.constant 0 : index
    %c0_55 = arith.constant 0 : index
    %63 = vector.load %arg5[%c0_53, %c0_54, %c0_55] : memref<1x1x128xf32, #tpu.memory_space<vmem>>, vector<1x1x128xf32>
    %64 = vector.shape_cast %63 : vector<1x1x128xf32> to vector<1x128xf32>
    %65 = vector.shape_cast %62 : vector<1x128xf32> to vector<1x1x128xf32>
    tpu.vector_store %arg5[%c0_53, %c0_54, %c0_55], %65 {strides = array<i32>} : memref<1x1x128xf32, #tpu.memory_space<vmem>>, vector<1x1x128xf32>,
    return
  }
  func.func @transform_0(%arg0: i32) -> (i32, i32, i32) {
    %c0_i32 = arith.constant 0 : i32
    %c0_i32_0 = arith.constant 0 : i32
    %c0_i32_1 = arith.constant 0 : i32
    return %arg0, %c0_i32, %c0_i32_0 : i32, i32, i32
  }
  func.func @transform_1(%arg0: i32) -> (i32, i32, i32) {
    %c0_i32 = arith.constant 0 : i32
    %c0_i32_0 = arith.constant 0 : i32
    %c0_i32_1 = arith.constant 0 : i32
    %c0_i32_2 = arith.constant 0 : i32
    return %c0_i32, %c0_i32_0, %c0_i32_1 : i32, i32, i32
  }
  func.func @transform_2(%arg0: i32) -> (i32, i32) {
    %c0_i32 = arith.constant 0 : i32
    %c0_i32_0 = arith.constant 0 : i32
    %c0_i32_1 = arith.constant 0 : i32
    return %c0_i32, %c0_i32_0 : i32, i32
  }
  func.func @transform_3(%arg0: i32) -> (i32, i32) {
    %c0_i32 = arith.constant 0 : i32
    %c0_i32_0 = arith.constant 0 : i32
    %c0_i32_1 = arith.constant 0 : i32
    return %c0_i32, %c0_i32_0 : i32, i32
  }
  func.func @transform_4(%arg0: i32) -> (i32, i32, i32) {
    %c0_i32 = arith.constant 0 : i32
    %c0_i32_0 = arith.constant 0 : i32
    %c0_i32_1 = arith.constant 0 : i32
    return %arg0, %c0_i32, %c0_i32_0 : i32, i32, i32
  }
}

</mosaic_0001>

<bundles_post_ra>
// kernel: tpu_custom_call.1
= control target key start
LH: loop header
LB: loop body
LE: loop exit
PB: predicated region body
PF: predicated region fallthrough
CT: control target
= control target key end

     0   :  { %9 = vsyncpa [#allocation3], 0  ;;  %s10355_s0 = inlined_call_operand.vmem [shape: bf16[2,488,16], index: 0, kind: input, shape index: {}]   ;;  %s10356_s1 = inlined_call_operand.vmem [shape: bf16[9,16,128], index: 1, kind: input, shape index: {}]   ;;  %s10357_s2 = inlined_call_operand.vmem [shape: f32[1,128], index: 2, kind: input, shape index: {}]   ;;  %s10358_s3 = inlined_call_operand.vmem [shape: f32[432,1], index: 3, kind: input, shape index: {}]   ;;  %s10359_s4 = inlined_call_operand.hbm [shape: f32[2,1,128], index: 4, kind: output, shape index: {}]  }
   0x1   :  { %11 = vsyncpa [#allocation3 + $0x1], 0  ;;  %s8005_s15 = smov 0   ;;  %s8007_s16 = smov 0  }
   0x2   :  { %s8009_s17 = smov 0   ;;  %s8011_s18 = smov 0  }
   0x3 LB: > { %s8026_s19 = sadd.s32 4294967295, %s7974_s18   ;;  %s6015_s20 = sadd.s32 4294967294, %s7974_s18   ;;  %s7974_s18 = sphi %s8011_s18, %s10460_s18   ;;  %s7970_s17 = sphi %s8009_s17, %s10459_s17   ;;  %s7966_s16 = sphi %s8007_s16, %s10458_s16   ;;  %s7962_s15 = sphi %s8005_s15, %s10457_s15  }
   0x4   : > { %s8030_s21 = sadd.s32 1, %s7974_s18   ;;  %s113_s22 = sadd.s32 1, %s7970_s17 }
   0x5   : > { %s110_s23 = ssub.s32 %s7974_s18, %s8030_s21  ;;  %p123_p0 = scmp.ne.s32.totalorder %s7970_s17, %s7966_s16 }
   0x6   : > { %p111_p1 = scmp.eq.s32.totalorder %s110_s23, 0  ;;  %p124_p2 = scmp.eq.s32.totalorder %s8026_s19, 1 }
   0x7   : > { %p129_p3 = scmp.ne.s32.totalorder %s7966_s16, %s7962_s15  ;;  %p130_p4 = scmp.eq.s32.totalorder %s6015_s20, 1 }
   0x8   : > { %s8041_s24 = scalar_select %p111_p1, %s7970_s17, %s113_s22  }
   0x9   : > { %p8043_p5 = por %p124_p2, %p123_p0  ;;  %p8047_p6 = por %p130_p4, %p129_p3 }
   0xa   : > { %p6018_p7 = scmp.ge.s32.totalorder %s7974_s18, 1  ;;  %p165_p8 = scmp.lt.s32.totalorder %s7974_s18, 3 }
   0xc   : > { %p166_p9 = pnand %p6018_p7, %p165_p8 }
   0xe   : > { %169 = sbr.rel (%p166_p9) target bundleno = 1236 (0x4d4), region = 36 }
  0x13   : > { %v7722_v0 = vld [vmem:[%s10356_s1 + $0x8] sm:$0xff]   ;;  %v10360_v1 = vmov 0.0   ;;  %p190_p10 = scmp.lt.s32.totalorder %s8026_s19, 1  ;;  %vm7977_vm0 = vmmov 0   ;;  %vm394_vm1 = vsmask.f32 7424 }
  0x14   : > { %6685 = vmatprep.subr.bf16.mxu0 %v10360_v1  ;;  %7675 = vmatprep.subr.bf16.mxu1 %v10360_v1  ;;  %vm621_vm2 = vcmask 130048   ;;  %v7727_v18 = vld [vmem:[%s10356_s1 + $0x10] sm:$0xff]   ;;  %v7728_v26 = vld [vmem:[%s10356_s1] sm:$0xff]   ;;  %vm1268_vm3 = vcmask 1046528   ;;  %s188_s6 = sand.u32 1, %s7966_s16   ;;  %s6430_s8 = sshll.u32 %s8026_s19, 4 }
  0x15   : > { %6686 = vmatpush3.bf16.msra.mxu0 %v7722_v0  ;;  %7676 = vmatpush3.bf16.msra.mxu1 %v7722_v0  ;;  %s191_s29 = scalar_select %p190_p10, %s8026_s19, 1 }
  0x16   : > { %6687 = vmatprep.mubr.msk.bf16.mxu0 %vm7977_vm0, %v10360_v1  ;;  %6743 = vmatprep.mubr.msk.bf16.mxu1 %vm7977_vm0, %v10360_v1  ;;  %s189_s9 = scalar_lea.vmem [#allocation2], %s188_s6  ;;  %s5958_s13 = scalar_lea.hbm %s10359_s4, %s6430_s8 }
  0x17   : > { %6905 = vmatprep.subr.bf16.mxu0 %v10360_v1  ;;  %6795 = vmatprep.subr.bf16.mxu1 %v10360_v1  ;;  %s7677_s30 = smul.u32 244, %s191_s29  ;;  %s5960_s10 = sshll.u32 %s189_s9, 4  ;;  %s5961_s10 = int_to_ptr.vmem [resolvable:$true] %s5960_s10 }
  0x18   : > { %s5948_s14 = scalar_lea.sflag [#allocation3], %s188_s6  ;;  %s7914_s20 = scalar_lea.vmem %s5961_s10, 16 }
  0x19   : > { %s8069_s7 = scalar_lea.vmem %s10355_s0, %s7677_s30  ;;  %p7915_p11 = scmp.ne.s32.totalorder %s5961_s10, %s7914_s20 }
  0x1a   : > { %v196_v2 = vld [vmem:[%s8069_s7] sm:$0xf]  ;;  %v8073_v3 = vld [vmem:[%s8069_s7 + $0x4] sm:$0xf]  ;;  %v8079_v5 = vld [vmem:[%s8069_s7 + $0x8] sm:$0xff]   ;;  %s7979_s22 = smov [#allocation2]  }
  0x1b   : > { %v8076_v4 = vcombine.low %v196_v2, %v8073_v3  ;;  %v403_v8 = vshll.u32 %v8079_v5, 16  ;;  %v7725_v9 = vld [vmem:[%s8069_s7 + $0x70] sm:$0xff]   ;;  %v7726_v10 = vld [vmem:[%s8069_s7 + $0x78] sm:$0xff]   ;;  %v7730_v12 = vld [vmem:[%s8069_s7 + $0x80] sm:$0xff]   ;;  %v407_v19 = vshrl.u32 %v8079_v5, 16  ;;  %p7916_p12 = pnand %p7915_p11, %p8043_p5  ;;  %s7918_s23 = sshll.u32 %s7979_s22, 4  ;;  %s7919_s23 = int_to_ptr.vmem [resolvable:$false] %s7918_s23 }
  0x1c   : > { %v8087_v11 = vld [vmem:[%s8069_s7 + $0x10] sm:$0xff]   ;;  %v507_v15 = vshll.u32 %v7725_v9, 16  ;;  %v511_v16 = vshrl.u32 %v7725_v9, 16  ;;  %v515_v17 = vshll.u32 %v7726_v10, 16  ;;  %v519_v27 = vshrl.u32 %v7726_v10, 16  ;;  %v8107_v32 = vld [vmem:[%s8069_s7 + $0x18] sm:$0xff]   ;;  %p7921_p0 = scmp.lt.s32.totalorder %s5961_s10, %s7919_s23 }
  0x1d   : > { %v396_v6 = vshrl.u32 %v8076_v4, 16  ;;  %v398_v7 = vshll.u32 %v8076_v4, 16  ;;  %v405_v14 = vrot.slane %v403_v8, 1  ;;  %v411_v22 = vshll.u32 %v8087_v11, 16  ;;  %v7732_v35 = vld [vmem:[%s8069_s7 + $0x88] sm:$0xff]   ;;  %v8121_v42 = vld [vmem:[%s8069_s7 + $0x20] sm:$0xff]   ;;  %p7917_p13 = pneg %p7916_p12 }
  0x1e   : > { %v8094_v21 = vrot.slane %v507_v15, 1  ;;  %v517_v23 = vrot.slane %v515_v17, 1  ;;  %v523_v28 = vshll.u32 %v7730_v12, 16  ;;  %v415_v37 = vshrl.u32 %v8087_v11, 16  ;;  %v8126_v45 = vld [vmem:[%s8069_s7 + $0x90] sm:$0xff]   ;;  %v8132_v48 = vld [vmem:[%s8069_s7 + $0x28] sm:$0xff]  }
  0x1f   : > { %v400_v13 = vrot.slane %v398_v7, 1  ;;  %v409_v30 = vor.u32 %v407_v19, %v405_v14  ;;  %v413_v31 = vrot.slane %v411_v22, 1  ;;  %v419_v38 = vshll.u32 %v8107_v32, 16  ;;  %v8136_v50 = vld [vmem:[%s8069_s7 + $0x98] sm:$0xff]   ;;  %v8145_v58 = vld [vmem:[%s8069_s7 + $0x30] sm:$0xff]   ;;  %v8150_v61 = vld [vmem:[%s8069_s7 + $0xa0] sm:$0xff]  }
  0x20   : > { %v513_v25 = vor.u32 %v511_v16, %v8094_v21  ;;  %v521_v33 = vor.u32 %v519_v27, %v517_v23  ;;  %v525_v34 = vrot.slane %v523_v28, 1  ;;  %v527_v40 = vshrl.u32 %v7730_v12, 16  ;;  %v8153_v62 = vld [vmem:[%s8069_s7 + $0x38] sm:$0xff]   ;;  %v8158_v2 = vld [vmem:[%s8069_s7 + $0xa8] sm:$0xff]   ;;  %v8163_v7 = vld [vmem:[%s8069_s7 + $0x40] sm:$0xff]   ;;  %s7920_s19 = scalar_lea.vmem %s7919_s23, 32 }
  0x21   : > { %v401_v20 = vor.u32 %v400_v13, %v396_v6  ;;  %v414_v36 = vsel %vm394_vm1, %v409_v30, %v413_v31  ;;  %v531_v41 = vshll.u32 %v7732_v35, 16  ;;  %v417_v43 = vor.u32 %v415_v37, %v413_v31  ;;  %v8170_v13 = vld [vmem:[%s8069_s7 + $0xb0] sm:$0xff]   ;;  %v8179_v22 = vld [vmem:[%s8069_s7 + $0x48] sm:$0xff]   ;;  %p7922_p1 = scmp.lt.s32.totalorder %s7920_s19, %s7914_s20 }
  0x22   : > { %v518_v29 = vsel %vm394_vm1, %v513_v25, %v517_v23  ;;  %v526_v39 = vsel %vm394_vm1, %v521_v33, %v525_v34  ;;  %v421_v44 = vrot.slane %v419_v38, 1  ;;  %v529_v46 = vor.u32 %v527_v40, %v525_v34  ;;  %v8182_v23 = vld [vmem:[%s8069_s7 + $0xb8] sm:$0xff]   ;;  %v8186_v25 = vld [vmem:[%s8069_s7 + $0x50] sm:$0xff]   ;;  %v8193_v34 = vld [vmem:[%s8069_s7 + $0xc0] sm:$0xff]  }
  0x23   : > { %v406_v24 = vsel %vm394_vm1, %v401_v20, %v405_v14  ;;  %6744 = vmatmul.mubr.msk.bf16.vlgmr.msra.gmra.mxu1 %vm621_vm2, %v518_v29  ;;  %v533_v47 = vrot.slane %v531_v41, 1  ;;  %v427_v49 = vshll.u32 %v8121_v42, 16  ;;  %v423_v52 = vshrl.u32 %v8107_v32, 16  ;;  %p7923_p2 = por %p7922_p1, %p7921_p0 }
  0x24   : > { %6688 = vmatmul.mubr.msk.bf16.vlgmr.msra.gmra.mxu0 %vm621_vm2, %v406_v24  ;;  %6796 = vmatpush3.bf16.msra.mxu1 %v7728_v26  ;;  %v422_v51 = vsel %vm394_vm1, %v417_v43, %v421_v44  ;;  %v539_v53 = vshll.u32 %v8126_v45, 16  ;;  %v535_v54 = vshrl.u32 %v7732_v35, 16  ;;  %v431_v55 = vshrl.u32 %v8121_v42, 16 }
  0x25   : > { %6906 = vmatpush3.bf16.msra.mxu0 %v7727_v18  ;;  %6691 = vmatprep.mubr.msk.bf16.mxu0 %vm7977_vm0, %v10360_v1  ;;  %v534_v56 = vsel %vm394_vm1, %v529_v46, %v533_v47  ;;  %v435_v57 = vshll.u32 %v8132_v48, 16  ;;  %v429_v59 = vrot.slane %v427_v49, 1  ;;  %v547_v60 = vshll.u32 %v8136_v50, 16  ;;  %v8209_v49 = vld [vmem:[%s8069_s7 + $0x58] sm:$0xff]   ;;  %p7924_p3 = pnand %p7923_p2, %p7917_p13 }
  0x26   : > { %7125 = vmatprep.subr.bf16.mxu0 %v10360_v1  ;;  %6747 = vmatprep.mubr.msk.bf16.mxu1 %vm7977_vm0, %v10360_v1  ;;  %v425_v63 = vor.u32 %v423_v52, %v421_v44  ;;  %v541_v0 = vrot.slane %v539_v53, 1  ;;  %v543_v6 = vshrl.u32 %v8126_v45, 16  ;;  %v537_v8 = vor.u32 %v535_v54, %v533_v47  ;;  %v8214_v54 = vld [vmem:[%s8069_s7 + $0xc8] sm:$0xff]  }
  0x27   : > { %7015 = vmatprep.subr.bf16.mxu1 %v10360_v1  ;;  %v437_v9 = vrot.slane %v435_v57, 1  ;;  %v439_v10 = vshrl.u32 %v8132_v48, 16  ;;  %v443_v12 = vshll.u32 %v8145_v58, 16  ;;  %v549_v14 = vrot.slane %v547_v60, 1 }
  0x28   : > { %v551_v15 = vshrl.u32 %v8136_v50, 16  ;;  %v555_v16 = vshll.u32 %v8150_v61, 16  ;;  %v451_v17 = vshll.u32 %v8153_v62, 16  ;;  %v430_v18 = vsel %vm394_vm1, %v425_v63, %v429_v59 }
  0x29   : > { %v447_v19 = vshrl.u32 %v8145_v58, 16  ;;  %v563_v20 = vshll.u32 %v8158_v2, 16  ;;  %v459_v24 = vshll.u32 %v8163_v7, 16  ;;  %v542_v26 = vsel %vm394_vm1, %v537_v8, %v541_v0  ;;  %v8230_v8 = vld [vmem:[%s8069_s7 + $0x60] sm:$0xff]  }
  0x2a   : > { %v445_v27 = vrot.slane %v443_v12, 1  ;;  %v571_v28 = vshll.u32 %v8170_v13, 16  ;;  %v433_v29 = vor.u32 %v431_v55, %v429_v59  ;;  %v557_v30 = vrot.slane %v555_v16, 1 }
  0x2b   : > { %6748 = vmatmul.mubr.msk.bf16.gmra.mxu1 %vm621_vm2, %v526_v39  ;;  %v453_v31 = vrot.slane %v451_v17, 1  ;;  %v559_v33 = vshrl.u32 %v8150_v61, 16  ;;  %v565_v35 = vrot.slane %v563_v20, 1  ;;  %v467_v37 = vshll.u32 %v8179_v22, 16 }
  0x2c   : > { %6692 = vmatmul.mubr.msk.bf16.gmra.mxu0 %vm621_vm2, %v414_v36  ;;  %6751 = vmatprep.mubr.msk.bf16.mxu1 %vm7977_vm0, %v10360_v1  ;;  %v455_v36 = vshrl.u32 %v8153_v62, 16  ;;  %v579_v38 = vshll.u32 %v8182_v23, 16  ;;  %v461_v39 = vrot.slane %v459_v24, 1  ;;  %v567_v40 = vshrl.u32 %v8158_v2, 16 }
  0x2d   : > { %6695 = vmatprep.mubr.msk.bf16.mxu0 %vm7977_vm0, %v10360_v1  ;;  %v463_v41 = vshrl.u32 %v8163_v7, 16  ;;  %v475_v43 = vshll.u32 %v8186_v25, 16  ;;  %v545_v44 = vor.u32 %v543_v6, %v541_v0  ;;  %v573_v45 = vrot.slane %v571_v28, 1 }
  0x2e   : > { %v575_v46 = vshrl.u32 %v8170_v13, 16  ;;  %v587_v47 = vshll.u32 %v8193_v34, 16  ;;  %v438_v50 = vsel %vm394_vm1, %v433_v29, %v437_v9  ;;  %v581_v52 = vrot.slane %v579_v38, 1 }
  0x2f   : > { %v471_v53 = vshrl.u32 %v8179_v22, 16  ;;  %v8216_v55 = vrot.slane %v475_v43, 1  ;;  %v550_v57 = vsel %vm394_vm1, %v545_v44, %v549_v14  ;;  %v479_v59 = vshrl.u32 %v8186_v25, 16 }
  0x30   : > { %v591_v60 = vshrl.u32 %v8193_v34, 16  ;;  %v589_v61 = vrot.slane %v587_v47, 1  ;;  %v483_v63 = vshll.u32 %v8209_v49, 16  ;;  %v441_v0 = vor.u32 %v439_v10, %v437_v9 }
  0x31   : > { %v595_v2 = vshll.u32 %v8214_v54, 16  ;;  %v487_v6 = vshrl.u32 %v8209_v49, 16  ;;  %v553_v12 = vor.u32 %v551_v15, %v549_v14  ;;  %v491_v10 = vshll.u32 %v8230_v8, 16 }
  0x32   : > { %v446_v13 = vsel %vm394_vm1, %v441_v0, %v445_v27  ;;  %v485_v9 = vrot.slane %v483_v63, 1  ;;  %v449_v17 = vor.u32 %v447_v19, %v445_v27  ;;  %v561_v14 = vor.u32 %v559_v33, %v557_v30  ;;  %v8250_v19 = vld [vmem:[%s8069_s7 + $0xd0] sm:$0xff]  }
  0x33   : > { %6752 = vmatmul.mubr.msk.bf16.gmra.mxu1 %vm621_vm2, %v534_v56  ;;  %v583_v56 = vshrl.u32 %v8182_v23, 16  ;;  %v558_v16 = vsel %vm394_vm1, %v553_v12, %v557_v30  ;;  %v597_v20 = vrot.slane %v595_v2, 1  ;;  %v493_v23 = vrot.slane %v491_v10, 1  ;;  %v1261_v12 = vld [vmem:[%s8069_s7] sm:$0xe] }
  0x34   : > { %6696 = vmatmul.mubr.msk.bf16.gmra.mxu0 %vm621_vm2, %v422_v51  ;;  %6755 = vmatprep.mubr.msk.bf16.mxu1 %vm7977_vm0, %v10360_v1  ;;  %v469_v51 = vrot.slane %v467_v37, 1  ;;  %v454_v15 = vsel %vm394_vm1, %v449_v17, %v453_v31  ;;  %v457_v24 = vor.u32 %v455_v36, %v453_v31  ;;  %v599_v29 = vshrl.u32 %v8214_v54, 16 }
  0x35   : > { %6699 = vmatprep.mubr.msk.bf16.mxu0 %vm7977_vm0, %v10360_v1  ;;  %v603_v30 = vshll.u32 %v8250_v19, 16  ;;  %v465_v31 = vor.u32 %v463_v41, %v461_v39  ;;  %v577_v33 = vor.u32 %v575_v46, %v573_v45  ;;  %v495_v38 = vshrl.u32 %v8230_v8, 16 }
  0x36   : > { %v462_v27 = vsel %vm394_vm1, %v457_v24, %v461_v39  ;;  %v473_v39 = vor.u32 %v471_v53, %v469_v51  ;;  %v585_v41 = vor.u32 %v583_v56, %v581_v52  ;;  %v607_v46 = vshrl.u32 %v8250_v19, 16 }
  0x37   : > { %v582_v36 = vsel %vm394_vm1, %v577_v33, %v581_v52  ;;  %v605_v37 = vrot.slane %v603_v30, 1  ;;  %v481_v47 = vor.u32 %v479_v59, %v8216_v55  ;;  %v489_v56 = vor.u32 %v487_v6, %v485_v9 }
  0x38   : > { %v478_v43 = vsel %vm394_vm1, %v473_v39, %v8216_v55  ;;  %v590_v44 = vsel %vm394_vm1, %v585_v41, %v589_v61  ;;  %v601_v34 = vor.u32 %v599_v29, %v597_v20  ;;  %v497_v63 = vor.u32 %v495_v38, %v493_v23 }
  0x39   : > { %v486_v52 = vsel %vm394_vm1, %v481_v47, %v485_v9  ;;  %v609_v0 = vor.u32 %v607_v46, %v605_v37  ;;  %v7753_v9 = vld [vmem:[%s10356_s1 + $0x18] sm:$0xff]   ;;  %v6108_v10 = vcombine.low %v1261_v12, %v8073_v3  ;;  %v1280_v24 = vrot.slane %v8145_v58, 1 }
  0x3a   : > { %v606_v59 = vsel %vm394_vm1, %v601_v34, %v605_v37  ;;  %v1288_v29 = vrot.slane %v8186_v25, 1  ;;  %v1290_v30 = vrot.slane %v8209_v49, 1  ;;  %v1292_v33 = vrot.slane %v8230_v8, 1 }
  0x3b   : > { %6756 = vmatmul.mubr.msk.bf16.gmra.mxu1 %vm621_vm2, %v542_v26  ;;  %v569_v26 = vor.u32 %v567_v40, %v565_v35  ;;  %v8272_v40 = vld [vmem:[%s8069_s7 + $0x68] sm:$0xff]   ;;  %v1269_v17 = vrot.slane %v6108_v10, 1 }
  0x3c   : > { %6700 = vmatmul.mubr.msk.bf16.gmra.mxu0 %vm621_vm2, %v430_v18  ;;  %6759 = vmatprep.mubr.msk.bf16.mxu1 %vm7977_vm0, %v10360_v1  ;;  %v566_v18 = vsel %vm394_vm1, %v561_v14, %v565_v35  ;;  %v470_v35 = vsel %vm394_vm1, %v465_v31, %v469_v51  ;;  %v593_v51 = vor.u32 %v591_v60, %v589_v61  ;;  %v503_v55 = vshrl.u32 %v8272_v40, 16 }
  0x3d   : > { %6703 = vmatprep.mubr.msk.bf16.mxu0 %vm7977_vm0, %v10360_v1  ;;  %v574_v28 = vsel %vm394_vm1, %v569_v26, %v573_v45  ;;  %v499_v45 = vshll.u32 %v8272_v40, 16  ;;  %v1270_v14 = vrot.slane %v8079_v5, 1  ;;  %v1282_v26 = vrot.slane %v8153_v62, 1 }
  0x3e   : > { %v598_v53 = vsel %vm394_vm1, %v593_v51, %v597_v20  ;;  %v1276_v20 = vrot.slane %v8121_v42, 1  ;;  %v1293_v38 = vsel %vm1268_vm3, %v1290_v30, %v1292_v33 }
  0x3f   : > { %v501_v60 = vrot.slane %v499_v45, 1  ;;  %v1271_v3 = vsel %vm1268_vm3, %v1269_v17, %v1270_v14 }
  0x41   : > { %v502_v2 = vsel %vm394_vm1, %v497_v63, %v501_v60 }
  0x43   : > { %6760 = vmatmul.mubr.msk.bf16.gmra.mxu1 %vm621_vm2, %v550_v57  ;;  %v494_v57 = vsel %vm394_vm1, %v489_v56, %v493_v23  ;;  %v1278_v23 = vrot.slane %v8132_v48, 1 }
  0x44   : > { %6704 = vmatmul.mubr.msk.bf16.gmra.mxu0 %vm621_vm2, %v438_v50  ;;  %6763 = vmatprep.mubr.msk.bf16.mxu1 %vm7977_vm0, %v10360_v1  ;;  %v8287_v50 = vld [vmem:[%s8069_s7 + $0xd8] ss:$0 sps:$4 sm:$0x11]  }
  0x45   : > { %6707 = vmatprep.mubr.msk.bf16.mxu0 %vm7977_vm0, %v10360_v1  ;;  %v611_v54 = vshll.u32 %v8287_v50, 16 }
  0x47   : > { %v613_v61 = vrot.slane %v611_v54, 1 }
  0x49   : > { %v614_v6 = vsel %vm394_vm1, %v609_v0, %v613_v61 }
  0x4b   : > { %6764 = vmatmul.mubr.msk.bf16.gmra.mxu1 %vm621_vm2, %v558_v16 }
  0x4c   : > { %6708 = vmatmul.mubr.msk.bf16.gmra.mxu0 %vm621_vm2, %v446_v13  ;;  %6767 = vmatprep.mubr.msk.bf16.mxu1 %vm7977_vm0, %v10360_v1  ;;  %v505_v13 = vor.u32 %v503_v55, %v501_v60 }
  0x4d   : > { %6711 = vmatprep.mubr.msk.bf16.mxu0 %vm7977_vm0, %v10360_v1 }
  0x4e   : > { %v510_v16 = vsel %vm394_vm1, %v505_v13, %v8094_v21  ;;  %v7755_v21 = vld [vmem:[%s10356_s1 + $0x20] sm:$0xff]  }
  0x53   : > { %6768 = vmatmul.mubr.msk.bf16.gmra.mxu1 %vm621_vm2, %v566_v18  ;;  %v1274_v18 = vrot.slane %v8107_v32, 1 }
  0x54   : > { %6712 = vmatmul.mubr.msk.bf16.gmra.mxu0 %vm621_vm2, %v454_v15  ;;  %6771 = vmatprep.mubr.msk.bf16.mxu1 %vm7977_vm0, %v10360_v1 }
  0x55   : > { %6715 = vmatprep.mubr.msk.bf16.mxu0 %vm7977_vm0, %v10360_v1 }
  0x5b   : > { %6772 = vmatmul.mubr.msk.bf16.gmra.mxu1 %vm621_vm2, %v574_v28  ;;  %v1286_v28 = vrot.slane %v8179_v22, 1 }
  0x5c   : > { %6716 = vmatmul.mubr.msk.bf16.gmra.mxu0 %vm621_vm2, %v462_v27  ;;  %6775 = vmatprep.mubr.msk.bf16.mxu1 %vm7977_vm0, %v10360_v1  ;;  %v1284_v27 = vrot.slane %v8163_v7, 1 }
  0x5d   : > { %6719 = vmatprep.mubr.msk.bf16.mxu0 %vm7977_vm0, %v10360_v1 }
  0x63   : > { %6776 = vmatmul.mubr.msk.bf16.gmra.mxu1 %vm621_vm2, %v582_v36 }
  0x64   : > { %6720 = vmatmul.mubr.msk.bf16.gmra.mxu0 %vm621_vm2, %v470_v35  ;;  %6779 = vmatprep.mubr.msk.bf16.mxu1 %vm7977_vm0, %v10360_v1 }
  0x65   : > { %6723 = vmatprep.mubr.msk.bf16.mxu0 %vm7977_vm0, %v10360_v1 }
  0x6b   : > { %6780 = vmatmul.mubr.msk.bf16.gmra.mxu1 %vm621_vm2, %v590_v44 }
  0x6c   : > { %6724 = vmatmul.mubr.msk.bf16.gmra.mxu0 %vm621_vm2, %v478_v43  ;;  %6783 = vmatprep.mubr.msk.bf16.mxu1 %vm7977_vm0, %v10360_v1 }
  0x6d   : > { %6727 = vmatprep.mubr.msk.bf16.mxu0 %vm7977_vm0, %v10360_v1 }
  0x73   : > { %6784 = vmatmul.mubr.msk.bf16.gmra.mxu1 %vm621_vm2, %v598_v53 }
  0x74   : > { %6728 = vmatmul.mubr.msk.bf16.gmra.mxu0 %vm621_vm2, %v486_v52  ;;  %6787 = vmatprep.mubr.msk.bf16.mxu1 %vm7977_vm0, %v10360_v1 }
  0x75   : > { %6731 = vmatprep.mubr.msk.bf16.mxu0 %vm7977_vm0, %v10360_v1 }
  0x7b   : > { %6788 = vmatmul.mubr.msk.bf16.gmra.mxu1 %vm621_vm2, %v606_v59 }
  0x7c   : > { %6732 = vmatmul.mubr.msk.bf16.gmra.mxu0 %vm621_vm2, %v494_v57  ;;  %6791 = vmatprep.mubr.msk.bf16.mxu1 %vm7977_vm0, %v10360_v1 }
  0x7d   : > { %6735 = vmatprep.mubr.msk.bf16.mxu0 %vm7977_vm0, %v10360_v1 }
  0x83   : > { %6792 = vmatmul.mubr.msk.bf16.gmra.mxu1 %vm621_vm2, %v614_v6 }
  0x84   : > { %6736 = vmatmul.mubr.msk.bf16.gmra.mxu0 %vm621_vm2, %v502_v2  ;;  %6797 = vmatprep.mubr.msk.bf16.mxu1 %vm7977_vm0, %v10360_v1 }
  0x85   : > { %6739 = vmatprep.mubr.msk.bf16.mxu0 %vm7977_vm0, %v10360_v1 }
  0x8b   : > { %6798 = vmatmul.mubr.msk.bf16.vlgmr.msra.gmra.mxu1 %vm621_vm2, %v8076_v4  ;;  %v1272_v4 = vrot.slane %v8087_v11, 1 }
  0x8c   : > { %6740 = vmatmul.mubr.msk.bf16.gmra.mxu0 %vm621_vm2, %v510_v16  ;;  %7016 = vmatpush3.bf16.msra.mxu1 %v7753_v9 }
  0x8d   : > { %6907 = vmatprep.mubr.msk.bf16.mxu0 %vm7977_vm0, %v10360_v1  ;;  %6801 = vmatprep.mubr.msk.bf16.mxu1 %vm7977_vm0, %v10360_v1  ;;  %v1273_v15 = vsel %vm1268_vm3, %v1270_v14, %v1272_v4 }
  0x8e   : > { %7235 = vmatprep.subr.bf16.mxu1 %v10360_v1 }
  0x93   : > { %6802 = vmatmul.mubr.msk.bf16.gmra.mxu1 %vm621_vm2, %v8079_v5  ;;  %v1275_v5 = vsel %vm1268_vm3, %v1272_v4, %v1274_v18 }
  0x94   : > { %6908 = vmatmul.mubr.msk.bf16.vlgmr.msra.gmra.mxu0 %vm621_vm2, %v1271_v3  ;;  %6805 = vmatprep.mubr.msk.bf16.mxu1 %vm7977_vm0, %v10360_v1 }
  0x95   : > { %7126 = vmatpush3.bf16.msra.mxu0 %v7755_v21  ;;  %6911 = vmatprep.mubr.msk.bf16.mxu0 %vm7977_vm0, %v10360_v1 }
  0x96   : > { %7345 = vmatprep.subr.bf16.mxu0 %v10360_v1 }
  0x9b   : > { %6806 = vmatmul.mubr.msk.bf16.gmra.mxu1 %vm621_vm2, %v8087_v11  ;;  %v1277_v11 = vsel %vm1268_vm3, %v1274_v18, %v1276_v20  ;;  %v7874_v18 = vld [vmem:[%s8069_s7 + $0x80] sm:$0xff]  }
  0x9c   : > { %6912 = vmatmul.mubr.msk.bf16.gmra.mxu0 %vm621_vm2, %v1273_v15  ;;  %6809 = vmatprep.mubr.msk.bf16.mxu1 %vm7977_vm0, %v10360_v1 }
  0x9d   : > { %6915 = vmatprep.mubr.msk.bf16.mxu0 %vm7977_vm0, %v10360_v1 }
  0xa3   : > { %6810 = vmatmul.mubr.msk.bf16.gmra.mxu1 %vm621_vm2, %v8107_v32  ;;  %v1279_v32 = vsel %vm1268_vm3, %v1276_v20, %v1278_v23 }
  0xa4   : > { %6916 = vmatmul.mubr.msk.bf16.gmra.mxu0 %vm621_vm2, %v1275_v5  ;;  %6813 = vmatprep.mubr.msk.bf16.mxu1 %vm7977_vm0, %v10360_v1  ;;  %v1300_v5 = vrot.slane %v7874_v18, 1 }
  0xa5   : > { %6919 = vmatprep.mubr.msk.bf16.mxu0 %vm7977_vm0, %v10360_v1 }
  0xab   : > { %6814 = vmatmul.mubr.msk.bf16.gmra.mxu1 %vm621_vm2, %v8121_v42  ;;  %v1281_v42 = vsel %vm1268_vm3, %v1278_v23, %v1280_v24 }
  0xac   : > { %6920 = vmatmul.mubr.msk.bf16.gmra.mxu0 %vm621_vm2, %v1277_v11  ;;  %6817 = vmatprep.mubr.msk.bf16.mxu1 %vm7977_vm0, %v10360_v1 }
  0xad   : > { %6923 = vmatprep.mubr.msk.bf16.mxu0 %vm7977_vm0, %v10360_v1 }
  0xb3   : > { %6818 = vmatmul.mubr.msk.bf16.gmra.mxu1 %vm621_vm2, %v8132_v48  ;;  %v1283_v48 = vsel %vm1268_vm3, %v1280_v24, %v1282_v26 }
  0xb4   : > { %6924 = vmatmul.mubr.msk.bf16.gmra.mxu0 %vm621_vm2, %v1279_v32  ;;  %6821 = vmatprep.mubr.msk.bf16.mxu1 %vm7977_vm0, %v10360_v1 }
  0xb5   : > { %6927 = vmatprep.mubr.msk.bf16.mxu0 %vm7977_vm0, %v10360_v1 }
  0xbb   : > { %6822 = vmatmul.mubr.msk.bf16.gmra.mxu1 %vm621_vm2, %v8145_v58  ;;  %v1285_v58 = vsel %vm1268_vm3, %v1282_v26, %v1284_v27 }
  0xbc   : > { %6928 = vmatmul.mubr.msk.bf16.gmra.mxu0 %vm621_vm2, %v1281_v42  ;;  %6825 = vmatprep.mubr.msk.bf16.mxu1 %vm7977_vm0, %v10360_v1 }
  0xbd   : > { %6931 = vmatprep.mubr.msk.bf16.mxu0 %vm7977_vm0, %v10360_v1 }
  0xc3   : > { %6826 = vmatmul.mubr.msk.bf16.gmra.mxu1 %vm621_vm2, %v8153_v62  ;;  %v1287_v62 = vsel %vm1268_vm3, %v1284_v27, %v1286_v28 }
  0xc4   : > { %6932 = vmatmul.mubr.msk.bf16.gmra.mxu0 %vm621_vm2, %v1283_v48  ;;  %6829 = vmatprep.mubr.msk.bf16.mxu1 %vm7977_vm0, %v10360_v1 }
  0xc5   : > { %6935 = vmatprep.mubr.msk.bf16.mxu0 %vm7977_vm0, %v10360_v1 }
  0xcb   : > { %6830 = vmatmul.mubr.msk.bf16.gmra.mxu1 %vm621_vm2, %v8163_v7  ;;  %v1289_v7 = vsel %vm1268_vm3, %v1286_v28, %v1288_v29 }
  0xcc   : > { %6936 = vmatmul.mubr.msk.bf16.gmra.mxu0 %vm621_vm2, %v1285_v58  ;;  %6833 = vmatprep.mubr.msk.bf16.mxu1 %vm7977_vm0, %v10360_v1  ;;  %v7875_v58 = vld [vmem:[%s8069_s7 + $0x88] sm:$0xff]  }
  0xcd   : > { %6939 = vmatprep.mubr.msk.bf16.mxu0 %vm7977_vm0, %v10360_v1  ;;  %v1302_v28 = vrot.slane %v7875_v58, 1 }
  0xd3   : > { %6834 = vmatmul.mubr.msk.bf16.gmra.mxu1 %vm621_vm2, %v8179_v22  ;;  %v1291_v22 = vsel %vm1268_vm3, %v1288_v29, %v1290_v30 }
  0xd4   : > { %6940 = vmatmul.mubr.msk.bf16.gmra.mxu0 %vm621_vm2, %v1287_v62  ;;  %6837 = vmatprep.mubr.msk.bf16.mxu1 %vm7977_vm0, %v10360_v1 }
  0xd5   : > { %6943 = vmatprep.mubr.msk.bf16.mxu0 %vm7977_vm0, %v10360_v1 }
  0xdb   : > { %6838 = vmatmul.mubr.msk.bf16.gmra.mxu1 %vm621_vm2, %v8186_v25 }
  0xdc   : > { %6944 = vmatmul.mubr.msk.bf16.gmra.mxu0 %vm621_vm2, %v1289_v7  ;;  %6841 = vmatprep.mubr.msk.bf16.mxu1 %vm7977_vm0, %v10360_v1 }
  0xdd   : > { %6947 = vmatprep.mubr.msk.bf16.mxu0 %vm7977_vm0, %v10360_v1 }
  0xe3   : > { %v8438_v35 = vpop.f32.mrf.mxu1  ;;  %6842 = vmatmul.mubr.msk.bf16.gmra.mxu1 %vm621_vm2, %v8209_v49  ;;  %v1294_v49 = vrot.slane %v8272_v40, 1 }
  0xe4   : > { %v8432_v31 = vpop.f32.mrf.mxu0  ;;  %6948 = vmatmul.mubr.msk.bf16.gmra.mxu0 %vm621_vm2, %v1291_v22  ;;  %6845 = vmatprep.mubr.msk.bf16.mxu1 %vm7977_vm0, %v10360_v1  ;;  %v1303_v22 = vsel %vm1268_vm3, %v1300_v5, %v1302_v28 }
  0xe5   : > { %6951 = vmatprep.mubr.msk.bf16.mxu0 %vm7977_vm0, %v10360_v1  ;;  %v6745_v36 = vpop.f32.mrf.mxu1  ;;  %v1295_v52 = vsel %vm1268_vm3, %v1292_v33, %v1294_v49 }
  0xe6   : > { %v6689_v25 = vpop.f32.mrf.mxu0 }
  0xe7   : > { %v8447_v39 = vpop.f32.mrf.mxu1 }
  0xe8   : > { %v8444_v37 = vpop.f32.mrf.mxu0 }
  0xe9   : > { %v6746_v43 = vpop.f32.mrf.mxu1 }
  0xea   : > { %v6690_v41 = vpop.f32.mrf.mxu0 }
  0xeb   : > { %v8455_v45 = vpop.f32.mrf.mxu1  ;;  %6846 = vmatmul.mubr.msk.bf16.gmra.mxu1 %vm621_vm2, %v8230_v8  ;;  %v7872_v8 = vld [vmem:[%s8069_s7 + $0x70] sm:$0xff]  }
  0xec   : > { %v8449_v44 = vpop.f32.mrf.mxu0  ;;  %6952 = vmatmul.mubr.msk.bf16.gmra.mxu0 %vm621_vm2, %v1293_v38  ;;  %6849 = vmatprep.mubr.msk.bf16.mxu1 %vm7977_vm0, %v10360_v1  ;;  %v1296_v34 = vrot.slane %v7872_v8, 1  ;;  %v7876_v41 = vld [vmem:[%s8069_s7 + $0x90] sm:$0xff]  }
  0xed   : > { %6955 = vmatprep.mubr.msk.bf16.mxu0 %vm7977_vm0, %v10360_v1  ;;  %v6749_v47 = vpop.f32.mrf.mxu1  ;;  %v1304_v43 = vrot.slane %v7876_v41, 1 }
  0xee   : > { %v6693_v46 = vpop.f32.mrf.mxu0  ;;  %v1297_v63 = vsel %vm1268_vm3, %v1294_v49, %v1296_v34 }
  0xef   : > { %v8464_v53 = vpop.f32.mrf.mxu1 }
  0xf0   : > { %v8461_v51 = vpop.f32.mrf.mxu0 }
  0xf1   : > { %v6750_v55 = vpop.f32.mrf.mxu1 }
  0xf2   : > { %v6694_v54 = vpop.f32.mrf.mxu0 }
  0xf3   : > { %v8472_v57 = vpop.f32.mrf.mxu1  ;;  %6850 = vmatmul.mubr.msk.bf16.gmra.mxu1 %vm621_vm2, %v8272_v40  ;;  %v7873_v40 = vld [vmem:[%s8069_s7 + $0x78] sm:$0xff]   ;;  %v1305_v54 = vsel %vm1268_vm3, %v1302_v28, %v1304_v43 }
  0xf4   : > { %v8466_v56 = vpop.f32.mrf.mxu0  ;;  %6956 = vmatmul.mubr.msk.bf16.gmra.mxu0 %vm621_vm2, %v1295_v52  ;;  %6853 = vmatprep.mubr.msk.bf16.mxu1 %vm7977_vm0, %v10360_v1  ;;  %v1298_v13 = vrot.slane %v7873_v40, 1 }
  0xf5   : > { %6959 = vmatprep.mubr.msk.bf16.mxu0 %vm7977_vm0, %v10360_v1  ;;  %v6753_v60 = vpop.f32.mrf.mxu1 }
  0xf6   : > { %v6697_v59 = vpop.f32.mrf.mxu0  ;;  %v1299_v14 = vsel %vm1268_vm3, %v1296_v34, %v1298_v13  ;;  %v1301_v24 = vsel %vm1268_vm3, %v1298_v13, %v1300_v5  ;;  %v7877_v60 = vld [vmem:[%s8069_s7 + $0x98] sm:$0xff]  }
  0xf7   : > { %v8481_v0 = vpop.f32.mrf.mxu1 }
  0xf8   : > { %v8478_v61 = vpop.f32.mrf.mxu0 }
  0xf9   : > { %v6754_v6 = vpop.f32.mrf.mxu1 }
  0xfa   : > { %v6698_v2 = vpop.f32.mrf.mxu0 }
  0xfb   : > { %v8489_v16 = vpop.f32.mrf.mxu1  ;;  %6854 = vmatmul.mubr.msk.bf16.gmra.mxu1 %vm621_vm2, %v7872_v8 }
  0xfc   : > { %v8483_v12 = vpop.f32.mrf.mxu0  ;;  %6960 = vmatmul.mubr.msk.bf16.gmra.mxu0 %vm621_vm2, %v1297_v63  ;;  %6857 = vmatprep.mubr.msk.bf16.mxu1 %vm7977_vm0, %v10360_v1  ;;  %v1306_v63 = vrot.slane %v7877_v60, 1 }
  0xfd   : > { %6963 = vmatprep.mubr.msk.bf16.mxu0 %vm7977_vm0, %v10360_v1  ;;  %v6757_v10 = vpop.f32.mrf.mxu1 }
  0xfe   : > { %v6701_v9 = vpop.f32.mrf.mxu0 }
  0xff   : > { %v8497_v3 = vpop.f32.mrf.mxu1  ;;  %v1307_v9 = vsel %vm1268_vm3, %v1304_v43, %v1306_v63 }
 0x100   : > { %v8494_v17 = vpop.f32.mrf.mxu0 }
 0x101   : > { %v6758_v4 = vpop.f32.mrf.mxu1 }
 0x102   : > { %v6702_v21 = vpop.f32.mrf.mxu0 }
 0x103   : > { %v8505_v20 = vpop.f32.mrf.mxu1  ;;  %6858 = vmatmul.mubr.msk.bf16.gmra.mxu1 %vm621_vm2, %v7873_v40 }
 0x104   : > { %v8499_v15 = vpop.f32.mrf.mxu0  ;;  %6964 = vmatmul.mubr.msk.bf16.gmra.mxu0 %vm621_vm2, %v1299_v14  ;;  %6861 = vmatprep.mubr.msk.bf16.mxu1 %vm7977_vm0, %v10360_v1 }
 0x105   : > { %6967 = vmatprep.mubr.msk.bf16.mxu0 %vm7977_vm0, %v10360_v1  ;;  %v6761_v23 = vpop.f32.mrf.mxu1 }
 0x106   : > { %v6705_v11 = vpop.f32.mrf.mxu0 }
 0x107   : > { %v8513_v42 = vpop.f32.mrf.mxu1 }
 0x108   : > { %v8510_v32 = vpop.f32.mrf.mxu0 }
 0x109   : > { %v6762_v48 = vpop.f32.mrf.mxu1 }
 0x10a   : > { %v6706_v26 = vpop.f32.mrf.mxu0 }
 0x10b   : > { %v8521_v62 = vpop.f32.mrf.mxu1  ;;  %6862 = vmatmul.mubr.msk.bf16.gmra.mxu1 %vm621_vm2, %v7874_v18  ;;  %v7878_v18 = vld [vmem:[%s8069_s7 + $0xa0] sm:$0xff]  }
 0x10c   : > { %v8515_v27 = vpop.f32.mrf.mxu0  ;;  %6968 = vmatmul.mubr.msk.bf16.gmra.mxu0 %vm621_vm2, %v1301_v24  ;;  %6865 = vmatprep.mubr.msk.bf16.mxu1 %vm7977_vm0, %v10360_v1  ;;  %v1308_v5 = vrot.slane %v7878_v18, 1 }
 0x10d   : > { %6971 = vmatprep.mubr.msk.bf16.mxu0 %vm7977_vm0, %v10360_v1  ;;  %v6765_v7 = vpop.f32.mrf.mxu1 }
 0x10e   : > { %v6709_v29 = vpop.f32.mrf.mxu0  ;;  %v1309_v48 = vsel %vm1268_vm3, %v1306_v63, %v1308_v5  ;;  %v7880_v63 = vld [vmem:[%s8069_s7 + $0xb0] sm:$0xff]  }
 0x10f   : > { %v8529_v33 = vpop.f32.mrf.mxu1 }
 0x110   : > { %v8526_v30 = vpop.f32.mrf.mxu0 }
 0x111   : > { %v6766_v36 = vpop.f32.mrf.mxu1 }
 0x112   : > { %v6710_v25 = vpop.f32.mrf.mxu0 }
 0x113   : > { %v8537_v49 = vpop.f32.mrf.mxu1  ;;  %6866 = vmatmul.mubr.msk.bf16.gmra.mxu1 %vm621_vm2, %v7875_v58 }
 0x114   : > { %v8531_v38 = vpop.f32.mrf.mxu0  ;;  %6972 = vmatmul.mubr.msk.bf16.gmra.mxu0 %vm621_vm2, %v1303_v22  ;;  %6869 = vmatprep.mubr.msk.bf16.mxu1 %vm7977_vm0, %v10360_v1  ;;  %v7879_v22 = vld [vmem:[%s8069_s7 + $0xa8] sm:$0xff]  }
 0x115   : > { %6975 = vmatprep.mubr.msk.bf16.mxu0 %vm7977_vm0, %v10360_v1  ;;  %v6769_v47 = vpop.f32.mrf.mxu1  ;;  %v1310_v25 = vrot.slane %v7879_v22, 1 }
 0x116   : > { %v6713_v46 = vpop.f32.mrf.mxu0 }
 0x117   : > { %v8545_v55 = vpop.f32.mrf.mxu1  ;;  %v1311_v47 = vsel %vm1268_vm3, %v1308_v5, %v1310_v25 }
 0x118   : > { %v8542_v52 = vpop.f32.mrf.mxu0 }
 0x119   : > { %v6770_v34 = vpop.f32.mrf.mxu1 }
 0x11a   : > { %v6714_v8 = vpop.f32.mrf.mxu0 }
 0x11b   : > { %v8553_v2 = vpop.f32.mrf.mxu1  ;;  %6870 = vmatmul.mubr.msk.bf16.gmra.mxu1 %vm621_vm2, %v7876_v41 }
 0x11c   : > { %v8547_v59 = vpop.f32.mrf.mxu0  ;;  %6976 = vmatmul.mubr.msk.bf16.gmra.mxu0 %vm621_vm2, %v1305_v54  ;;  %6873 = vmatprep.mubr.msk.bf16.mxu1 %vm7977_vm0, %v10360_v1 }
 0x11d   : > { %6979 = vmatprep.mubr.msk.bf16.mxu0 %vm7977_vm0, %v10360_v1  ;;  %v6773_v40 = vpop.f32.mrf.mxu1 }
 0x11e   : > { %v6717_v6 = vpop.f32.mrf.mxu0 }
 0x11f   : > { %v8561_v10 = vpop.f32.mrf.mxu1  ;;  %v1312_v6 = vrot.slane %v7880_v63, 1 }
 0x120   : > { %v8558_v13 = vpop.f32.mrf.mxu0 }
 0x121   : > { %v6774_v21 = vpop.f32.mrf.mxu1 }
 0x122   : > { %v6718_v14 = vpop.f32.mrf.mxu0 }
 0x123   : > { %v8569_v11 = vpop.f32.mrf.mxu1  ;;  %6874 = vmatmul.mubr.msk.bf16.gmra.mxu1 %vm621_vm2, %v7877_v60 }
 0x124   : > { %v8563_v4 = vpop.f32.mrf.mxu0  ;;  %6980 = vmatmul.mubr.msk.bf16.gmra.mxu0 %vm621_vm2, %v1307_v9  ;;  %6877 = vmatprep.mubr.msk.bf16.mxu1 %vm7977_vm0, %v10360_v1 }
 0x125   : > { %6983 = vmatprep.mubr.msk.bf16.mxu0 %vm7977_vm0, %v10360_v1  ;;  %v6777_v24 = vpop.f32.mrf.mxu1 }
 0x126   : > { %v6721_v23 = vpop.f32.mrf.mxu0 }
 0x127   : > { %v8577_v58 = vpop.f32.mrf.mxu1 }
 0x128   : > { %v8574_v26 = vpop.f32.mrf.mxu0 }
 0x129   : > { %v6778_v29 = vpop.f32.mrf.mxu1 }
 0x12a   : > { %v6722_v28 = vpop.f32.mrf.mxu0 }
 0x12b   : > { %v8585_v36 = vpop.f32.mrf.mxu1  ;;  %6878 = vmatmul.mubr.msk.bf16.gmra.mxu1 %vm621_vm2, %v7878_v18  ;;  %v1313_v18 = vsel %vm1268_vm3, %v1310_v25, %v1312_v6  ;;  %v7881_v28 = vld [vmem:[%s8069_s7 + $0xb8] sm:$0xff]  }
 0x12c   : > { %v8579_v7 = vpop.f32.mrf.mxu0  ;;  %6984 = vmatmul.mubr.msk.bf16.gmra.mxu0 %vm621_vm2, %v1309_v48  ;;  %10364 = vst [vmem:[#allocation5_spill] sm:$0xff] %v8585_v36  ;;  %6881 = vmatprep.mubr.msk.bf16.mxu1 %vm7977_vm0, %v10360_v1  ;;  %v1314_v29 = vrot.slane %v7881_v28, 1  ;;  %v2297_v36 = vld [vmem:[%s8069_s7 + $0x10] sm:$0xf] }
 0x12d   : > { %6987 = vmatprep.mubr.msk.bf16.mxu0 %vm7977_vm0, %v10360_v1  ;;  %v6781_v43 = vpop.f32.mrf.mxu1 }
 0x12e   : > { %v6725_v41 = vpop.f32.mrf.mxu0 }
 0x12f   : > { %v8593_v54 = vpop.f32.mrf.mxu1 }
 0x130   : > { %v8590_v46 = vpop.f32.mrf.mxu0  ;;  %10365 = vst [vmem:[#allocation6_spill] sm:$0xff] %v8593_v54 }
 0x131   : > { %v6782_v34 = vpop.f32.mrf.mxu1 }
 0x132   : > { %v6726_v8 = vpop.f32.mrf.mxu0 }
 0x133   : > { %v8601_v40 = vpop.f32.mrf.mxu1  ;;  %6882 = vmatmul.mubr.msk.bf16.gmra.mxu1 %vm621_vm2, %v7879_v22 }
 0x134   : > { %v8595_v60 = vpop.f32.mrf.mxu0  ;;  %6988 = vmatmul.mubr.msk.bf16.gmra.mxu0 %vm621_vm2, %v1311_v47  ;;  %10366 = vst [vmem:[#allocation7_spill] sm:$0xff] %v8601_v40  ;;  %6885 = vmatprep.mubr.msk.bf16.mxu1 %vm7977_vm0, %v10360_v1  ;;  %v1315_v47 = vsel %vm1268_vm3, %v1312_v6, %v1314_v29 }
 0x135   : > { %6991 = vmatprep.mubr.msk.bf16.mxu0 %vm7977_vm0, %v10360_v1  ;;  %v6785_v14 = vpop.f32.mrf.mxu1 }
 0x136   : > { %v6729_v9 = vpop.f32.mrf.mxu0 }
 0x137   : > { %v8609_v5 = vpop.f32.mrf.mxu1 }
 0x138   : > { %v8606_v21 = vpop.f32.mrf.mxu0  ;;  %10367 = vst [vmem:[#allocation8_spill] sm:$0xff] %v8609_v5 }
 0x139   : > { %v6786_v24 = vpop.f32.mrf.mxu1 }
 0x13a   : > { %v6730_v23 = vpop.f32.mrf.mxu0 }
 0x13b   : > { %v8617_v22 = vpop.f32.mrf.mxu1  ;;  %6886 = vmatmul.mubr.msk.bf16.gmra.mxu1 %vm621_vm2, %v7880_v63  ;;  %v7882_v63 = vld [vmem:[%s8069_s7 + $0xc0] sm:$0xff]  }
 0x13c   : > { %v8611_v48 = vpop.f32.mrf.mxu0  ;;  %6992 = vmatmul.mubr.msk.bf16.gmra.mxu0 %vm621_vm2, %v1313_v18  ;;  %10368 = vst [vmem:[#allocation9_spill] sm:$0xff] %v8617_v22  ;;  %6889 = vmatprep.mubr.msk.bf16.mxu1 %vm7977_vm0, %v10360_v1  ;;  %v1316_v18 = vrot.slane %v7882_v63, 1 }
 0x13d   : > { %6995 = vmatprep.mubr.msk.bf16.mxu0 %vm7977_vm0, %v10360_v1  ;;  %v6789_v25 = vpop.f32.mrf.mxu1 }
 0x13e   : > { %v6733_v41 = vpop.f32.mrf.mxu0  ;;  %v1317_v25 = vsel %vm1268_vm3, %v1314_v29, %v1316_v18 }
 0x13f   : > { %v8625_v8 = vpop.f32.mrf.mxu1 }
 0x140   : > { %v8622_v43 = vpop.f32.mrf.mxu0  ;;  %10369 = vst [vmem:[#allocation10_spill] sm:$0xff] %v8625_v8 }
 0x141   : > { %v6790_v9 = vpop.f32.mrf.mxu1 }
 0x142   : > { %v6734_v34 = vpop.f32.mrf.mxu0 }
 0x143   : > { %v8633_v23 = vpop.f32.mrf.mxu1  ;;  %6890 = vmatmul.mubr.msk.bf16.gmra.mxu1 %vm621_vm2, %v7881_v28  ;;  %v7883_v28 = vld [vmem:[%s8069_s7 + $0xc8] sm:$0xff]  }
 0x144   : > { %v8627_v14 = vpop.f32.mrf.mxu0  ;;  %6996 = vmatmul.mubr.msk.bf16.gmra.mxu0 %vm621_vm2, %v1315_v47  ;;  %10370 = vst [vmem:[#allocation11_spill] sm:$0xff] %v8633_v23  ;;  %6893 = vmatprep.mubr.msk.bf16.mxu1 %vm7977_vm0, %v10360_v1 }
 0x145   : > { %6999 = vmatprep.mubr.msk.bf16.mxu0 %vm7977_vm0, %v10360_v1  ;;  %v6793_v6 = vpop.f32.mrf.mxu1 }
 0x146   : > { %v6737_v24 = vpop.f32.mrf.mxu0 }
 0x147   : > { %v8641_v47 = vpop.f32.mrf.mxu1  ;;  %v1318_v24 = vrot.slane %v7883_v28, 1 }
 0x148   : > { %v8638_v41 = vpop.f32.mrf.mxu0  ;;  %10371 = vst [vmem:[#allocation12_spill] sm:$0xff] %v8641_v47 }
 0x149   : > { %v6794_v9 = vpop.f32.mrf.mxu1 }
 0x14a   : > { %v6738_v34 = vpop.f32.mrf.mxu0  ;;  %v1319_v9 = vsel %vm1268_vm3, %v1316_v18, %v1318_v24  ;;  %v2296_v18 = vld [vmem:[%s8069_s7 + $0xc] sm:$0xf] }
 0x14b   : > { %v1046_v23 = vpop.f32.mrf.mxu1  ;;  %6894 = vmatmul.mubr.msk.bf16.gmra.mxu1 %vm621_vm2, %v7882_v63 }
 0x14c   : > { %v8643_v8 = vpop.f32.mrf.mxu0  ;;  %7000 = vmatmul.mubr.msk.bf16.gmra.mxu0 %vm621_vm2, %v1317_v25  ;;  %6897 = vmatprep.mubr.msk.bf16.mxu1 %vm7977_vm0, %v10360_v1  ;;  %v1047_v22 = vadd.f32 %v1046_v23, %v8432_v31 }
 0x14d   : > { %7003 = vmatprep.mubr.msk.bf16.mxu0 %vm7977_vm0, %v10360_v1  ;;  %v6799_v29 = vpop.f32.mrf.mxu1 }
 0x14e   : > { %v6741_v6 = vpop.f32.mrf.mxu0 }
 0x14f   : > { %v1049_v25 = vpop.f32.mrf.mxu1  ;;  %v1320_v6 = vrot.slane %v8250_v19, 1  ;;  %v6196_v19 = vcombine.low %v2296_v18, %v2297_v36  ;;  %v7884_v36 = vld [vmem:[%s8069_s7 + $0xd0] sm:$0xff]  }
 0x150   : > { %v8652_v34 = vpop.f32.mrf.mxu0 }
 0x151   : > { %v6800_v5 = vpop.f32.mrf.mxu1 }
 0x152   : > { %v6742_v47 = vpop.f32.mrf.mxu0 }
 0x153   : > { %v1054_v29 = vpop.f32.mrf.mxu1  ;;  %6898 = vmatmul.mubr.msk.bf16.gmra.mxu1 %vm621_vm2, %v7883_v28  ;;  %v1050_v47 = vadd.f32 %v1049_v25, %v8444_v37  ;;  %v1322_v37 = vrot.slane %v8287_v50, 1 }
 0x154   : > { %v1445_v40 = vpop.f32.mrf.mxu0  ;;  %7004 = vmatmul.mubr.msk.bf16.gmra.mxu0 %vm621_vm2, %v1319_v9  ;;  %6901 = vmatprep.mubr.msk.bf16.mxu1 %vm7977_vm0, %v10360_v1 }
 0x155   : > { %v8657_v63 = vadd.f32 %v1445_v40, %v1047_v22  ;;  %7007 = vmatprep.mubr.msk.bf16.mxu0 %vm7977_vm0, %v10360_v1  ;;  %v6803_v31 = vpop.f32.mrf.mxu1  ;;  %v1321_v22 = vsel %vm1268_vm3, %v1318_v24, %v1320_v6 }
 0x156   : > { %v6909_v54 = vpop.f32.mrf.mxu0  ;;  %v2495_v31 = vshll.u32 %v6196_v19, 16 }
 0x157   : > { %10372 = vst [vmem:[#allocation13_spill] sm:$0xff] %v8657_v63  ;;  %v1057_v23 = vpop.f32.mrf.mxu1  ;;  %v1055_v54 = vadd.f32 %v1054_v29, %v8449_v44 }
 0x158   : > { %v1448_v40 = vpop.f32.mrf.mxu0  ;;  %v1058_v44 = vadd.f32 %v1057_v23, %v8461_v51  ;;  %v7757_v51 = vld [vmem:[%s10356_s1 + $0x28] sm:$0xff]  }
 0x159   : > { %v8668_v5 = vadd.f32 %v1448_v40, %v1050_v47  ;;  %v6804_v28 = vpop.f32.mrf.mxu1  ;;  %v7760_v47 = vld [vmem:[%s8069_s7 + $0x14] sm:$0xff]  }
 0x15a   : > { %v6910_v9 = vpop.f32.mrf.mxu0 }
 0x15b   : > { %10373 = vst [vmem:[#allocation14_spill] sm:$0xff] %v8668_v5  ;;  %v1062_v24 = vpop.f32.mrf.mxu1  ;;  %6902 = vmatmul.mubr.msk.bf16.gmra.mxu1 %vm621_vm2, %v7884_v36  ;;  %v2497_v9 = vrot.slane %v2495_v31, 1  ;;  %v7756_v5 = vld [vmem:[%s8069_s7 + $0xc] sm:$0xff]   ;;  %v7763_v31 = vld [vmem:[%s8069_s7 + $0x1c] sm:$0xff]  }
 0x15c   : > { %v1453_v63 = vpop.f32.mrf.mxu0  ;;  %7008 = vmatmul.mubr.msk.bf16.gmra.mxu0 %vm621_vm2, %v1321_v22  ;;  %7017 = vmatprep.mubr.msk.bf16.mxu1 %vm7977_vm0, %v10360_v1  ;;  %v2493_v22 = vshrl.u32 %v6196_v19, 16  ;;  %v1063_v36 = vadd.f32 %v1062_v24, %v8466_v56 }
 0x15d   : > { %v8674_v25 = vadd.f32 %v1453_v63, %v1055_v54  ;;  %7011 = vmatprep.mubr.msk.bf16.mxu0 %vm7977_vm0, %v10360_v1  ;;  %v6807_v29 = vpop.f32.mrf.mxu1  ;;  %v1323_v63 = vsel %vm1268_vm3, %v1320_v6, %v1322_v37  ;;  %v2500_v54 = vshll.u32 %v7760_v47, 16 }
 0x15e   : > { %v6913_v18 = vpop.f32.mrf.mxu0  ;;  %v2498_v19 = vor.u32 %v2497_v9, %v2493_v22  ;;  %v2504_v22 = vshrl.u32 %v7760_v47, 16  ;;  %v2508_v9 = vshll.u32 %v7763_v31, 16  ;;  %v7765_v47 = vld [vmem:[%s8069_s7 + $0x24] sm:$0xff]  }
 0x15f   : > { %10374 = vst [vmem:[#allocation15_spill] sm:$0xff] %v8674_v25  ;;  %v1065_v28 = vpop.f32.mrf.mxu1  ;;  %v2502_v37 = vrot.slane %v2500_v54, 1 }
 0x160   : > { %v1456_v50 = vpop.f32.mrf.mxu0  ;;  %v1066_v24 = vadd.f32 %v1065_v28, %v8478_v61  ;;  %v7758_v28 = vld [vmem:[%s8069_s7 + $0x14] sm:$0xff]  }
 0x161   : > { %v8685_v40 = vadd.f32 %v1456_v50, %v1058_v44  ;;  %v6808_v23 = vpop.f32.mrf.mxu1 }
 0x162   : > { %v6914_v25 = vpop.f32.mrf.mxu0 }
 0x163   : > { %v1070_v25 = vpop.f32.mrf.mxu1  ;;  %7018 = vmatmul.mubr.msk.bf16.vlgmr.msra.gmra.mxu1 %vm621_vm2, %v7756_v5  ;;  %v7761_v5 = vld [vmem:[%s10356_s1 + $0x30] sm:$0xff]  }
 0x164   : > { %v1461_v18 = vpop.f32.mrf.mxu0  ;;  %7012 = vmatmul.mubr.msk.bf16.gmra.mxu0 %vm621_vm2, %v1323_v63  ;;  %7236 = vmatpush3.bf16.msra.mxu1 %v7757_v51  ;;  %v2503_v63 = vsel %vm394_vm1, %v2498_v19, %v2502_v37  ;;  %v2506_v19 = vor.u32 %v2504_v22, %v2502_v37  ;;  %v2516_v22 = vshll.u32 %v7765_v47, 16 }
 0x165   : > { %v8693_v6 = vadd.f32 %v1461_v18, %v1063_v36  ;;  %7127 = vmatprep.mubr.msk.bf16.mxu0 %vm7977_vm0, %v10360_v1  ;;  %7021 = vmatprep.mubr.msk.bf16.mxu1 %vm7977_vm0, %v10360_v1  ;;  %v6811_v44 = vpop.f32.mrf.mxu1  ;;  %v1071_v36 = vadd.f32 %v1070_v25, %v8483_v12 }
 0x166   : > { %v6917_v56 = vpop.f32.mrf.mxu0  ;;  %7455 = vmatprep.subr.bf16.mxu1 %v10360_v1 }
 0x167   : > { %v1073_v61 = vpop.f32.mrf.mxu1  ;;  %v2510_v56 = vrot.slane %v2508_v9, 1 }
 0x168   : > { %v1464_v29 = vpop.f32.mrf.mxu0  ;;  %v1074_v12 = vadd.f32 %v1073_v61, %v8494_v17 }
 0x169   : > { %v8703_v50 = vadd.f32 %v1464_v29, %v1066_v24  ;;  %v6812_v51 = vpop.f32.mrf.mxu1  ;;  %v2511_v37 = vsel %vm394_vm1, %v2506_v19, %v2510_v56  ;;  %v7767_v19 = vld [vmem:[%s8069_s7 + $0x2c] sm:$0xff]  }
 0x16a   : > { %v6918_v54 = vpop.f32.mrf.mxu0 }
 0x16b   : > { %v1078_v24 = vpop.f32.mrf.mxu1  ;;  %7022 = vmatmul.mubr.msk.bf16.gmra.mxu1 %vm621_vm2, %v7758_v28  ;;  %v7762_v28 = vld [vmem:[%s8069_s7 + $0x1c] sm:$0xff]  }
 0x16c   : > { %v1469_v23 = vpop.f32.mrf.mxu0  ;;  %7128 = vmatmul.mubr.msk.bf16.vlgmr.msra.gmra.mxu0 %vm621_vm2, %v2503_v63  ;;  %7025 = vmatprep.mubr.msk.bf16.mxu1 %vm7977_vm0, %v10360_v1 }
 0x16d   : > { %v8712_v18 = vadd.f32 %v1469_v23, %v1071_v36  ;;  %7346 = vmatpush3.bf16.msra.mxu0 %v7761_v5  ;;  %7131 = vmatprep.mubr.msk.bf16.mxu0 %vm7977_vm0, %v10360_v1  ;;  %v6815_v25 = vpop.f32.mrf.mxu1  ;;  %v2512_v5 = vshrl.u32 %v7763_v31, 16  ;;  %v1079_v36 = vadd.f32 %v1078_v24, %v8499_v15 }
 0x16e   : > { %v6921_v44 = vpop.f32.mrf.mxu0  ;;  %7565 = vmatprep.subr.bf16.mxu0 %v10360_v1 }
 0x16f   : > { %v1081_v9 = vpop.f32.mrf.mxu1  ;;  %v2514_v61 = vor.u32 %v2512_v5, %v2510_v56  ;;  %v2518_v44 = vrot.slane %v2516_v22, 1  ;;  %v2520_v56 = vshrl.u32 %v7765_v47, 16  ;;  %v2524_v5 = vshll.u32 %v7767_v19, 16 }
 0x170   : > { %v1472_v29 = vpop.f32.mrf.mxu0  ;;  %v1082_v25 = vadd.f32 %v1081_v9, %v8510_v32 }
 0x171   : > { %v8722_v63 = vadd.f32 %v1472_v29, %v1074_v12  ;;  %v6816_v51 = vpop.f32.mrf.mxu1  ;;  %v2522_v9 = vor.u32 %v2520_v56, %v2518_v44 }
 0x172   : > { %v6922_v54 = vpop.f32.mrf.mxu0 }
 0x173   : > { %v1086_v31 = vpop.f32.mrf.mxu1  ;;  %7026 = vmatmul.mubr.msk.bf16.gmra.mxu1 %vm621_vm2, %v7762_v28 }
 0x174   : > { %v1477_v23 = vpop.f32.mrf.mxu0  ;;  %7132 = vmatmul.mubr.msk.bf16.gmra.mxu0 %vm621_vm2, %v2511_v37  ;;  %7029 = vmatprep.mubr.msk.bf16.mxu1 %vm7977_vm0, %v10360_v1  ;;  %v2519_v37 = vsel %vm394_vm1, %v2514_v61, %v2518_v44  ;;  %v1087_v28 = vadd.f32 %v1086_v31, %v8515_v27  ;;  %v7769_v61 = vld [vmem:[%s8069_s7 + $0x34] sm:$0xff]   ;;  %v2528_v44 = vshrl.u32 %v7767_v19, 16 }
 0x175   : > { %v8728_v17 = vadd.f32 %v1477_v23, %v1079_v36  ;;  %7135 = vmatprep.mubr.msk.bf16.mxu0 %vm7977_vm0, %v10360_v1  ;;  %v6819_v15 = vpop.f32.mrf.mxu1  ;;  %v7764_v36 = vld [vmem:[%s8069_s7 + $0x24] sm:$0xff]   ;;  %v2532_v56 = vshll.u32 %v7769_v61, 16 }
 0x176   : > { %v6925_v12 = vpop.f32.mrf.mxu0 }
 0x177   : > { %v1089_v22 = vpop.f32.mrf.mxu1  ;;  %v2526_v12 = vrot.slane %v2524_v5, 1 }
 0x178   : > { %v1480_v24 = vpop.f32.mrf.mxu0  ;;  %v1090_v15 = vadd.f32 %v1089_v22, %v8526_v30 }
 0x179   : > { %v8737_v29 = vadd.f32 %v1480_v24, %v1082_v25  ;;  %v6820_v51 = vpop.f32.mrf.mxu1  ;;  %v2530_v22 = vor.u32 %v2528_v44, %v2526_v12 }
 0x17a   : > { %v6926_v54 = vpop.f32.mrf.mxu0 }
 0x17b   : > { %v1094_v47 = vpop.f32.mrf.mxu1  ;;  %7030 = vmatmul.mubr.msk.bf16.gmra.mxu1 %vm621_vm2, %v7764_v36 }
 0x17c   : > { %v1485_v23 = vpop.f32.mrf.mxu0  ;;  %7136 = vmatmul.mubr.msk.bf16.gmra.mxu0 %vm621_vm2, %v2519_v37  ;;  %7033 = vmatprep.mubr.msk.bf16.mxu1 %vm7977_vm0, %v10360_v1  ;;  %v2527_v37 = vsel %vm394_vm1, %v2522_v9, %v2526_v12  ;;  %v1095_v36 = vadd.f32 %v1094_v47, %v8531_v38  ;;  %v7771_v9 = vld [vmem:[%s8069_s7 + $0x3c] sm:$0xff]   ;;  %v2536_v12 = vshrl.u32 %v7769_v61, 16 }
 0x17d   : > { %v8743_v32 = vadd.f32 %v1485_v23, %v1087_v28  ;;  %7139 = vmatprep.mubr.msk.bf16.mxu0 %vm7977_vm0, %v10360_v1  ;;  %v6823_v27 = vpop.f32.mrf.mxu1  ;;  %v7766_v28 = vld [vmem:[%s8069_s7 + $0x2c] sm:$0xff]   ;;  %v2540_v44 = vshll.u32 %v7771_v9, 16 }
 0x17e   : > { %v6929_v25 = vpop.f32.mrf.mxu0 }
 0x17f   : > { %v1097_v5 = vpop.f32.mrf.mxu1  ;;  %v2534_v25 = vrot.slane %v2532_v56, 1 }
 0x180   : > { %v1488_v31 = vpop.f32.mrf.mxu0  ;;  %v1098_v27 = vadd.f32 %v1097_v5, %v8542_v52 }
 0x181   : > { %v8752_v24 = vadd.f32 %v1488_v31, %v1090_v15  ;;  %v6824_v51 = vpop.f32.mrf.mxu1  ;;  %v2538_v5 = vor.u32 %v2536_v12, %v2534_v25 }
 0x182   : > { %v6930_v54 = vpop.f32.mrf.mxu0 }
 0x183   : > { %v1102_v19 = vpop.f32.mrf.mxu1  ;;  %7034 = vmatmul.mubr.msk.bf16.gmra.mxu1 %vm621_vm2, %v7766_v28 }
 0x184   : > { %v1493_v23 = vpop.f32.mrf.mxu0  ;;  %7140 = vmatmul.mubr.msk.bf16.gmra.mxu0 %vm621_vm2, %v2527_v37  ;;  %7037 = vmatprep.mubr.msk.bf16.mxu1 %vm7977_vm0, %v10360_v1  ;;  %v2535_v37 = vsel %vm394_vm1, %v2530_v22, %v2534_v25  ;;  %v1103_v28 = vadd.f32 %v1102_v19, %v8547_v59  ;;  %v7773_v22 = vld [vmem:[%s8069_s7 + $0x44] sm:$0xff]   ;;  %v2544_v25 = vshrl.u32 %v7771_v9, 16 }
 0x185   : > { %v8758_v30 = vadd.f32 %v1493_v23, %v1095_v36  ;;  %7143 = vmatprep.mubr.msk.bf16.mxu0 %vm7977_vm0, %v10360_v1  ;;  %v6827_v38 = vpop.f32.mrf.mxu1  ;;  %v7768_v36 = vld [vmem:[%s8069_s7 + $0x34] sm:$0xff]   ;;  %v2548_v12 = vshll.u32 %v7773_v22, 16 }
 0x186   : > { %v6933_v15 = vpop.f32.mrf.mxu0 }
 0x187   : > { %v1105_v56 = vpop.f32.mrf.mxu1  ;;  %v2542_v15 = vrot.slane %v2540_v44, 1 }
 0x188   : > { %v1496_v47 = vpop.f32.mrf.mxu0  ;;  %v1106_v38 = vadd.f32 %v1105_v56, %v8558_v13 }
 0x189   : > { %v8767_v31 = vadd.f32 %v1496_v47, %v1098_v27  ;;  %v6828_v51 = vpop.f32.mrf.mxu1  ;;  %v2546_v56 = vor.u32 %v2544_v25, %v2542_v15 }
 0x18a   : > { %v6934_v54 = vpop.f32.mrf.mxu0 }
 0x18b   : > { %v1110_v61 = vpop.f32.mrf.mxu1  ;;  %7038 = vmatmul.mubr.msk.bf16.gmra.mxu1 %vm621_vm2, %v7768_v36 }
 0x18c   : > { %v1501_v23 = vpop.f32.mrf.mxu0  ;;  %7144 = vmatmul.mubr.msk.bf16.gmra.mxu0 %vm621_vm2, %v2535_v37  ;;  %7041 = vmatprep.mubr.msk.bf16.mxu1 %vm7977_vm0, %v10360_v1  ;;  %v2543_v37 = vsel %vm394_vm1, %v2538_v5, %v2542_v15  ;;  %v1111_v36 = vadd.f32 %v1110_v61, %v8563_v4  ;;  %v7775_v5 = vld [vmem:[%s8069_s7 + $0x4c] sm:$0xff]   ;;  %v2552_v15 = vshrl.u32 %v7773_v22, 16 }
 0x18d   : > { %v8773_v52 = vadd.f32 %v1501_v23, %v1103_v28  ;;  %7147 = vmatprep.mubr.msk.bf16.mxu0 %vm7977_vm0, %v10360_v1  ;;  %v6831_v59 = vpop.f32.mrf.mxu1  ;;  %v7770_v28 = vld [vmem:[%s8069_s7 + $0x3c] sm:$0xff]   ;;  %v2556_v25 = vshll.u32 %v7775_v5, 16 }
 0x18e   : > { %v6937_v27 = vpop.f32.mrf.mxu0 }
 0x18f   : > { %v1113_v44 = vpop.f32.mrf.mxu1  ;;  %v2550_v27 = vrot.slane %v2548_v12, 1 }
 0x190   : > { %v1504_v19 = vpop.f32.mrf.mxu0  ;;  %v1114_v59 = vadd.f32 %v1113_v44, %v8574_v26 }
 0x191   : > { %v8782_v47 = vadd.f32 %v1504_v19, %v1106_v38  ;;  %v6832_v51 = vpop.f32.mrf.mxu1  ;;  %v2554_v44 = vor.u32 %v2552_v15, %v2550_v27 }
 0x192   : > { %v6938_v54 = vpop.f32.mrf.mxu0 }
 0x193   : > { %v1118_v9 = vpop.f32.mrf.mxu1  ;;  %7042 = vmatmul.mubr.msk.bf16.gmra.mxu1 %vm621_vm2, %v7770_v28 }
 0x194   : > { %v1509_v23 = vpop.f32.mrf.mxu0  ;;  %7148 = vmatmul.mubr.msk.bf16.gmra.mxu0 %vm621_vm2, %v2543_v37  ;;  %7045 = vmatprep.mubr.msk.bf16.mxu1 %vm7977_vm0, %v10360_v1  ;;  %v2551_v37 = vsel %vm394_vm1, %v2546_v56, %v2550_v27  ;;  %v1119_v28 = vadd.f32 %v1118_v9, %v8579_v7  ;;  %v7777_v56 = vld [vmem:[%s8069_s7 + $0x54] sm:$0xff]   ;;  %v2560_v27 = vshrl.u32 %v7775_v5, 16 }
 0x195   : > { %v8788_v13 = vadd.f32 %v1509_v23, %v1111_v36  ;;  %7151 = vmatprep.mubr.msk.bf16.mxu0 %vm7977_vm0, %v10360_v1  ;;  %v6835_v4 = vpop.f32.mrf.mxu1  ;;  %v7772_v36 = vld [vmem:[%s8069_s7 + $0x44] sm:$0xff]   ;;  %v2564_v15 = vshll.u32 %v7777_v56, 16 }
 0x196   : > { %v6941_v38 = vpop.f32.mrf.mxu0 }
 0x197   : > { %v1121_v12 = vpop.f32.mrf.mxu1  ;;  %v2558_v38 = vrot.slane %v2556_v25, 1 }
 0x198   : > { %v1512_v61 = vpop.f32.mrf.mxu0  ;;  %v1122_v4 = vadd.f32 %v1121_v12, %v8590_v46 }
 0x199   : > { %v8797_v19 = vadd.f32 %v1512_v61, %v1114_v59  ;;  %v6836_v51 = vpop.f32.mrf.mxu1  ;;  %v2562_v12 = vor.u32 %v2560_v27, %v2558_v38 }
 0x19a   : > { %v6942_v54 = vpop.f32.mrf.mxu0 }
 0x19b   : > { %v1126_v22 = vpop.f32.mrf.mxu1  ;;  %7046 = vmatmul.mubr.msk.bf16.gmra.mxu1 %vm621_vm2, %v7772_v36 }
 0x19c   : > { %v1517_v23 = vpop.f32.mrf.mxu0  ;;  %7152 = vmatmul.mubr.msk.bf16.gmra.mxu0 %vm621_vm2, %v2551_v37  ;;  %7049 = vmatprep.mubr.msk.bf16.mxu1 %vm7977_vm0, %v10360_v1  ;;  %v2559_v37 = vsel %vm394_vm1, %v2554_v44, %v2558_v38  ;;  %v1127_v36 = vadd.f32 %v1126_v22, %v8595_v60  ;;  %v7779_v44 = vld [vmem:[%s8069_s7 + $0x5c] sm:$0xff]   ;;  %v2568_v38 = vshrl.u32 %v7777_v56, 16 }
 0x19d   : > { %v8803_v26 = vadd.f32 %v1517_v23, %v1119_v28  ;;  %7155 = vmatprep.mubr.msk.bf16.mxu0 %vm7977_vm0, %v10360_v1  ;;  %v6839_v7 = vpop.f32.mrf.mxu1  ;;  %v7774_v28 = vld [vmem:[%s8069_s7 + $0x4c] sm:$0xff]   ;;  %v2572_v27 = vshll.u32 %v7779_v44, 16 }
 0x19e   : > { %v6945_v59 = vpop.f32.mrf.mxu0 }
 0x19f   : > { %v1129_v25 = vpop.f32.mrf.mxu1  ;;  %v2566_v59 = vrot.slane %v2564_v15, 1 }
 0x1a0   : > { %v1520_v9 = vpop.f32.mrf.mxu0  ;;  %v1130_v7 = vadd.f32 %v1129_v25, %v8606_v21 }
 0x1a1   : > { %v8812_v61 = vadd.f32 %v1520_v9, %v1122_v4  ;;  %v6840_v51 = vpop.f32.mrf.mxu1  ;;  %v2570_v25 = vor.u32 %v2568_v38, %v2566_v59 }
 0x1a2   : > { %v6946_v54 = vpop.f32.mrf.mxu0 }
 0x1a3   : > { %v1134_v5 = vpop.f32.mrf.mxu1  ;;  %7050 = vmatmul.mubr.msk.bf16.gmra.mxu1 %vm621_vm2, %v7774_v28 }
 0x1a4   : > { %v1525_v23 = vpop.f32.mrf.mxu0  ;;  %7156 = vmatmul.mubr.msk.bf16.gmra.mxu0 %vm621_vm2, %v2559_v37  ;;  %7053 = vmatprep.mubr.msk.bf16.mxu1 %vm7977_vm0, %v10360_v1  ;;  %v2567_v37 = vsel %vm394_vm1, %v2562_v12, %v2566_v59  ;;  %v1135_v28 = vadd.f32 %v1134_v5, %v8611_v48  ;;  %v7781_v12 = vld [vmem:[%s8069_s7 + $0x64] sm:$0xff]   ;;  %v2576_v59 = vshrl.u32 %v7779_v44, 16 }
 0x1a5   : > { %v8818_v46 = vadd.f32 %v1525_v23, %v1127_v36  ;;  %7159 = vmatprep.mubr.msk.bf16.mxu0 %vm7977_vm0, %v10360_v1  ;;  %v6843_v60 = vpop.f32.mrf.mxu1  ;;  %v7776_v36 = vld [vmem:[%s8069_s7 + $0x54] sm:$0xff]   ;;  %v2580_v38 = vshll.u32 %v7781_v12, 16 }
 0x1a6   : > { %v6949_v4 = vpop.f32.mrf.mxu0 }
 0x1a7   : > { %v1137_v15 = vpop.f32.mrf.mxu1  ;;  %v2574_v4 = vrot.slane %v2572_v27, 1 }
 0x1a8   : > { %v1528_v22 = vpop.f32.mrf.mxu0  ;;  %v1138_v60 = vadd.f32 %v1137_v15, %v8622_v43 }
 0x1a9   : > { %v8827_v9 = vadd.f32 %v1528_v22, %v1130_v7  ;;  %v6844_v51 = vpop.f32.mrf.mxu1  ;;  %v2578_v15 = vor.u32 %v2576_v59, %v2574_v4 }
 0x1aa   : > { %v6950_v54 = vpop.f32.mrf.mxu0 }
 0x1ab   : > { %v1142_v56 = vpop.f32.mrf.mxu1  ;;  %7054 = vmatmul.mubr.msk.bf16.gmra.mxu1 %vm621_vm2, %v7776_v36 }
 0x1ac   : > { %v1533_v23 = vpop.f32.mrf.mxu0  ;;  %7160 = vmatmul.mubr.msk.bf16.gmra.mxu0 %vm621_vm2, %v2567_v37  ;;  %7057 = vmatprep.mubr.msk.bf16.mxu1 %vm7977_vm0, %v10360_v1  ;;  %v2575_v37 = vsel %vm394_vm1, %v2570_v25, %v2574_v4  ;;  %v1143_v36 = vadd.f32 %v1142_v56, %v8627_v14  ;;  %v7783_v25 = vld [vmem:[%s8069_s7 + $0x6c] sm:$0xff]   ;;  %v2584_v4 = vshrl.u32 %v7781_v12, 16 }
 0x1ad   : > { %v8833_v21 = vadd.f32 %v1533_v23, %v1135_v28  ;;  %7163 = vmatprep.mubr.msk.bf16.mxu0 %vm7977_vm0, %v10360_v1  ;;  %v6847_v48 = vpop.f32.mrf.mxu1  ;;  %v7778_v28 = vld [vmem:[%s8069_s7 + $0x5c] sm:$0xff]   ;;  %v2588_v59 = vshll.u32 %v7783_v25, 16 }
 0x1ae   : > { %v6953_v7 = vpop.f32.mrf.mxu0 }
 0x1af   : > { %v1145_v27 = vpop.f32.mrf.mxu1  ;;  %v2582_v7 = vrot.slane %v2580_v38, 1 }
 0x1b0   : > { %v1536_v5 = vpop.f32.mrf.mxu0  ;;  %v1146_v48 = vadd.f32 %v1145_v27, %v8638_v41 }
 0x1b1   : > { %v8842_v22 = vadd.f32 %v1536_v5, %v1138_v60  ;;  %v6848_v51 = vpop.f32.mrf.mxu1  ;;  %v2586_v27 = vor.u32 %v2584_v4, %v2582_v7 }
 0x1b2   : > { %v6954_v54 = vpop.f32.mrf.mxu0 }
 0x1b3   : > { %v1150_v44 = vpop.f32.mrf.mxu1  ;;  %7058 = vmatmul.mubr.msk.bf16.gmra.mxu1 %vm621_vm2, %v7778_v28 }
 0x1b4   : > { %v1541_v23 = vpop.f32.mrf.mxu0  ;;  %7164 = vmatmul.mubr.msk.bf16.gmra.mxu0 %vm621_vm2, %v2575_v37  ;;  %7061 = vmatprep.mubr.msk.bf16.mxu1 %vm7977_vm0, %v10360_v1  ;;  %v2583_v37 = vsel %vm394_vm1, %v2578_v15, %v2582_v7  ;;  %v1151_v28 = vadd.f32 %v1150_v44, %v8643_v8  ;;  %v7785_v15 = vld [vmem:[%s8069_s7 + $0x74] sm:$0xff]   ;;  %v2592_v7 = vshrl.u32 %v7783_v25, 16 }
 0x1b5   : > { %v8848_v43 = vadd.f32 %v1541_v23, %v1143_v36  ;;  %7167 = vmatprep.mubr.msk.bf16.mxu0 %vm7977_vm0, %v10360_v1  ;;  %v6851_v14 = vpop.f32.mrf.mxu1  ;;  %v7780_v36 = vld [vmem:[%s8069_s7 + $0x64] sm:$0xff]   ;;  %v2596_v4 = vshll.u32 %v7785_v15, 16 }
 0x1b6   : > { %v6957_v60 = vpop.f32.mrf.mxu0 }
 0x1b7   : > { %v1153_v38 = vpop.f32.mrf.mxu1  ;;  %v2590_v60 = vrot.slane %v2588_v59, 1 }
 0x1b8   : > { %v1544_v56 = vpop.f32.mrf.mxu0  ;;  %v1154_v14 = vadd.f32 %v1153_v38, %v8652_v34 }
 0x1b9   : > { %v8857_v5 = vadd.f32 %v1544_v56, %v1146_v48  ;;  %v6852_v51 = vpop.f32.mrf.mxu1  ;;  %v2594_v38 = vor.u32 %v2592_v7, %v2590_v60 }
 0x1ba   : > { %v6958_v54 = vpop.f32.mrf.mxu0 }
 0x1bb   : > { %v1158_v12 = vpop.f32.mrf.mxu1  ;;  %7062 = vmatmul.mubr.msk.bf16.gmra.mxu1 %vm621_vm2, %v7780_v36 }
 0x1bc   : > { %v1549_v23 = vpop.f32.mrf.mxu0  ;;  %7168 = vmatmul.mubr.msk.bf16.gmra.mxu0 %vm621_vm2, %v2583_v37  ;;  %7065 = vmatprep.mubr.msk.bf16.mxu1 %vm7977_vm0, %v10360_v1  ;;  %v2591_v37 = vsel %vm394_vm1, %v2586_v27, %v2590_v60  ;;  %v1159_v36 = vadd.f32 %v1158_v12, %v8438_v35  ;;  %v7787_v27 = vld [vmem:[%s8069_s7 + $0x7c] sm:$0xff]   ;;  %v2600_v60 = vshrl.u32 %v7785_v15, 16 }
 0x1bd   : > { %v8863_v41 = vadd.f32 %v1549_v23, %v1151_v28  ;;  %7171 = vmatprep.mubr.msk.bf16.mxu0 %vm7977_vm0, %v10360_v1  ;;  %v6855_v8 = vpop.f32.mrf.mxu1  ;;  %v7782_v28 = vld [vmem:[%s8069_s7 + $0x6c] sm:$0xff]   ;;  %v2604_v7 = vshll.u32 %v7787_v27, 16 }
 0x1be   : > { %v6961_v48 = vpop.f32.mrf.mxu0 }
 0x1bf   : > { %v1161_v59 = vpop.f32.mrf.mxu1  ;;  %v2598_v48 = vrot.slane %v2596_v4, 1 }
 0x1c0   : > { %v1552_v44 = vpop.f32.mrf.mxu0  ;;  %v1162_v8 = vadd.f32 %v1161_v59, %v8447_v39 }
 0x1c1   : > { %v8872_v56 = vadd.f32 %v1552_v44, %v1154_v14  ;;  %v6856_v51 = vpop.f32.mrf.mxu1  ;;  %v2602_v59 = vor.u32 %v2600_v60, %v2598_v48 }
 0x1c2   : > { %v6962_v54 = vpop.f32.mrf.mxu0 }
 0x1c3   : > { %v1166_v25 = vpop.f32.mrf.mxu1  ;;  %7066 = vmatmul.mubr.msk.bf16.gmra.mxu1 %vm621_vm2, %v7782_v28 }
 0x1c4   : > { %v1557_v23 = vpop.f32.mrf.mxu0  ;;  %7172 = vmatmul.mubr.msk.bf16.gmra.mxu0 %vm621_vm2, %v2591_v37  ;;  %7069 = vmatprep.mubr.msk.bf16.mxu1 %vm7977_vm0, %v10360_v1  ;;  %v2599_v37 = vsel %vm394_vm1, %v2594_v38, %v2598_v48  ;;  %v1167_v28 = vadd.f32 %v1166_v25, %v8455_v45  ;;  %v7789_v38 = vld [vmem:[%s8069_s7 + $0x84] sm:$0xff]   ;;  %v2608_v48 = vshrl.u32 %v7787_v27, 16 }
 0x1c5   : > { %v8878_v34 = vadd.f32 %v1557_v23, %v1159_v36  ;;  %7175 = vmatprep.mubr.msk.bf16.mxu0 %vm7977_vm0, %v10360_v1  ;;  %v6859_v35 = vpop.f32.mrf.mxu1  ;;  %v7784_v36 = vld [vmem:[%s8069_s7 + $0x74] sm:$0xff]   ;;  %v2612_v60 = vshll.u32 %v7789_v38, 16 }
 0x1c6   : > { %v6965_v14 = vpop.f32.mrf.mxu0 }
 0x1c7   : > { %v1169_v4 = vpop.f32.mrf.mxu1  ;;  %v2606_v14 = vrot.slane %v2604_v7, 1 }
 0x1c8   : > { %v1560_v12 = vpop.f32.mrf.mxu0  ;;  %v1170_v35 = vadd.f32 %v1169_v4, %v8464_v53 }
 0x1c9   : > { %v8887_v44 = vadd.f32 %v1560_v12, %v1162_v8  ;;  %v6860_v51 = vpop.f32.mrf.mxu1  ;;  %v2610_v4 = vor.u32 %v2608_v48, %v2606_v14 }
 0x1ca   : > { %v6966_v54 = vpop.f32.mrf.mxu0 }
 0x1cb   : > { %v1174_v15 = vpop.f32.mrf.mxu1  ;;  %7070 = vmatmul.mubr.msk.bf16.gmra.mxu1 %vm621_vm2, %v7784_v36 }
 0x1cc   : > { %v1565_v23 = vpop.f32.mrf.mxu0  ;;  %7176 = vmatmul.mubr.msk.bf16.gmra.mxu0 %vm621_vm2, %v2599_v37  ;;  %7073 = vmatprep.mubr.msk.bf16.mxu1 %vm7977_vm0, %v10360_v1  ;;  %v2607_v37 = vsel %vm394_vm1, %v2602_v59, %v2606_v14  ;;  %v1175_v36 = vadd.f32 %v1174_v15, %v8472_v57  ;;  %v7791_v59 = vld [vmem:[%s8069_s7 + $0x8c] sm:$0xff]   ;;  %v2616_v14 = vshrl.u32 %v7789_v38, 16 }
 0x1cd   : > { %v8893_v39 = vadd.f32 %v1565_v23, %v1167_v28  ;;  %7179 = vmatprep.mubr.msk.bf16.mxu0 %vm7977_vm0, %v10360_v1  ;;  %v6863_v45 = vpop.f32.mrf.mxu1  ;;  %v7786_v28 = vld [vmem:[%s8069_s7 + $0x7c] sm:$0xff]   ;;  %v2620_v48 = vshll.u32 %v7791_v59, 16 }
 0x1ce   : > { %v6969_v8 = vpop.f32.mrf.mxu0 }
 0x1cf   : > { %v1177_v7 = vpop.f32.mrf.mxu1  ;;  %v2614_v8 = vrot.slane %v2612_v60, 1 }
 0x1d0   : > { %v1568_v25 = vpop.f32.mrf.mxu0  ;;  %v1178_v45 = vadd.f32 %v1177_v7, %v8481_v0 }
 0x1d1   : > { %v8902_v12 = vadd.f32 %v1568_v25, %v1170_v35  ;;  %v6864_v51 = vpop.f32.mrf.mxu1  ;;  %v2618_v7 = vor.u32 %v2616_v14, %v2614_v8 }
 0x1d2   : > { %v6970_v54 = vpop.f32.mrf.mxu0 }
 0x1d3   : > { %v1182_v27 = vpop.f32.mrf.mxu1  ;;  %7074 = vmatmul.mubr.msk.bf16.gmra.mxu1 %vm621_vm2, %v7786_v28 }
 0x1d4   : > { %v1573_v23 = vpop.f32.mrf.mxu0  ;;  %7180 = vmatmul.mubr.msk.bf16.gmra.mxu0 %vm621_vm2, %v2607_v37  ;;  %7077 = vmatprep.mubr.msk.bf16.mxu1 %vm7977_vm0, %v10360_v1  ;;  %v2615_v37 = vsel %vm394_vm1, %v2610_v4, %v2614_v8  ;;  %v1183_v28 = vadd.f32 %v1182_v27, %v8489_v16  ;;  %v7793_v4 = vld [vmem:[%s8069_s7 + $0x94] sm:$0xff]   ;;  %v2624_v8 = vshrl.u32 %v7791_v59, 16 }
 0x1d5   : > { %v8908_v53 = vadd.f32 %v1573_v23, %v1175_v36  ;;  %7183 = vmatprep.mubr.msk.bf16.mxu0 %vm7977_vm0, %v10360_v1  ;;  %v6867_v57 = vpop.f32.mrf.mxu1  ;;  %v7788_v36 = vld [vmem:[%s8069_s7 + $0x84] sm:$0xff]   ;;  %v2628_v14 = vshll.u32 %v7793_v4, 16 }
 0x1d6   : > { %v6973_v35 = vpop.f32.mrf.mxu0 }
 0x1d7   : > { %v1185_v60 = vpop.f32.mrf.mxu1  ;;  %v2622_v35 = vrot.slane %v2620_v48, 1 }
 0x1d8   : > { %v1576_v15 = vpop.f32.mrf.mxu0  ;;  %v1186_v57 = vadd.f32 %v1185_v60, %v8497_v3 }
 0x1d9   : > { %v8917_v25 = vadd.f32 %v1576_v15, %v1178_v45  ;;  %v6868_v51 = vpop.f32.mrf.mxu1  ;;  %v2626_v60 = vor.u32 %v2624_v8, %v2622_v35 }
 0x1da   : > { %v6974_v54 = vpop.f32.mrf.mxu0 }
 0x1db   : > { %v1190_v38 = vpop.f32.mrf.mxu1  ;;  %7078 = vmatmul.mubr.msk.bf16.gmra.mxu1 %vm621_vm2, %v7788_v36 }
 0x1dc   : > { %v1581_v23 = vpop.f32.mrf.mxu0  ;;  %7184 = vmatmul.mubr.msk.bf16.gmra.mxu0 %vm621_vm2, %v2615_v37  ;;  %7081 = vmatprep.mubr.msk.bf16.mxu1 %vm7977_vm0, %v10360_v1  ;;  %v2623_v37 = vsel %vm394_vm1, %v2618_v7, %v2622_v35  ;;  %v1191_v36 = vadd.f32 %v1190_v38, %v8505_v20  ;;  %v7795_v7 = vld [vmem:[%s8069_s7 + $0x9c] sm:$0xff]   ;;  %v2632_v35 = vshrl.u32 %v7793_v4, 16 }
 0x1dd   : > { %v8923_v0 = vadd.f32 %v1581_v23, %v1183_v28  ;;  %7187 = vmatprep.mubr.msk.bf16.mxu0 %vm7977_vm0, %v10360_v1  ;;  %v6871_v16 = vpop.f32.mrf.mxu1  ;;  %v7790_v28 = vld [vmem:[%s8069_s7 + $0x8c] sm:$0xff]   ;;  %v2636_v8 = vshll.u32 %v7795_v7, 16 }
 0x1de   : > { %v6977_v45 = vpop.f32.mrf.mxu0 }
 0x1df   : > { %v1193_v48 = vpop.f32.mrf.mxu1  ;;  %v2630_v45 = vrot.slane %v2628_v14, 1 }
 0x1e0   : > { %v1584_v27 = vpop.f32.mrf.mxu0  ;;  %v1194_v16 = vadd.f32 %v1193_v48, %v8513_v42 }
 0x1e1   : > { %v8932_v15 = vadd.f32 %v1584_v27, %v1186_v57  ;;  %v6872_v51 = vpop.f32.mrf.mxu1  ;;  %v2634_v48 = vor.u32 %v2632_v35, %v2630_v45 }
 0x1e2   : > { %v6978_v54 = vpop.f32.mrf.mxu0 }
 0x1e3   : > { %v1198_v59 = vpop.f32.mrf.mxu1  ;;  %7082 = vmatmul.mubr.msk.bf16.gmra.mxu1 %vm621_vm2, %v7790_v28 }
 0x1e4   : > { %v1589_v23 = vpop.f32.mrf.mxu0  ;;  %7188 = vmatmul.mubr.msk.bf16.gmra.mxu0 %vm621_vm2, %v2623_v37  ;;  %7085 = vmatprep.mubr.msk.bf16.mxu1 %vm7977_vm0, %v10360_v1  ;;  %v2631_v37 = vsel %vm394_vm1, %v2626_v60, %v2630_v45  ;;  %v1199_v28 = vadd.f32 %v1198_v59, %v8521_v62  ;;  %v7797_v60 = vld [vmem:[%s8069_s7 + $0xa4] sm:$0xff]   ;;  %v2640_v45 = vshrl.u32 %v7795_v7, 16 }
 0x1e5   : > { %v8938_v3 = vadd.f32 %v1589_v23, %v1191_v36  ;;  %7191 = vmatprep.mubr.msk.bf16.mxu0 %vm7977_vm0, %v10360_v1  ;;  %v6875_v20 = vpop.f32.mrf.mxu1  ;;  %v7792_v36 = vld [vmem:[%s8069_s7 + $0x94] sm:$0xff]   ;;  %v2644_v35 = vshll.u32 %v7797_v60, 16 }
 0x1e6   : > { %v6981_v57 = vpop.f32.mrf.mxu0 }
 0x1e7   : > { %v1201_v14 = vpop.f32.mrf.mxu1  ;;  %v2638_v57 = vrot.slane %v2636_v8, 1 }
 0x1e8   : > { %v1592_v38 = vpop.f32.mrf.mxu0  ;;  %v1202_v20 = vadd.f32 %v1201_v14, %v8529_v33 }
 0x1e9   : > { %v8947_v27 = vadd.f32 %v1592_v38, %v1194_v16  ;;  %v6876_v51 = vpop.f32.mrf.mxu1  ;;  %v2642_v14 = vor.u32 %v2640_v45, %v2638_v57 }
 0x1ea   : > { %v6982_v54 = vpop.f32.mrf.mxu0 }
 0x1eb   : > { %v1206_v4 = vpop.f32.mrf.mxu1  ;;  %7086 = vmatmul.mubr.msk.bf16.gmra.mxu1 %vm621_vm2, %v7792_v36 }
 0x1ec   : > { %v1597_v23 = vpop.f32.mrf.mxu0  ;;  %7192 = vmatmul.mubr.msk.bf16.gmra.mxu0 %vm621_vm2, %v2631_v37  ;;  %7089 = vmatprep.mubr.msk.bf16.mxu1 %vm7977_vm0, %v10360_v1  ;;  %v2639_v37 = vsel %vm394_vm1, %v2634_v48, %v2638_v57  ;;  %v1207_v36 = vadd.f32 %v1206_v4, %v8537_v49  ;;  %v7799_v48 = vld [vmem:[%s8069_s7 + $0xac] sm:$0xff]   ;;  %v2648_v57 = vshrl.u32 %v7797_v60, 16 }
 0x1ed   : > { %v8953_v42 = vadd.f32 %v1597_v23, %v1199_v28  ;;  %7195 = vmatprep.mubr.msk.bf16.mxu0 %vm7977_vm0, %v10360_v1  ;;  %v6879_v62 = vpop.f32.mrf.mxu1  ;;  %v7794_v28 = vld [vmem:[%s8069_s7 + $0x9c] sm:$0xff]   ;;  %v2652_v45 = vshll.u32 %v7799_v48, 16 }
 0x1ee   : > { %v6985_v16 = vpop.f32.mrf.mxu0 }
 0x1ef   : > { %v1209_v8 = vpop.f32.mrf.mxu1  ;;  %v2646_v16 = vrot.slane %v2644_v35, 1 }
 0x1f0   : > { %v1600_v59 = vpop.f32.mrf.mxu0  ;;  %v1210_v62 = vadd.f32 %v1209_v8, %v8545_v55 }
 0x1f1   : > { %v8962_v38 = vadd.f32 %v1600_v59, %v1202_v20  ;;  %v6880_v51 = vpop.f32.mrf.mxu1  ;;  %v2650_v8 = vor.u32 %v2648_v57, %v2646_v16 }
 0x1f2   : > { %v6986_v54 = vpop.f32.mrf.mxu0 }
 0x1f3   : > { %v1214_v7 = vpop.f32.mrf.mxu1  ;;  %7090 = vmatmul.mubr.msk.bf16.gmra.mxu1 %vm621_vm2, %v7794_v28 }
 0x1f4   : > { %v1605_v23 = vpop.f32.mrf.mxu0  ;;  %7196 = vmatmul.mubr.msk.bf16.gmra.mxu0 %vm621_vm2, %v2639_v37  ;;  %7093 = vmatprep.mubr.msk.bf16.mxu1 %vm7977_vm0, %v10360_v1  ;;  %v2647_v37 = vsel %vm394_vm1, %v2642_v14, %v2646_v16  ;;  %v1215_v28 = vadd.f32 %v1214_v7, %v8553_v2  ;;  %v7801_v14 = vld [vmem:[%s8069_s7 + $0xb4] sm:$0xff]   ;;  %v2656_v16 = vshrl.u32 %v7799_v48, 16 }
 0x1f5   : > { %v8968_v33 = vadd.f32 %v1605_v23, %v1207_v36  ;;  %7199 = vmatprep.mubr.msk.bf16.mxu0 %vm7977_vm0, %v10360_v1  ;;  %v6883_v49 = vpop.f32.mrf.mxu1  ;;  %v7796_v36 = vld [vmem:[%s8069_s7 + $0xa4] sm:$0xff]   ;;  %v2660_v57 = vshll.u32 %v7801_v14, 16 }
 0x1f6   : > { %v6989_v20 = vpop.f32.mrf.mxu0 }
 0x1f7   : > { %v1217_v35 = vpop.f32.mrf.mxu1  ;;  %v2654_v20 = vrot.slane %v2652_v45, 1 }
 0x1f8   : > { %v1608_v4 = vpop.f32.mrf.mxu0  ;;  %v1218_v49 = vadd.f32 %v1217_v35, %v8561_v10 }
 0x1f9   : > { %v8977_v59 = vadd.f32 %v1608_v4, %v1210_v62  ;;  %v6884_v51 = vpop.f32.mrf.mxu1  ;;  %v2658_v35 = vor.u32 %v2656_v16, %v2654_v20 }
 0x1fa   : > { %v6990_v54 = vpop.f32.mrf.mxu0 }
 0x1fb   : > { %v1222_v60 = vpop.f32.mrf.mxu1  ;;  %7094 = vmatmul.mubr.msk.bf16.gmra.mxu1 %vm621_vm2, %v7796_v36 }
 0x1fc   : > { %v1613_v23 = vpop.f32.mrf.mxu0  ;;  %7200 = vmatmul.mubr.msk.bf16.gmra.mxu0 %vm621_vm2, %v2647_v37  ;;  %7097 = vmatprep.mubr.msk.bf16.mxu1 %vm7977_vm0, %v10360_v1  ;;  %v2655_v37 = vsel %vm394_vm1, %v2650_v8, %v2654_v20  ;;  %v1223_v36 = vadd.f32 %v1222_v60, %v8569_v11  ;;  %v7803_v8 = vld [vmem:[%s8069_s7 + $0xbc] sm:$0xff]   ;;  %v2664_v20 = vshrl.u32 %v7801_v14, 16 }
 0x1fd   : > { %v8983_v55 = vadd.f32 %v1613_v23, %v1215_v28  ;;  %7203 = vmatprep.mubr.msk.bf16.mxu0 %vm7977_vm0, %v10360_v1  ;;  %v6887_v2 = vpop.f32.mrf.mxu1  ;;  %v7798_v28 = vld [vmem:[%s8069_s7 + $0xac] sm:$0xff]   ;;  %v2668_v16 = vshll.u32 %v7803_v8, 16 }
 0x1fe   : > { %v6993_v62 = vpop.f32.mrf.mxu0 }
 0x1ff   : > { %v1225_v45 = vpop.f32.mrf.mxu1  ;;  %v2662_v62 = vrot.slane %v2660_v57, 1 }
 0x200   : > { %v1616_v7 = vpop.f32.mrf.mxu0  ;;  %v1226_v2 = vadd.f32 %v1225_v45, %v8577_v58 }
 0x201   : > { %v8992_v4 = vadd.f32 %v1616_v7, %v1218_v49  ;;  %v6888_v51 = vpop.f32.mrf.mxu1  ;;  %v2666_v45 = vor.u32 %v2664_v20, %v2662_v62 }
 0x202   : > { %v6994_v54 = vpop.f32.mrf.mxu0  ;;  %v10376_v51 = vld [vmem:[#allocation5_spill] sm:$0xff] }
 0x203   : > { %v1230_v48 = vpop.f32.mrf.mxu1  ;;  %7098 = vmatmul.mubr.msk.bf16.gmra.mxu1 %vm621_vm2, %v7798_v28 }
 0x204   : > { %v1621_v23 = vpop.f32.mrf.mxu0  ;;  %7204 = vmatmul.mubr.msk.bf16.gmra.mxu0 %vm621_vm2, %v2655_v37  ;;  %7101 = vmatprep.mubr.msk.bf16.mxu1 %vm7977_vm0, %v10360_v1  ;;  %v2663_v37 = vsel %vm394_vm1, %v2658_v35, %v2662_v62  ;;  %v1231_v28 = vadd.f32 %v1230_v48, %v10376_v51  ;;  %v7805_v35 = vld [vmem:[%s8069_s7 + $0xc4] sm:$0xff]   ;;  %v2672_v62 = vshrl.u32 %v7803_v8, 16 }
 0x205   : > { %v8998_v10 = vadd.f32 %v1621_v23, %v1223_v36  ;;  %7207 = vmatprep.mubr.msk.bf16.mxu0 %vm7977_vm0, %v10360_v1  ;;  %v6891_v11 = vpop.f32.mrf.mxu1  ;;  %v7800_v36 = vld [vmem:[%s8069_s7 + $0xb4] sm:$0xff]   ;;  %v2676_v20 = vshll.u32 %v7805_v35, 16 }
 0x206   : > { %v6997_v49 = vpop.f32.mrf.mxu0 }
 0x207   : > { %v1233_v57 = vpop.f32.mrf.mxu1 }
 0x208   : > { %v1624_v60 = vpop.f32.mrf.mxu0 }
 0x209   : > { %v9007_v7 = vadd.f32 %v1624_v60, %v1226_v2  ;;  %v6892_v23 = vpop.f32.mrf.mxu1  ;;  %v2670_v2 = vrot.slane %v2668_v16, 1  ;;  %v10378_v60 = vld [vmem:[#allocation6_spill] sm:$0xff] }
 0x20a   : > { %v6998_v54 = vpop.f32.mrf.mxu0 }
 0x20b   : > { %10375 = vst [vmem:[#allocation16_spill] sm:$0xff] %v9007_v7  ;;  %v1238_v14 = vpop.f32.mrf.mxu1  ;;  %7102 = vmatmul.mubr.msk.bf16.gmra.mxu1 %vm621_vm2, %v7800_v36  ;;  %v1234_v54 = vadd.f32 %v1233_v57, %v10378_v60  ;;  %v2674_v60 = vor.u32 %v2672_v62, %v2670_v2 }
 0x20c   : > { %v1629_v49 = vpop.f32.mrf.mxu0  ;;  %7208 = vmatmul.mubr.msk.bf16.gmra.mxu0 %vm621_vm2, %v2663_v37  ;;  %7105 = vmatprep.mubr.msk.bf16.mxu1 %vm7977_vm0, %v10360_v1 }
 0x20d   : > { %v9013_v58 = vadd.f32 %v1629_v49, %v1231_v28  ;;  %7211 = vmatprep.mubr.msk.bf16.mxu0 %vm7977_vm0, %v10360_v1  ;;  %v6895_v48 = vpop.f32.mrf.mxu1  ;;  %v2671_v28 = vsel %vm394_vm1, %v2666_v45, %v2670_v2  ;;  %v7802_v49 = vld [vmem:[%s8069_s7 + $0xbc] sm:$0xff]   ;;  %v7807_v45 = vld [vmem:[%s8069_s7 + $0xcc] sm:$0xff]   ;;  %v2680_v2 = vshrl.u32 %v7805_v35, 16 }
 0x20e   : > { %v7001_v11 = vpop.f32.mrf.mxu0  ;;  %v2684_v62 = vshll.u32 %v7807_v45, 16 }
 0x20f   : > { %10377 = vst [vmem:[#allocation5_spill] sm:$0xff] %v9013_v58  ;;  %v1241_v16 = vpop.f32.mrf.mxu1  ;;  %v10380_v58 = vld [vmem:[#allocation7_spill] sm:$0xff] }
 0x210   : > { %v1632_v37 = vpop.f32.mrf.mxu0  ;;  %v1239_v36 = vadd.f32 %v1238_v14, %v10380_v58 }
 0x211   : > { %v9022_v51 = vadd.f32 %v1632_v37, %v1234_v54  ;;  %v6896_v11 = vpop.f32.mrf.mxu1  ;;  %v2678_v54 = vrot.slane %v2676_v20, 1  ;;  %v10382_v37 = vld [vmem:[#allocation8_spill] sm:$0xff] }
 0x212   : > { %v7002_v23 = vpop.f32.mrf.mxu0  ;;  %v7804_v11 = vld [vmem:[%s8069_s7 + $0xc4] sm:$0xff]  }
 0x213   : > { %10379 = vst [vmem:[#allocation6_spill] sm:$0xff] %v9022_v51  ;;  %v1246_v8 = vpop.f32.mrf.mxu1  ;;  %7106 = vmatmul.mubr.msk.bf16.gmra.mxu1 %vm621_vm2, %v7802_v49  ;;  %v1242_v23 = vadd.f32 %v1241_v16, %v10382_v37  ;;  %v2682_v37 = vor.u32 %v2680_v2, %v2678_v54 }
 0x214   : > { %v1637_v7 = vpop.f32.mrf.mxu0  ;;  %7212 = vmatmul.mubr.msk.bf16.gmra.mxu0 %vm621_vm2, %v2671_v28  ;;  %7109 = vmatprep.mubr.msk.bf16.mxu1 %vm7977_vm0, %v10360_v1  ;;  %v2679_v28 = vsel %vm394_vm1, %v2674_v60, %v2678_v54  ;;  %v7809_v60 = vld [vmem:[%s8069_s7 + $0xd4] sm:$0xff]   ;;  %v2688_v54 = vshrl.u32 %v7807_v45, 16 }
 0x215   : > { %v9028_v57 = vadd.f32 %v1637_v7, %v1239_v36  ;;  %7215 = vmatprep.mubr.msk.bf16.mxu0 %vm7977_vm0, %v10360_v1  ;;  %v6899_v58 = vpop.f32.mrf.mxu1  ;;  %v2692_v2 = vshll.u32 %v7809_v60, 16 }
 0x216   : > { %v7005_v48 = vpop.f32.mrf.mxu0 }
 0x217   : > { %10381 = vst [vmem:[#allocation7_spill] sm:$0xff] %v9028_v57  ;;  %v1249_v20 = vpop.f32.mrf.mxu1  ;;  %v10384_v57 = vld [vmem:[#allocation9_spill] sm:$0xff] }
 0x218   : > { %v1640_v14 = vpop.f32.mrf.mxu0  ;;  %v1247_v49 = vadd.f32 %v1246_v8, %v10384_v57 }
 0x219   : > { %v9037_v7 = vadd.f32 %v1640_v14, %v1242_v23  ;;  %v6900_v48 = vpop.f32.mrf.mxu1  ;;  %v2686_v23 = vrot.slane %v2684_v62, 1  ;;  %v10386_v14 = vld [vmem:[#allocation10_spill] sm:$0xff] }
 0x21a   : > { %v7006_v36 = vpop.f32.mrf.mxu0  ;;  %v7806_v48 = vld [vmem:[%s8069_s7 + $0xcc] sm:$0xff]  }
 0x21b   : > { %10383 = vst [vmem:[#allocation8_spill] sm:$0xff] %v9037_v7  ;;  %v1254_v35 = vpop.f32.mrf.mxu1  ;;  %7110 = vmatmul.mubr.msk.bf16.gmra.mxu1 %vm621_vm2, %v7804_v11  ;;  %v1250_v36 = vadd.f32 %v1249_v20, %v10386_v14  ;;  %v2690_v14 = vor.u32 %v2688_v54, %v2686_v23  ;;  %v2696_v54 = vshrl.u32 %v7809_v60, 16  ;;  %v7812_v60 = vld [vmem:[%s8069_s7 + $0xe4] ss:$0 sps:$4 sm:$0x11]  }
 0x21c   : > { %v1645_v51 = vpop.f32.mrf.mxu0  ;;  %7216 = vmatmul.mubr.msk.bf16.gmra.mxu0 %vm621_vm2, %v2679_v28  ;;  %7113 = vmatprep.mubr.msk.bf16.mxu1 %vm7977_vm0, %v10360_v1  ;;  %v2687_v28 = vsel %vm394_vm1, %v2682_v37, %v2686_v23  ;;  %v7811_v37 = vld [vmem:[%s8069_s7 + $0xdc] sm:$0xff]  }
 0x21d   : > { %v9043_v16 = vadd.f32 %v1645_v51, %v1247_v49  ;;  %7219 = vmatprep.mubr.msk.bf16.mxu0 %vm7977_vm0, %v10360_v1  ;;  %v6903_v57 = vpop.f32.mrf.mxu1 }
 0x21e   : > { %v7009_v58 = vpop.f32.mrf.mxu0 }
 0x21f   : > { %10385 = vst [vmem:[#allocation9_spill] sm:$0xff] %v9043_v16  ;;  %v1257_v62 = vpop.f32.mrf.mxu1  ;;  %v10388_v16 = vld [vmem:[#allocation11_spill] sm:$0xff] }
 0x220   : > { %v1648_v8 = vpop.f32.mrf.mxu0  ;;  %v1255_v11 = vadd.f32 %v1254_v35, %v10388_v16  ;;  %v10391_v16 = vld [vmem:[#allocation13_spill] sm:$0xff] }
 0x221   : > { %v9052_v51 = vadd.f32 %v1648_v8, %v1250_v36  ;;  %v6904_v58 = vpop.f32.mrf.mxu1  ;;  %v2694_v36 = vrot.slane %v2692_v2, 1  ;;  %v10390_v8 = vld [vmem:[#allocation12_spill] sm:$0xff]  ;;  %v2700_v2 = vshll.u32 %v7811_v37, 16 }
 0x222   : > { %v7010_v49 = vpop.f32.mrf.mxu0 }
 0x223   : > { %10387 = vst [vmem:[#allocation10_spill] sm:$0xff] %v9052_v51  ;;  %v2027_v45 = vpop.f32.mrf.mxu1  ;;  %7114 = vmatmul.mubr.msk.bf16.gmra.mxu1 %vm621_vm2, %v7806_v48  ;;  %v1258_v49 = vadd.f32 %v1257_v62, %v10390_v8  ;;  %v2695_v23 = vsel %vm394_vm1, %v2690_v14, %v2694_v36  ;;  %v7808_v48 = vld [vmem:[%s8069_s7 + $0xd4] sm:$0xff]  }
 0x224   : > { %v1653_v7 = vpop.f32.mrf.mxu0  ;;  %7220 = vmatmul.mubr.msk.bf16.gmra.mxu0 %vm621_vm2, %v2687_v28  ;;  %v2242_v35 = vadd.f32 %v2027_v45, %v10391_v16  ;;  %7117 = vmatprep.mubr.msk.bf16.mxu1 %vm7977_vm0, %v10360_v1  ;;  %v2702_v16 = vrot.slane %v2700_v2, 1  ;;  %v2708_v2 = vshll.u32 %v7812_v60, 16 }
 0x225   : > { %v9058_v20 = vadd.f32 %v1653_v7, %v1255_v11  ;;  %7223 = vmatprep.mubr.msk.bf16.mxu0 %vm7977_vm0, %v10360_v1  ;;  %v7019_v7 = vpop.f32.mrf.mxu1 }
 0x226   : > { %v7013_v57 = vpop.f32.mrf.mxu0  ;;  %v10395_v7 = vld [vmem:[#allocation15_spill] sm:$0xff] }
 0x227   : > { %10389 = vst [vmem:[#allocation11_spill] sm:$0xff] %v9058_v20  ;;  %v2030_v58 = vpop.f32.mrf.mxu1  ;;  %v10393_v57 = vld [vmem:[#allocation14_spill] sm:$0xff] }
 0x228   : > { %v1656_v28 = vpop.f32.mrf.mxu0  ;;  %v2243_v51 = vadd.f32 %v2030_v58, %v10393_v57  ;;  %v3102_v58 = vld [vmem:[%s8069_s7 + $0xc] sm:$0xe] }
 0x229   : > { %v9068_v11 = vadd.f32 %v1656_v28, %v1258_v49  ;;  %v7020_v62 = vpop.f32.mrf.mxu1  ;;  %v2698_v49 = vor.u32 %v2696_v54, %v2694_v36  ;;  %v2704_v54 = vshrl.u32 %v7811_v37, 16  ;;  %v2710_v37 = vrot.slane %v2708_v2, 1 }
 0x22a   : > { %v7014_v20 = vpop.f32.mrf.mxu0 }
 0x22b   : > { %10392 = vst [vmem:[#allocation12_spill] sm:$0xff] %v9068_v11  ;;  %v2035_v14 = vpop.f32.mrf.mxu1  ;;  %7118 = vmatmul.mubr.msk.bf16.gmra.mxu1 %vm621_vm2, %v7808_v48  ;;  %v2703_v36 = vsel %vm394_vm1, %v2698_v49, %v2702_v16 }
 0x22c   : > { %v2833_v45 = vpop.f32.mrf.mxu0  ;;  %7224 = vmatmul.mubr.msk.bf16.gmra.mxu0 %vm621_vm2, %v2695_v23  ;;  %v2244_v28 = vadd.f32 %v2035_v14, %v10395_v7  ;;  %7121 = vmatprep.mubr.msk.bf16.mxu1 %vm7977_vm0, %v10360_v1 }
 0x22d   : > { %v9074_v8 = vadd.f32 %v2833_v45, %v2242_v35  ;;  %7227 = vmatprep.mubr.msk.bf16.mxu0 %vm7977_vm0, %v10360_v1  ;;  %v7023_v23 = vpop.f32.mrf.mxu1 }
 0x22e   : > { %v7129_v20 = vpop.f32.mrf.mxu0 }
 0x22f   : > { %10394 = vst [vmem:[#allocation13_spill] sm:$0xff] %v9074_v8  ;;  %v2038_v62 = vpop.f32.mrf.mxu1  ;;  %v7810_v8 = vld [vmem:[%s8069_s7 + $0xdc] sm:$0xff]   ;;  %v7885_v20 = vld [vmem:[%s8069_s7 + $0x10] sm:$0xf] }
 0x230   : > { %v2836_v35 = vpop.f32.mrf.mxu0  ;;  %v2245_v48 = vadd.f32 %v2038_v62, %v8685_v40  ;;  %v6254_v14 = vcombine.low %v3102_v58, %v7885_v20  ;;  %v7886_v58 = vld [vmem:[%s8069_s7 + $0x14] sm:$0xff]  }
 0x231   : > { %v9084_v57 = vadd.f32 %v2836_v35, %v2243_v51  ;;  %v7024_v7 = vpop.f32.mrf.mxu1  ;;  %v2706_v51 = vor.u32 %v2704_v54, %v2702_v16  ;;  %v3110_v62 = vrot.slane %v7886_v58, 1  ;;  %v7815_v58 = vld [vmem:[%s8069_s7 + $0x18] sm:$0xff]  }
 0x232   : > { %v7130_v45 = vpop.f32.mrf.mxu0  ;;  %v3109_v35 = vrot.slane %v6254_v14, 1 }
 0x233   : > { %v2043_v49 = vpop.f32.mrf.mxu1  ;;  %7122 = vmatmul.mubr.msk.bf16.gmra.mxu1 %vm621_vm2, %v7810_v8  ;;  %v2711_v45 = vsel %vm394_vm1, %v2706_v51, %v2710_v37  ;;  %v7887_v37 = vld [vmem:[%s8069_s7 + $0x1c] sm:$0xff]  }
 0x234   : > { %v2841_v11 = vpop.f32.mrf.mxu0  ;;  %7228 = vmatmul.mubr.msk.bf16.gmra.mxu0 %vm621_vm2, %v2703_v36  ;;  %v2246_v40 = vadd.f32 %v2043_v49, %v8693_v6  ;;  %7237 = vmatprep.mubr.msk.bf16.mxu1 %vm7977_vm0, %v10360_v1  ;;  %v3111_v2 = vsel %vm1268_vm3, %v3109_v35, %v3110_v62  ;;  %v7814_v6 = vld [vmem:[%s10356_s1 + $0x38] sm:$0xff]   ;;  %v3112_v49 = vrot.slane %v7887_v37, 1  ;;  %v7817_v37 = vld [vmem:[%s8069_s7 + $0x20] sm:$0xff]  }
 0x235   : > { %v9091_v23 = vadd.f32 %v2841_v11, %v2244_v28  ;;  %7231 = vmatprep.mubr.msk.bf16.mxu0 %vm7977_vm0, %v10360_v1  ;;  %v7027_v36 = vpop.f32.mrf.mxu1 }
 0x236   : > { %v7133_v60 = vpop.f32.mrf.mxu0  ;;  %v7816_v36 = vld [vmem:[%s10356_s1 + $0x40] sm:$0xff]  }
 0x237   : > { %v2046_v16 = vpop.f32.mrf.mxu1 }
 0x238   : > { %v2844_v11 = vpop.f32.mrf.mxu0  ;;  %v2247_v8 = vadd.f32 %v2046_v16, %v8703_v50  ;;  %v3113_v16 = vsel %vm1268_vm3, %v3110_v62, %v3112_v49 }
 0x239   : > { %v9100_v28 = vadd.f32 %v2844_v11, %v2245_v48  ;;  %v7028_v20 = vpop.f32.mrf.mxu1 }
 0x23a   : > { %v7134_v54 = vpop.f32.mrf.mxu0 }
 0x23b   : > { %v2051_v7 = vpop.f32.mrf.mxu1  ;;  %7238 = vmatmul.mubr.msk.bf16.vlgmr.msra.gmra.mxu1 %vm621_vm2, %v3111_v2 }
 0x23c   : > { %v2849_v14 = vpop.f32.mrf.mxu0  ;;  %7232 = vmatmul.mubr.msk.bf16.gmra.mxu0 %vm621_vm2, %v2711_v45  ;;  %v2248_v51 = vadd.f32 %v2051_v7, %v8712_v18  ;;  %7456 = vmatpush3.bf16.msra.mxu1 %v7814_v6 }
 0x23d   : > { %v9109_v48 = vadd.f32 %v2849_v14, %v2246_v40  ;;  %7347 = vmatprep.mubr.msk.bf16.mxu0 %vm7977_vm0, %v10360_v1  ;;  %7241 = vmatprep.mubr.msk.bf16.mxu1 %vm7977_vm0, %v10360_v1  ;;  %v7031_v60 = vpop.f32.mrf.mxu1 }
 0x23e   : > { %v7137_v50 = vpop.f32.mrf.mxu0 }
 0x23f   : > { %v2054_v11 = vpop.f32.mrf.mxu1 }
 0x240   : > { %v2852_v35 = vpop.f32.mrf.mxu0  ;;  %v2249_v18 = vadd.f32 %v2054_v11, %v8722_v63  ;;  %v7888_v63 = vld [vmem:[%s8069_s7 + $0x24] sm:$0xff]  }
 0x241   : > { %v9119_v40 = vadd.f32 %v2852_v35, %v2247_v8  ;;  %v7032_v54 = vpop.f32.mrf.mxu1  ;;  %v3114_v62 = vrot.slane %v7888_v63, 1 }
 0x242   : > { %v7138_v45 = vpop.f32.mrf.mxu0 }
 0x243   : > { %v2059_v8 = vpop.f32.mrf.mxu1  ;;  %7242 = vmatmul.mubr.msk.bf16.gmra.mxu1 %vm621_vm2, %v3113_v16 }
 0x244   : > { %v2857_v2 = vpop.f32.mrf.mxu0  ;;  %7348 = vmatmul.mubr.msk.bf16.vlgmr.msra.gmra.mxu0 %vm621_vm2, %v7815_v58  ;;  %v2250_v14 = vadd.f32 %v2059_v8, %v8728_v17  ;;  %7245 = vmatprep.mubr.msk.bf16.mxu1 %vm7977_vm0, %v10360_v1 }
 0x245   : > { %v9127_v6 = vadd.f32 %v2857_v2, %v2248_v51  ;;  %7566 = vmatpush3.bf16.msra.mxu0 %v7816_v36  ;;  %7351 = vmatprep.mubr.msk.bf16.mxu0 %vm7977_vm0, %v10360_v1  ;;  %v7035_v7 = vpop.f32.mrf.mxu1  ;;  %v3115_v36 = vsel %vm1268_vm3, %v3112_v49, %v3114_v62 }
 0x246   : > { %v7141_v20 = vpop.f32.mrf.mxu0 }
 0x247   : > { %v2062_v60 = vpop.f32.mrf.mxu1  ;;  %v7818_v20 = vld [vmem:[%s8069_s7 + $0x28] sm:$0xff]  }
 0x248   : > { %v2860_v50 = vpop.f32.mrf.mxu0  ;;  %v2251_v58 = vadd.f32 %v2062_v60, %v8737_v29  ;;  %v7889_v29 = vld [vmem:[%s8069_s7 + $0x2c] sm:$0xff]  }
 0x249   : > { %v9137_v51 = vadd.f32 %v2860_v50, %v2249_v18  ;;  %v7036_v11 = vpop.f32.mrf.mxu1  ;;  %v3116_v49 = vrot.slane %v7889_v29, 1 }
 0x24a   : > { %v7142_v35 = vpop.f32.mrf.mxu0 }
 0x24b   : > { %v2067_v16 = vpop.f32.mrf.mxu1  ;;  %7246 = vmatmul.mubr.msk.bf16.gmra.mxu1 %vm621_vm2, %v3115_v36 }
 0x24c   : > { %v2865_v17 = vpop.f32.mrf.mxu0  ;;  %7352 = vmatmul.mubr.msk.bf16.gmra.mxu0 %vm621_vm2, %v7817_v37  ;;  %v2252_v54 = vadd.f32 %v2067_v16, %v8743_v32  ;;  %7249 = vmatprep.mubr.msk.bf16.mxu1 %vm7977_vm0, %v10360_v1  ;;  %v3117_v37 = vsel %vm1268_vm3, %v3114_v62, %v3116_v49 }
 0x24d   : > { %v9142_v45 = vadd.f32 %v2865_v17, %v2250_v14  ;;  %7355 = vmatprep.mubr.msk.bf16.mxu0 %vm7977_vm0, %v10360_v1  ;;  %v7039_v2 = vpop.f32.mrf.mxu1 }
 0x24e   : > { %v7145_v18 = vpop.f32.mrf.mxu0 }
 0x24f   : > { %v2070_v63 = vpop.f32.mrf.mxu1  ;;  %v7819_v18 = vld [vmem:[%s8069_s7 + $0x30] sm:$0xff]  }
 0x250   : > { %v2868_v8 = vpop.f32.mrf.mxu0  ;;  %v2253_v50 = vadd.f32 %v2070_v63, %v8752_v24  ;;  %v7890_v24 = vld [vmem:[%s8069_s7 + $0x34] sm:$0xff]  }
 0x251   : > { %v9152_v14 = vadd.f32 %v2868_v8, %v2251_v58  ;;  %v7040_v60 = vpop.f32.mrf.mxu1  ;;  %v3118_v62 = vrot.slane %v7890_v24, 1 }
 0x252   : > { %v7146_v7 = vpop.f32.mrf.mxu0 }
 0x253   : > { %v2075_v36 = vpop.f32.mrf.mxu1  ;;  %7250 = vmatmul.mubr.msk.bf16.gmra.mxu1 %vm621_vm2, %v3117_v37 }
 0x254   : > { %v2873_v32 = vpop.f32.mrf.mxu0  ;;  %7356 = vmatmul.mubr.msk.bf16.gmra.mxu0 %vm621_vm2, %v7818_v20  ;;  %v2254_v11 = vadd.f32 %v2075_v36, %v8758_v30  ;;  %7253 = vmatprep.mubr.msk.bf16.mxu1 %vm7977_vm0, %v10360_v1  ;;  %v3119_v20 = vsel %vm1268_vm3, %v3116_v49, %v3118_v62 }
 0x255   : > { %v9157_v35 = vadd.f32 %v2873_v32, %v2252_v54  ;;  %7359 = vmatprep.mubr.msk.bf16.mxu0 %vm7977_vm0, %v10360_v1  ;;  %v7043_v17 = vpop.f32.mrf.mxu1 }
 0x256   : > { %v7149_v58 = vpop.f32.mrf.mxu0 }
 0x257   : > { %v2078_v29 = vpop.f32.mrf.mxu1  ;;  %v7820_v58 = vld [vmem:[%s8069_s7 + $0x38] sm:$0xff]  }
 0x258   : > { %v2876_v16 = vpop.f32.mrf.mxu0  ;;  %v2255_v8 = vadd.f32 %v2078_v29, %v8767_v31  ;;  %v7891_v31 = vld [vmem:[%s8069_s7 + $0x3c] sm:$0xff]  }
 0x259   : > { %v9167_v54 = vadd.f32 %v2876_v16, %v2253_v50  ;;  %v7044_v63 = vpop.f32.mrf.mxu1  ;;  %v3120_v49 = vrot.slane %v7891_v31, 1 }
 0x25a   : > { %v7150_v2 = vpop.f32.mrf.mxu0 }
 0x25b   : > { %v2083_v37 = vpop.f32.mrf.mxu1  ;;  %7254 = vmatmul.mubr.msk.bf16.gmra.mxu1 %vm621_vm2, %v3119_v20 }
 0x25c   : > { %v2881_v30 = vpop.f32.mrf.mxu0  ;;  %7360 = vmatmul.mubr.msk.bf16.gmra.mxu0 %vm621_vm2, %v7819_v18  ;;  %v2256_v60 = vadd.f32 %v2083_v37, %v8773_v52  ;;  %7257 = vmatprep.mubr.msk.bf16.mxu1 %vm7977_vm0, %v10360_v1  ;;  %v3121_v18 = vsel %vm1268_vm3, %v3118_v62, %v3120_v49 }
 0x25d   : > { %v9172_v7 = vadd.f32 %v2881_v30, %v2254_v11  ;;  %7363 = vmatprep.mubr.msk.bf16.mxu0 %vm7977_vm0, %v10360_v1  ;;  %v7047_v32 = vpop.f32.mrf.mxu1 }
 0x25e   : > { %v7153_v50 = vpop.f32.mrf.mxu0 }
 0x25f   : > { %v2086_v24 = vpop.f32.mrf.mxu1  ;;  %v7821_v50 = vld [vmem:[%s8069_s7 + $0x40] sm:$0xff]  }
 0x260   : > { %v2884_v36 = vpop.f32.mrf.mxu0  ;;  %v2257_v16 = vadd.f32 %v2086_v24, %v8782_v47  ;;  %v7892_v47 = vld [vmem:[%s8069_s7 + $0x44] sm:$0xff]  }
 0x261   : > { %v9182_v11 = vadd.f32 %v2884_v36, %v2255_v8  ;;  %v7048_v29 = vpop.f32.mrf.mxu1  ;;  %v3122_v62 = vrot.slane %v7892_v47, 1 }
 0x262   : > { %v7154_v17 = vpop.f32.mrf.mxu0 }
 0x263   : > { %v2091_v20 = vpop.f32.mrf.mxu1  ;;  %7258 = vmatmul.mubr.msk.bf16.gmra.mxu1 %vm621_vm2, %v3121_v18 }
 0x264   : > { %v2889_v52 = vpop.f32.mrf.mxu0  ;;  %7364 = vmatmul.mubr.msk.bf16.gmra.mxu0 %vm621_vm2, %v7820_v58  ;;  %v2258_v63 = vadd.f32 %v2091_v20, %v8788_v13  ;;  %7261 = vmatprep.mubr.msk.bf16.mxu1 %vm7977_vm0, %v10360_v1  ;;  %v3123_v58 = vsel %vm1268_vm3, %v3120_v49, %v3122_v62 }
 0x265   : > { %v9187_v2 = vadd.f32 %v2889_v52, %v2256_v60  ;;  %7367 = vmatprep.mubr.msk.bf16.mxu0 %vm7977_vm0, %v10360_v1  ;;  %v7051_v30 = vpop.f32.mrf.mxu1 }
 0x266   : > { %v7157_v8 = vpop.f32.mrf.mxu0 }
 0x267   : > { %v2094_v31 = vpop.f32.mrf.mxu1  ;;  %v7822_v8 = vld [vmem:[%s8069_s7 + $0x48] sm:$0xff]  }
 0x268   : > { %v2892_v37 = vpop.f32.mrf.mxu0  ;;  %v2259_v36 = vadd.f32 %v2094_v31, %v8797_v19  ;;  %v7893_v19 = vld [vmem:[%s8069_s7 + $0x4c] sm:$0xff]  }
 0x269   : > { %v9197_v60 = vadd.f32 %v2892_v37, %v2257_v16  ;;  %v7052_v24 = vpop.f32.mrf.mxu1  ;;  %v3124_v49 = vrot.slane %v7893_v19, 1 }
 0x26a   : > { %v7158_v32 = vpop.f32.mrf.mxu0 }
 0x26b   : > { %v2099_v18 = vpop.f32.mrf.mxu1  ;;  %7262 = vmatmul.mubr.msk.bf16.gmra.mxu1 %vm621_vm2, %v3123_v58 }
 0x26c   : > { %v2897_v13 = vpop.f32.mrf.mxu0  ;;  %7368 = vmatmul.mubr.msk.bf16.gmra.mxu0 %vm621_vm2, %v7821_v50  ;;  %v2260_v29 = vadd.f32 %v2099_v18, %v8803_v26  ;;  %7265 = vmatprep.mubr.msk.bf16.mxu1 %vm7977_vm0, %v10360_v1  ;;  %v3125_v50 = vsel %vm1268_vm3, %v3122_v62, %v3124_v49 }
 0x26d   : > { %v9202_v17 = vadd.f32 %v2897_v13, %v2258_v63  ;;  %7371 = vmatprep.mubr.msk.bf16.mxu0 %vm7977_vm0, %v10360_v1  ;;  %v7055_v52 = vpop.f32.mrf.mxu1 }
 0x26e   : > { %v7161_v16 = vpop.f32.mrf.mxu0 }
 0x26f   : > { %v2102_v47 = vpop.f32.mrf.mxu1  ;;  %v7823_v16 = vld [vmem:[%s8069_s7 + $0x50] sm:$0xff]  }
 0x270   : > { %v2900_v20 = vpop.f32.mrf.mxu0  ;;  %v2261_v37 = vadd.f32 %v2102_v47, %v8812_v61  ;;  %v7894_v61 = vld [vmem:[%s8069_s7 + $0x54] sm:$0xff]  }
 0x271   : > { %v9212_v63 = vadd.f32 %v2900_v20, %v2259_v36  ;;  %v7056_v31 = vpop.f32.mrf.mxu1  ;;  %v3126_v62 = vrot.slane %v7894_v61, 1 }
 0x272   : > { %v7162_v30 = vpop.f32.mrf.mxu0 }
 0x273   : > { %v2107_v58 = vpop.f32.mrf.mxu1  ;;  %7266 = vmatmul.mubr.msk.bf16.gmra.mxu1 %vm621_vm2, %v3125_v50 }
 0x274   : > { %v2905_v26 = vpop.f32.mrf.mxu0  ;;  %7372 = vmatmul.mubr.msk.bf16.gmra.mxu0 %vm621_vm2, %v7822_v8  ;;  %v2262_v24 = vadd.f32 %v2107_v58, %v8818_v46  ;;  %7269 = vmatprep.mubr.msk.bf16.mxu1 %vm7977_vm0, %v10360_v1  ;;  %v3127_v8 = vsel %vm1268_vm3, %v3124_v49, %v3126_v62 }
 0x275   : > { %v9217_v32 = vadd.f32 %v2905_v26, %v2260_v29  ;;  %7375 = vmatprep.mubr.msk.bf16.mxu0 %vm7977_vm0, %v10360_v1  ;;  %v7059_v13 = vpop.f32.mrf.mxu1 }
 0x276   : > { %v7165_v36 = vpop.f32.mrf.mxu0 }
 0x277   : > { %v2110_v19 = vpop.f32.mrf.mxu1  ;;  %v7824_v36 = vld [vmem:[%s8069_s7 + $0x58] sm:$0xff]  }
 0x278   : > { %v2908_v18 = vpop.f32.mrf.mxu0  ;;  %v2263_v20 = vadd.f32 %v2110_v19, %v8827_v9  ;;  %v7895_v9 = vld [vmem:[%s8069_s7 + $0x5c] sm:$0xff]  }
 0x279   : > { %v9227_v29 = vadd.f32 %v2908_v18, %v2261_v37  ;;  %v7060_v47 = vpop.f32.mrf.mxu1  ;;  %v3128_v49 = vrot.slane %v7895_v9, 1 }
 0x27a   : > { %v7166_v52 = vpop.f32.mrf.mxu0 }
 0x27b   : > { %v2115_v50 = vpop.f32.mrf.mxu1  ;;  %7270 = vmatmul.mubr.msk.bf16.gmra.mxu1 %vm621_vm2, %v3127_v8 }
 0x27c   : > { %v2913_v46 = vpop.f32.mrf.mxu0  ;;  %7376 = vmatmul.mubr.msk.bf16.gmra.mxu0 %vm621_vm2, %v7823_v16  ;;  %v2264_v31 = vadd.f32 %v2115_v50, %v8833_v21  ;;  %7273 = vmatprep.mubr.msk.bf16.mxu1 %vm7977_vm0, %v10360_v1  ;;  %v3129_v16 = vsel %vm1268_vm3, %v3126_v62, %v3128_v49 }
 0x27d   : > { %v9232_v30 = vadd.f32 %v2913_v46, %v2262_v24  ;;  %7379 = vmatprep.mubr.msk.bf16.mxu0 %vm7977_vm0, %v10360_v1  ;;  %v7063_v26 = vpop.f32.mrf.mxu1 }
 0x27e   : > { %v7169_v37 = vpop.f32.mrf.mxu0 }
 0x27f   : > { %v2118_v61 = vpop.f32.mrf.mxu1  ;;  %v7825_v37 = vld [vmem:[%s8069_s7 + $0x60] sm:$0xff]  }
 0x280   : > { %v2916_v58 = vpop.f32.mrf.mxu0  ;;  %v2265_v18 = vadd.f32 %v2118_v61, %v8842_v22  ;;  %v7896_v22 = vld [vmem:[%s8069_s7 + $0x64] sm:$0xff]  }
 0x281   : > { %v9242_v24 = vadd.f32 %v2916_v58, %v2263_v20  ;;  %v7064_v19 = vpop.f32.mrf.mxu1  ;;  %v3130_v62 = vrot.slane %v7896_v22, 1 }
 0x282   : > { %v7170_v13 = vpop.f32.mrf.mxu0 }
 0x283   : > { %v2123_v8 = vpop.f32.mrf.mxu1  ;;  %7274 = vmatmul.mubr.msk.bf16.gmra.mxu1 %vm621_vm2, %v3129_v16 }
 0x284   : > { %v2921_v21 = vpop.f32.mrf.mxu0  ;;  %7380 = vmatmul.mubr.msk.bf16.gmra.mxu0 %vm621_vm2, %v7824_v36  ;;  %v2266_v47 = vadd.f32 %v2123_v8, %v8848_v43  ;;  %7277 = vmatprep.mubr.msk.bf16.mxu1 %vm7977_vm0, %v10360_v1  ;;  %v3131_v36 = vsel %vm1268_vm3, %v3128_v49, %v3130_v62 }
 0x285   : > { %v9247_v52 = vadd.f32 %v2921_v21, %v2264_v31  ;;  %7383 = vmatprep.mubr.msk.bf16.mxu0 %vm7977_vm0, %v10360_v1  ;;  %v7067_v46 = vpop.f32.mrf.mxu1 }
 0x286   : > { %v7173_v20 = vpop.f32.mrf.mxu0 }
 0x287   : > { %v2126_v9 = vpop.f32.mrf.mxu1  ;;  %v7826_v20 = vld [vmem:[%s8069_s7 + $0x68] sm:$0xff]  }
 0x288   : > { %v2924_v50 = vpop.f32.mrf.mxu0  ;;  %v2267_v58 = vadd.f32 %v2126_v9, %v8857_v5  ;;  %v7897_v5 = vld [vmem:[%s8069_s7 + $0x6c] sm:$0xff]  }
 0x289   : > { %v9257_v31 = vadd.f32 %v2924_v50, %v2265_v18  ;;  %v7068_v61 = vpop.f32.mrf.mxu1  ;;  %v3132_v49 = vrot.slane %v7897_v5, 1 }
 0x28a   : > { %v7174_v26 = vpop.f32.mrf.mxu0 }
 0x28b   : > { %v2131_v16 = vpop.f32.mrf.mxu1  ;;  %7278 = vmatmul.mubr.msk.bf16.gmra.mxu1 %vm621_vm2, %v3131_v36 }
 0x28c   : > { %v2929_v43 = vpop.f32.mrf.mxu0  ;;  %7384 = vmatmul.mubr.msk.bf16.gmra.mxu0 %vm621_vm2, %v7825_v37  ;;  %v2268_v19 = vadd.f32 %v2131_v16, %v8863_v41  ;;  %7281 = vmatprep.mubr.msk.bf16.mxu1 %vm7977_vm0, %v10360_v1  ;;  %v3133_v37 = vsel %vm1268_vm3, %v3130_v62, %v3132_v49 }
 0x28d   : > { %v9262_v13 = vadd.f32 %v2929_v43, %v2266_v47  ;;  %7387 = vmatprep.mubr.msk.bf16.mxu0 %vm7977_vm0, %v10360_v1  ;;  %v7071_v21 = vpop.f32.mrf.mxu1 }
 0x28e   : > { %v7177_v18 = vpop.f32.mrf.mxu0 }
 0x28f   : > { %v2134_v22 = vpop.f32.mrf.mxu1  ;;  %v7827_v18 = vld [vmem:[%s8069_s7 + $0x70] sm:$0xff]  }
 0x290   : > { %v2932_v8 = vpop.f32.mrf.mxu0  ;;  %v2269_v50 = vadd.f32 %v2134_v22, %v8872_v56  ;;  %v7898_v56 = vld [vmem:[%s8069_s7 + $0x74] sm:$0xff]  }
 0x291   : > { %v9272_v47 = vadd.f32 %v2932_v8, %v2267_v58  ;;  %v7072_v9 = vpop.f32.mrf.mxu1  ;;  %v3134_v62 = vrot.slane %v7898_v56, 1 }
 0x292   : > { %v7178_v46 = vpop.f32.mrf.mxu0 }
 0x293   : > { %v2139_v36 = vpop.f32.mrf.mxu1  ;;  %7282 = vmatmul.mubr.msk.bf16.gmra.mxu1 %vm621_vm2, %v3133_v37 }
 0x294   : > { %v2937_v41 = vpop.f32.mrf.mxu0  ;;  %7388 = vmatmul.mubr.msk.bf16.gmra.mxu0 %vm621_vm2, %v7826_v20  ;;  %v2270_v61 = vadd.f32 %v2139_v36, %v8878_v34  ;;  %7285 = vmatprep.mubr.msk.bf16.mxu1 %vm7977_vm0, %v10360_v1  ;;  %v3135_v20 = vsel %vm1268_vm3, %v3132_v49, %v3134_v62 }
 0x295   : > { %v9277_v26 = vadd.f32 %v2937_v41, %v2268_v19  ;;  %7391 = vmatprep.mubr.msk.bf16.mxu0 %vm7977_vm0, %v10360_v1  ;;  %v7075_v43 = vpop.f32.mrf.mxu1 }
 0x296   : > { %v7181_v58 = vpop.f32.mrf.mxu0 }
 0x297   : > { %v2142_v5 = vpop.f32.mrf.mxu1  ;;  %v7828_v58 = vld [vmem:[%s8069_s7 + $0x78] sm:$0xff]  }
 0x298   : > { %v2940_v16 = vpop.f32.mrf.mxu0  ;;  %v2271_v8 = vadd.f32 %v2142_v5, %v8887_v44  ;;  %v7899_v44 = vld [vmem:[%s8069_s7 + $0x7c] sm:$0xff]  }
 0x299   : > { %v9287_v19 = vadd.f32 %v2940_v16, %v2269_v50  ;;  %v7076_v22 = vpop.f32.mrf.mxu1  ;;  %v3136_v49 = vrot.slane %v7899_v44, 1 }
 0x29a   : > { %v7182_v21 = vpop.f32.mrf.mxu0 }
 0x29b   : > { %v2147_v37 = vpop.f32.mrf.mxu1  ;;  %7286 = vmatmul.mubr.msk.bf16.gmra.mxu1 %vm621_vm2, %v3135_v20 }
 0x29c   : > { %v2945_v34 = vpop.f32.mrf.mxu0  ;;  %7392 = vmatmul.mubr.msk.bf16.gmra.mxu0 %vm621_vm2, %v7827_v18  ;;  %v2272_v9 = vadd.f32 %v2147_v37, %v8893_v39  ;;  %7289 = vmatprep.mubr.msk.bf16.mxu1 %vm7977_vm0, %v10360_v1  ;;  %v3137_v18 = vsel %vm1268_vm3, %v3134_v62, %v3136_v49 }
 0x29d   : > { %v9292_v46 = vadd.f32 %v2945_v34, %v2270_v61  ;;  %7395 = vmatprep.mubr.msk.bf16.mxu0 %vm7977_vm0, %v10360_v1  ;;  %v7079_v41 = vpop.f32.mrf.mxu1 }
 0x29e   : > { %v7185_v50 = vpop.f32.mrf.mxu0 }
 0x29f   : > { %v2150_v56 = vpop.f32.mrf.mxu1  ;;  %v7829_v50 = vld [vmem:[%s8069_s7 + $0x80] sm:$0xff]  }
 0x2a0   : > { %v2948_v36 = vpop.f32.mrf.mxu0  ;;  %v2273_v16 = vadd.f32 %v2150_v56, %v8902_v12  ;;  %v7900_v12 = vld [vmem:[%s8069_s7 + $0x84] sm:$0xff]  }
 0x2a1   : > { %v9302_v61 = vadd.f32 %v2948_v36, %v2271_v8  ;;  %v7080_v5 = vpop.f32.mrf.mxu1  ;;  %v3138_v62 = vrot.slane %v7900_v12, 1 }
 0x2a2   : > { %v7186_v43 = vpop.f32.mrf.mxu0 }
 0x2a3   : > { %v2155_v20 = vpop.f32.mrf.mxu1  ;;  %7290 = vmatmul.mubr.msk.bf16.gmra.mxu1 %vm621_vm2, %v3137_v18 }
 0x2a4   : > { %v2953_v39 = vpop.f32.mrf.mxu0  ;;  %7396 = vmatmul.mubr.msk.bf16.gmra.mxu0 %vm621_vm2, %v7828_v58  ;;  %v2274_v22 = vadd.f32 %v2155_v20, %v8908_v53  ;;  %7293 = vmatprep.mubr.msk.bf16.mxu1 %vm7977_vm0, %v10360_v1  ;;  %v3139_v58 = vsel %vm1268_vm3, %v3136_v49, %v3138_v62 }
 0x2a5   : > { %v9307_v21 = vadd.f32 %v2953_v39, %v2272_v9  ;;  %7399 = vmatprep.mubr.msk.bf16.mxu0 %vm7977_vm0, %v10360_v1  ;;  %v7083_v34 = vpop.f32.mrf.mxu1 }
 0x2a6   : > { %v7189_v8 = vpop.f32.mrf.mxu0 }
 0x2a7   : > { %v2158_v44 = vpop.f32.mrf.mxu1  ;;  %v7830_v8 = vld [vmem:[%s8069_s7 + $0x88] sm:$0xff]  }
 0x2a8   : > { %v2956_v37 = vpop.f32.mrf.mxu0  ;;  %v2275_v36 = vadd.f32 %v2158_v44, %v8917_v25  ;;  %v7901_v25 = vld [vmem:[%s8069_s7 + $0x8c] sm:$0xff]  }
 0x2a9   : > { %v9317_v9 = vadd.f32 %v2956_v37, %v2273_v16  ;;  %v7084_v56 = vpop.f32.mrf.mxu1  ;;  %v3140_v49 = vrot.slane %v7901_v25, 1 }
 0x2aa   : > { %v7190_v41 = vpop.f32.mrf.mxu0 }
 0x2ab   : > { %v2163_v18 = vpop.f32.mrf.mxu1  ;;  %7294 = vmatmul.mubr.msk.bf16.gmra.mxu1 %vm621_vm2, %v3139_v58 }
 0x2ac   : > { %v2961_v53 = vpop.f32.mrf.mxu0  ;;  %7400 = vmatmul.mubr.msk.bf16.gmra.mxu0 %vm621_vm2, %v7829_v50  ;;  %v2276_v5 = vadd.f32 %v2163_v18, %v8923_v0  ;;  %7297 = vmatprep.mubr.msk.bf16.mxu1 %vm7977_vm0, %v10360_v1  ;;  %v3141_v50 = vsel %vm1268_vm3, %v3138_v62, %v3140_v49 }
 0x2ad   : > { %v9322_v43 = vadd.f32 %v2961_v53, %v2274_v22  ;;  %7403 = vmatprep.mubr.msk.bf16.mxu0 %vm7977_vm0, %v10360_v1  ;;  %v7087_v39 = vpop.f32.mrf.mxu1 }
 0x2ae   : > { %v7193_v16 = vpop.f32.mrf.mxu0 }
 0x2af   : > { %v2166_v12 = vpop.f32.mrf.mxu1  ;;  %v7831_v16 = vld [vmem:[%s8069_s7 + $0x90] sm:$0xff]  }
 0x2b0   : > { %v2964_v20 = vpop.f32.mrf.mxu0  ;;  %v2277_v37 = vadd.f32 %v2166_v12, %v8932_v15  ;;  %v7902_v15 = vld [vmem:[%s8069_s7 + $0x94] sm:$0xff]  }
 0x2b1   : > { %v9332_v22 = vadd.f32 %v2964_v20, %v2275_v36  ;;  %v7088_v44 = vpop.f32.mrf.mxu1  ;;  %v3142_v62 = vrot.slane %v7902_v15, 1 }
 0x2b2   : > { %v7194_v34 = vpop.f32.mrf.mxu0 }
 0x2b3   : > { %v2171_v58 = vpop.f32.mrf.mxu1  ;;  %7298 = vmatmul.mubr.msk.bf16.gmra.mxu1 %vm621_vm2, %v3141_v50 }
 0x2b4   : > { %v2969_v0 = vpop.f32.mrf.mxu0  ;;  %7404 = vmatmul.mubr.msk.bf16.gmra.mxu0 %vm621_vm2, %v7830_v8  ;;  %v2278_v56 = vadd.f32 %v2171_v58, %v8938_v3  ;;  %7301 = vmatprep.mubr.msk.bf16.mxu1 %vm7977_vm0, %v10360_v1  ;;  %v3143_v8 = vsel %vm1268_vm3, %v3140_v49, %v3142_v62 }
 0x2b5   : > { %v9337_v41 = vadd.f32 %v2969_v0, %v2276_v5  ;;  %7407 = vmatprep.mubr.msk.bf16.mxu0 %vm7977_vm0, %v10360_v1  ;;  %v7091_v53 = vpop.f32.mrf.mxu1 }
 0x2b6   : > { %v7197_v36 = vpop.f32.mrf.mxu0 }
 0x2b7   : > { %v2174_v25 = vpop.f32.mrf.mxu1  ;;  %v7832_v36 = vld [vmem:[%s8069_s7 + $0x98] sm:$0xff]  }
 0x2b8   : > { %v2972_v18 = vpop.f32.mrf.mxu0  ;;  %v2279_v20 = vadd.f32 %v2174_v25, %v8947_v27  ;;  %v7903_v27 = vld [vmem:[%s8069_s7 + $0x9c] sm:$0xff]  }
 0x2b9   : > { %v9347_v5 = vadd.f32 %v2972_v18, %v2277_v37  ;;  %v7092_v12 = vpop.f32.mrf.mxu1  ;;  %v3144_v49 = vrot.slane %v7903_v27, 1 }
 0x2ba   : > { %v7198_v39 = vpop.f32.mrf.mxu0 }
 0x2bb   : > { %v2179_v50 = vpop.f32.mrf.mxu1  ;;  %7302 = vmatmul.mubr.msk.bf16.gmra.mxu1 %vm621_vm2, %v3143_v8 }
 0x2bc   : > { %v2977_v3 = vpop.f32.mrf.mxu0  ;;  %7408 = vmatmul.mubr.msk.bf16.gmra.mxu0 %vm621_vm2, %v7831_v16  ;;  %v2280_v44 = vadd.f32 %v2179_v50, %v8953_v42  ;;  %7305 = vmatprep.mubr.msk.bf16.mxu1 %vm7977_vm0, %v10360_v1  ;;  %v3145_v16 = vsel %vm1268_vm3, %v3142_v62, %v3144_v49 }
 0x2bd   : > { %v9352_v34 = vadd.f32 %v2977_v3, %v2278_v56  ;;  %7411 = vmatprep.mubr.msk.bf16.mxu0 %vm7977_vm0, %v10360_v1  ;;  %v7095_v0 = vpop.f32.mrf.mxu1 }
 0x2be   : > { %v7201_v37 = vpop.f32.mrf.mxu0 }
 0x2bf   : > { %v2182_v15 = vpop.f32.mrf.mxu1  ;;  %v7833_v37 = vld [vmem:[%s8069_s7 + $0xa0] sm:$0xff]  }
 0x2c0   : > { %v2980_v58 = vpop.f32.mrf.mxu0  ;;  %v2281_v18 = vadd.f32 %v2182_v15, %v8962_v38  ;;  %v7904_v38 = vld [vmem:[%s8069_s7 + $0xa4] sm:$0xff]  }
 0x2c1   : > { %v9362_v56 = vadd.f32 %v2980_v58, %v2279_v20  ;;  %v7096_v25 = vpop.f32.mrf.mxu1  ;;  %v3146_v62 = vrot.slane %v7904_v38, 1 }
 0x2c2   : > { %v7202_v53 = vpop.f32.mrf.mxu0 }
 0x2c3   : > { %v2187_v8 = vpop.f32.mrf.mxu1  ;;  %7306 = vmatmul.mubr.msk.bf16.gmra.mxu1 %vm621_vm2, %v3145_v16 }
 0x2c4   : > { %v2985_v42 = vpop.f32.mrf.mxu0  ;;  %7412 = vmatmul.mubr.msk.bf16.gmra.mxu0 %vm621_vm2, %v7832_v36  ;;  %v2282_v12 = vadd.f32 %v2187_v8, %v8968_v33  ;;  %7309 = vmatprep.mubr.msk.bf16.mxu1 %vm7977_vm0, %v10360_v1  ;;  %v3147_v36 = vsel %vm1268_vm3, %v3144_v49, %v3146_v62 }
 0x2c5   : > { %v9367_v39 = vadd.f32 %v2985_v42, %v2280_v44  ;;  %7415 = vmatprep.mubr.msk.bf16.mxu0 %vm7977_vm0, %v10360_v1  ;;  %v7099_v3 = vpop.f32.mrf.mxu1 }
 0x2c6   : > { %v7205_v20 = vpop.f32.mrf.mxu0 }
 0x2c7   : > { %v2190_v27 = vpop.f32.mrf.mxu1  ;;  %v7834_v20 = vld [vmem:[%s8069_s7 + $0xa8] sm:$0xff]  }
 0x2c8   : > { %v2988_v50 = vpop.f32.mrf.mxu0  ;;  %v2283_v58 = vadd.f32 %v2190_v27, %v8977_v59  ;;  %v7905_v59 = vld [vmem:[%s8069_s7 + $0xac] sm:$0xff]  }
 0x2c9   : > { %v9377_v44 = vadd.f32 %v2988_v50, %v2281_v18  ;;  %v7100_v15 = vpop.f32.mrf.mxu1  ;;  %v3148_v49 = vrot.slane %v7905_v59, 1 }
 0x2ca   : > { %v7206_v0 = vpop.f32.mrf.mxu0 }
 0x2cb   : > { %v2195_v16 = vpop.f32.mrf.mxu1  ;;  %7310 = vmatmul.mubr.msk.bf16.gmra.mxu1 %vm621_vm2, %v3147_v36 }
 0x2cc   : > { %v2993_v33 = vpop.f32.mrf.mxu0  ;;  %7416 = vmatmul.mubr.msk.bf16.gmra.mxu0 %vm621_vm2, %v7833_v37  ;;  %v2284_v25 = vadd.f32 %v2195_v16, %v8983_v55  ;;  %7313 = vmatprep.mubr.msk.bf16.mxu1 %vm7977_vm0, %v10360_v1  ;;  %v3149_v37 = vsel %vm1268_vm3, %v3146_v62, %v3148_v49 }
 0x2cd   : > { %v9382_v53 = vadd.f32 %v2993_v33, %v2282_v12  ;;  %7419 = vmatprep.mubr.msk.bf16.mxu0 %vm7977_vm0, %v10360_v1  ;;  %v7103_v42 = vpop.f32.mrf.mxu1 }
 0x2ce   : > { %v7209_v18 = vpop.f32.mrf.mxu0 }
 0x2cf   : > { %v2198_v38 = vpop.f32.mrf.mxu1  ;;  %v7835_v18 = vld [vmem:[%s8069_s7 + $0xb0] sm:$0xff]  }
 0x2d0   : > { %v2996_v8 = vpop.f32.mrf.mxu0  ;;  %v2285_v50 = vadd.f32 %v2198_v38, %v8992_v4  ;;  %v7906_v4 = vld [vmem:[%s8069_s7 + $0xb4] sm:$0xff]  }
 0x2d1   : > { %v9392_v12 = vadd.f32 %v2996_v8, %v2283_v58  ;;  %v7104_v27 = vpop.f32.mrf.mxu1  ;;  %v3150_v62 = vrot.slane %v7906_v4, 1  ;;  %v10396_v8 = vld [vmem:[#allocation16_spill] sm:$0xff] }
 0x2d2   : > { %v7210_v3 = vpop.f32.mrf.mxu0 }
 0x2d3   : > { %v2203_v36 = vpop.f32.mrf.mxu1  ;;  %7314 = vmatmul.mubr.msk.bf16.gmra.mxu1 %vm621_vm2, %v3149_v37  ;;  %v3151_v38 = vsel %vm1268_vm3, %v3148_v49, %v3150_v62 }
 0x2d4   : > { %v3001_v55 = vpop.f32.mrf.mxu0  ;;  %7420 = vmatmul.mubr.msk.bf16.gmra.mxu0 %vm621_vm2, %v7834_v20  ;;  %v2286_v15 = vadd.f32 %v2203_v36, %v8998_v10  ;;  %7317 = vmatprep.mubr.msk.bf16.mxu1 %vm7977_vm0, %v10360_v1 }
 0x2d5   : > { %v9397_v0 = vadd.f32 %v3001_v55, %v2284_v25  ;;  %7423 = vmatprep.mubr.msk.bf16.mxu0 %vm7977_vm0, %v10360_v1  ;;  %v7107_v33 = vpop.f32.mrf.mxu1  ;;  %v10398_v55 = vld [vmem:[#allocation5_spill] sm:$0xff] }
 0x2d6   : > { %v7213_v58 = vpop.f32.mrf.mxu0 }
 0x2d7   : > { %v2206_v59 = vpop.f32.mrf.mxu1  ;;  %v7907_v58 = vld [vmem:[%s8069_s7 + $0xbc] sm:$0xff]  }
 0x2d8   : > { %v3004_v16 = vpop.f32.mrf.mxu0  ;;  %v2287_v20 = vadd.f32 %v2206_v59, %v10396_v8  ;;  %v3152_v49 = vrot.slane %v7907_v58, 1 }
 0x2d9   : > { %v9407_v25 = vadd.f32 %v3004_v16, %v2285_v50  ;;  %v7108_v3 = vpop.f32.mrf.mxu1  ;;  %v7836_v16 = vld [vmem:[%s8069_s7 + $0xb8] sm:$0xff]  }
 0x2da   : > { %v7214_v42 = vpop.f32.mrf.mxu0 }
 0x2db   : > { %v2211_v27 = vpop.f32.mrf.mxu1  ;;  %7318 = vmatmul.mubr.msk.bf16.gmra.mxu1 %vm621_vm2, %v3151_v38  ;;  %v10400_v42 = vld [vmem:[#allocation6_spill] sm:$0xff]  ;;  %v3153_v38 = vsel %vm1268_vm3, %v3150_v62, %v3152_v49 }
 0x2dc   : > { %v3009_v10 = vpop.f32.mrf.mxu0  ;;  %7424 = vmatmul.mubr.msk.bf16.gmra.mxu0 %vm621_vm2, %v7835_v18  ;;  %v2288_v36 = vadd.f32 %v2211_v27, %v10398_v55  ;;  %7321 = vmatprep.mubr.msk.bf16.mxu1 %vm7977_vm0, %v10360_v1  ;;  %v10402_v55 = vld [vmem:[#allocation7_spill] sm:$0xff] }
 0x2dd   : > { %v9412_v37 = vadd.f32 %v3009_v10, %v2286_v15  ;;  %7427 = vmatprep.mubr.msk.bf16.mxu0 %vm7977_vm0, %v10360_v1  ;;  %v7111_v4 = vpop.f32.mrf.mxu1 }
 0x2de   : > { %v7217_v50 = vpop.f32.mrf.mxu0  ;;  %v7908_v4 = vld [vmem:[%s8069_s7 + $0xc4] sm:$0xff]  }
 0x2df   : > { %10397 = vst [vmem:[#allocation14_spill] sm:$0xff] %v9412_v37  ;;  %v2214_v18 = vpop.f32.mrf.mxu1  ;;  %v3154_v62 = vrot.slane %v7908_v4, 1 }
 0x2e0   : > { %v3012_v33 = vpop.f32.mrf.mxu0  ;;  %v2289_v8 = vadd.f32 %v2214_v18, %v10400_v42 }
 0x2e1   : > { %v9422_v15 = vadd.f32 %v3012_v33, %v2287_v20  ;;  %v7112_v3 = vpop.f32.mrf.mxu1 }
 0x2e2   : > { %v7218_v59 = vpop.f32.mrf.mxu0 }
 0x2e3   : > { %10399 = vst [vmem:[#allocation15_spill] sm:$0xff] %v9422_v15  ;;  %v2219_v50 = vpop.f32.mrf.mxu1  ;;  %7322 = vmatmul.mubr.msk.bf16.gmra.mxu1 %vm621_vm2, %v3153_v38  ;;  %v7837_v59 = vld [vmem:[%s8069_s7 + $0xc0] sm:$0xff]  }
 0x2e4   : > { %v3017_v10 = vpop.f32.mrf.mxu0  ;;  %7428 = vmatmul.mubr.msk.bf16.gmra.mxu0 %vm621_vm2, %v7836_v16  ;;  %v2290_v58 = vadd.f32 %v2219_v50, %v10402_v55  ;;  %7325 = vmatprep.mubr.msk.bf16.mxu1 %vm7977_vm0, %v10360_v1  ;;  %v7978_v16 = vmov 0  }
 0x2e5   : > { %v9427_v27 = vadd.f32 %v3017_v10, %v2288_v36  ;;  %7431 = vmatprep.mubr.msk.bf16.mxu0 %vm7977_vm0, %v10360_v1  ;;  %v7115_v33 = vpop.f32.mrf.mxu1  ;;  %7720 = vset.pattern.permute.xlu0 %v7978_v16  ;;  %v5509_v36 = vld [vmem:[%s10358_s3] sm:$0xff] }
 0x2e6   : > { %v7221_v20 = vpop.f32.mrf.mxu0  ;;  %7721 = vset.pattern.permute.xlu1 %v7978_v16  ;;  %5565 = vperm.xlu0 %7720, %v5509_v36   ;;  %v10404_v10 = vld [vmem:[#allocation8_spill] sm:$0xff]  ;;  %v5511_v33 = vld [vmem:[%s10358_s3 + $0x10] sm:$0xff] }
 0x2e7   : > { %10401 = vst [vmem:[#allocation16_spill] sm:$0xff] %v9427_v27  ;;  %v2222_v38 = vpop.f32.mrf.mxu1  ;;  %v3155_v20 = vsel %vm1268_vm3, %v3152_v49, %v3154_v62  ;;  %5575 = vperm.xlu1 %7721, %v5511_v33  }
 0x2e8   : > { %v3020_v18 = vpop.f32.mrf.mxu0  ;;  %v2291_v50 = vadd.f32 %v2222_v38, %v10404_v10  ;;  %v7909_v38 = vld [vmem:[%s8069_s7 + $0xcc] sm:$0xff]  }
 0x2e9   : > { %v9440_v42 = vadd.f32 %v3020_v18, %v2289_v8  ;;  %v7116_v55 = vpop.f32.mrf.mxu1  ;;  %v5510_v8 = vld [vmem:[%s10358_s3 + $0x8] sm:$0xff] }
 0x2ea   : > { %v7222_v3 = vpop.f32.mrf.mxu0  ;;  %5570 = vperm.xlu0 %7720, %v5510_v8  }
 0x2eb   : > { %10403 = vst [vmem:[#allocation5_spill] sm:$0xff] %v9440_v42  ;;  %v2227_v49 = vpop.f32.mrf.mxu1  ;;  %7326 = vmatmul.mubr.msk.bf16.gmra.mxu1 %vm621_vm2, %v3155_v20  ;;  %v3156_v3 = vrot.slane %v7909_v38, 1  ;;  %v5513_v20 = vld [vmem:[%s10358_s3 + $0x20] sm:$0xff] }
 0x2ec   : > { %v3025_v4 = vpop.f32.mrf.mxu0  ;;  %7432 = vmatmul.mubr.msk.bf16.gmra.mxu0 %vm621_vm2, %v7837_v59  ;;  %v10406_v59 = vld [vmem:[#allocation9_spill] sm:$0xff]  ;;  %7329 = vmatprep.mubr.msk.bf16.mxu1 %vm7977_vm0, %v10360_v1 }
 0x2ed   : > { %v9451_v18 = vadd.f32 %v3025_v4, %v2290_v58  ;;  %7435 = vmatprep.mubr.msk.bf16.mxu0 %vm7977_vm0, %v10360_v1  ;;  %v2292_v36 = vadd.f32 %v2227_v49, %v10406_v59  ;;  %v7119_v10 = vpop.f32.mrf.mxu1  ;;  %v7838_v58 = vld [vmem:[%s8069_s7 + $0xc8] sm:$0xff]   ;;  %v5512_v4 = vld [vmem:[%s10358_s3 + $0x18] sm:$0xff]  ;;  %v3157_v38 = vsel %vm1268_vm3, %v3154_v62, %v3156_v3 }
 0x2ee   : > { %v7225_v16 = vpop.f32.mrf.mxu0  ;;  %5580 = vperm.xlu1 %7721, %v5512_v4   ;;  %5585 = vperm.xlu0 %7720, %v5513_v20   ;;  %v10410_v4 = vmov 0.0  }
 0x2ef   : > { %10405 = vst [vmem:[#allocation6_spill] sm:$0xff] %v9451_v18  ;;  %v2230_v8 = vpop.f32.mrf.mxu1  ;;  %v10408_v16 = vld [vmem:[#allocation10_spill] sm:$0xff] }
 0x2f0   : > { %v3028_v55 = vpop.f32.mrf.mxu0  ;;  %v2293_v59 = vadd.f32 %v2230_v8, %v10408_v16  ;;  %v5514_v18 = vld [vmem:[%s10358_s3 + $0x28] sm:$0xff] }
 0x2f1   : > { %v9467_v33 = vadd.f32 %v3028_v55, %v2291_v50  ;;  %v7120_v10 = vpop.f32.mrf.mxu1  ;;  %v5515_v50 = vld [vmem:[%s10358_s3 + $0x30] sm:$0xff] }
 0x2f2   : > { %v7226_v49 = vpop.f32.mrf.mxu0  ;;  %5590 = vperm.xlu1 %7721, %v5514_v18   ;;  %5595 = vperm.xlu0 %7720, %v5515_v50   ;;  %v5517_v18 = vld [vmem:[%s10358_s3 + $0x40] sm:$0xff] }
 0x2f3   : > { %10407 = vst [vmem:[#allocation7_spill] sm:$0xff] %v9467_v33  ;;  %v2235_v62 = vpop.f32.mrf.mxu1  ;;  %7330 = vmatmul.mubr.msk.bf16.gmra.mxu1 %vm621_vm2, %v3157_v38  ;;  %v7910_v49 = vld [vmem:[%s8069_s7 + $0xd4] sm:$0xff]  }
 0x2f4   : > { %v3033_v1 = vpop.f32.mrf.mxu0  ;;  %7436 = vmatmul.mubr.msk.bf16.gmra.mxu0 %vm621_vm2, %v7838_v58  ;;  %v10411_v58 = vld [vmem:[#allocation11_spill] sm:$0xff]  ;;  %7333 = vmatprep.mubr.msk.bf16.mxu1 %vm7977_vm0, %v10410_v4  ;;  %v3158_v16 = vrot.slane %v7910_v49, 1 }
 0x2f5   : > { %v9478_v55 = vadd.f32 %v3033_v1, %v2292_v36  ;;  %7439 = vmatprep.mubr.msk.bf16.mxu0 %vm7977_vm0, %v10410_v4  ;;  %v2294_v8 = vadd.f32 %v2235_v62, %v10411_v58  ;;  %v7123_v10 = vpop.f32.mrf.mxu1  ;;  %v7839_v1 = vld [vmem:[%s8069_s7 + $0xd0] sm:$0xff]   ;;  %v5516_v36 = vld [vmem:[%s10358_s3 + $0x38] sm:$0xff] }
 0x2f6   : > { %v7229_v20 = vpop.f32.mrf.mxu0  ;;  %5600 = vperm.xlu1 %7721, %v5516_v36   ;;  %5605 = vperm.xlu0 %7720, %v5517_v18   ;;  %v3159_v49 = vsel %vm1268_vm3, %v3156_v3, %v3158_v16 }
 0x2f7   : > { %10409 = vst [vmem:[#allocation8_spill] sm:$0xff] %v9478_v55  ;;  %v2238_v50 = vpop.f32.mrf.mxu1  ;;  %v10413_v20 = vld [vmem:[#allocation12_spill] sm:$0xff] }
 0x2f8   : > { %v3036_v33 = vpop.f32.mrf.mxu0  ;;  %v2295_v58 = vadd.f32 %v2238_v50, %v10413_v20 }
 0x2f9   : > { %v9494_v38 = vadd.f32 %v3036_v33, %v2293_v59  ;;  %v7124_v10 = vpop.f32.mrf.mxu1  ;;  %v5518_v33 = vld [vmem:[%s10358_s3 + $0x48] sm:$0xff]  ;;  %v5519_v59 = vld [vmem:[%s10358_s3 + $0x50] sm:$0xff] }
 0x2fa   : > { %v7230_v62 = vpop.f32.mrf.mxu0  ;;  %5610 = vperm.xlu1 %7721, %v5518_v33   ;;  %5615 = vperm.xlu0 %7720, %v5519_v59   ;;  %v7840_v10 = vld [vmem:[%s8069_s7 + $0xd8] sm:$0xff]  }
 0x2fb   : > { %10412 = vst [vmem:[#allocation9_spill] sm:$0xff] %v9494_v38  ;;  %v3285_v3 = vpop.f32.mrf.mxu1  ;;  %7334 = vmatmul.mubr.msk.bf16.gmra.mxu1 %vm621_vm2, %v3159_v49  ;;  %v7911_v62 = vld [vmem:[%s8069_s7 + $0xdc] sm:$0xff]   ;;  %v4136_v38 = vld [vmem:[%s8069_s7 + $0x18] sm:$0xf] }
 0x2fc   : > { %v3041_v55 = vpop.f32.mrf.mxu0  ;;  %7440 = vmatmul.mubr.msk.bf16.gmra.mxu0 %vm621_vm2, %v7839_v1  ;;  %v10415_v1 = vld [vmem:[#allocation13_spill] sm:$0xff]  ;;  %7337 = vmatprep.mubr.msk.bf16.mxu1 %vm7977_vm0, %v10410_v4  ;;  %v3160_v20 = vrot.slane %v7911_v62, 1  ;;  %v5520_v33 = vld [vmem:[%s10358_s3 + $0x58] sm:$0xff] }
 0x2fd   : > { %v9505_v36 = vadd.f32 %v3041_v55, %v2294_v8  ;;  %7443 = vmatprep.mubr.msk.bf16.mxu0 %vm7977_vm0, %v10410_v4  ;;  %v3500_v50 = vadd.f32 %v3285_v3, %v10415_v1  ;;  %v7239_v55 = vpop.f32.mrf.mxu1  ;;  %v5521_v49 = vld [vmem:[%s10358_s3 + $0x60] sm:$0xff] }
 0x2fe   : > { %v7233_v18 = vpop.f32.mrf.mxu0  ;;  %5620 = vperm.xlu1 %7721, %v5520_v33   ;;  %5625 = vperm.xlu0 %7720, %v5521_v49   ;;  %v3161_v62 = vsel %vm1268_vm3, %v3158_v16, %v3160_v20  ;;  %v7912_v16 = vld [vmem:[%s8069_s7 + $0xe4] ss:$0 sps:$4 sm:$0x11]  }
 0x2ff   : > { %10414 = vst [vmem:[#allocation10_spill] sm:$0xff] %v9505_v36  ;;  %v9517_v36 = vld [vmem:[%s8069_s7 + $0x1c] sm:$0xf]  ;;  %v3288_v3 = vpop.f32.mrf.mxu1  ;;  %v9547_v49 = vld [vmem:[%s8069_s7 + $0x20] sm:$0xff]  }
 0x300   : > { %v3044_v8 = vpop.f32.mrf.mxu0  ;;  %v3501_v1 = vadd.f32 %v3288_v3, %v9084_v57  ;;  %v6342_v55 = vcombine.low %v4136_v38, %v9517_v36  ;;  %v3162_v38 = vrot.slane %v7912_v16, 1 }
 0x301   : > { %v9525_v59 = vadd.f32 %v3044_v8, %v2295_v58  ;;  %v7240_v42 = vpop.f32.mrf.mxu1  ;;  %v5522_v58 = vld [vmem:[%s10358_s3 + $0x68] sm:$0xff]  ;;  %v5523_v8 = vld [vmem:[%s10358_s3 + $0x70] sm:$0xff] }
 0x302   : > { %v7234_v18 = vpop.f32.mrf.mxu0  ;;  %5630 = vperm.xlu1 %7721, %v5522_v58   ;;  %5635 = vperm.xlu0 %7720, %v5523_v8   ;;  %v5524_v58 = vld [vmem:[%s10358_s3 + $0x78] sm:$0xff] }
 0x303   : > { %10416 = vst [vmem:[#allocation11_spill] sm:$0xff] %v9525_v59  ;;  %v3293_v57 = vpop.f32.mrf.mxu1  ;;  %7338 = vmatmul.mubr.msk.bf16.gmra.mxu1 %vm621_vm2, %v3161_v62  ;;  %v7841_v18 = vld [vmem:[%s8069_s7 + $0xe0] sm:$0xff]   ;;  %v4340_v59 = vshll.u32 %v9547_v49, 16 }
 0x304   : > { %v3867_v27 = vpop.f32.mrf.mxu0  ;;  %7444 = vmatmul.mubr.msk.bf16.gmra.mxu0 %vm621_vm2, %v7840_v10  ;;  %v3502_v10 = vadd.f32 %v3293_v57, %v9091_v23  ;;  %7341 = vmatprep.mubr.msk.bf16.mxu1 %vm7977_vm0, %v10410_v4  ;;  %v5525_v62 = vld [vmem:[%s10358_s3 + $0x80] sm:$0xff] }
 0x305   : > { %v9537_v33 = vadd.f32 %v3867_v27, %v3500_v50  ;;  %7447 = vmatprep.mubr.msk.bf16.mxu0 %vm7977_vm0, %v10410_v4  ;;  %v4335_v27 = vshll.u32 %v6342_v55, 16  ;;  %v7243_v50 = vpop.f32.mrf.mxu1 }
 0x306   : > { %v7349_v42 = vpop.f32.mrf.mxu0  ;;  %5640 = vperm.xlu1 %7721, %v5524_v58   ;;  %5645 = vperm.xlu0 %7720, %v5525_v62   ;;  %v4333_v50 = vshrl.u32 %v6342_v55, 16  ;;  %v4942_v55 = vld [vmem:[%s8069_s7 + $0x18] sm:$0xe]  ;;  %v9578_v58 = vld [vmem:[%s8069_s7 + $0x28] sm:$0xff]  }
 0x307   : > { %10417 = vst [vmem:[#allocation12_spill] sm:$0xff] %v9537_v33  ;;  %v3296_v23 = vpop.f32.mrf.mxu1  ;;  %v3163_v42 = vsel %vm1268_vm3, %v3160_v20, %v3162_v38  ;;  %v4337_v33 = vrot.slane %v4335_v27, 1  ;;  %v5527_v20 = vld [vmem:[%s10358_s3 + $0x90] sm:$0xff]  ;;  %v7842_v62 = vld [vmem:[%s8069_s7 + $0xe8] sm:$0xff]  }
 0x308   : > { %v3870_v3 = vpop.f32.mrf.mxu0  ;;  %v3503_v16 = vadd.f32 %v3296_v23, %v9100_v28  ;;  %v5528_v23 = vld [vmem:[%s10358_s3 + $0x98] sm:$0xff] }
 0x309   : > { %v9556_v8 = vadd.f32 %v3870_v3, %v3501_v1  ;;  %v7244_v15 = vpop.f32.mrf.mxu1  ;;  %v5526_v1 = vld [vmem:[%s10358_s3 + $0x88] sm:$0xff]  ;;  %v4338_v3 = vor.u32 %v4337_v33, %v4333_v50 }
 0x30a   : > { %v7350_v57 = vpop.f32.mrf.mxu0  ;;  %5650 = vperm.xlu1 %7721, %v5526_v1   ;;  %5655 = vperm.xlu0 %7720, %v5527_v20   ;;  %v4344_v20 = vshrl.u32 %v9547_v49, 16 }
 0x30b   : > { %v3301_v28 = vpop.f32.mrf.mxu1  ;;  %7342 = vmatmul.mubr.msk.bf16.gmra.mxu1 %vm621_vm2, %v3163_v42  ;;  %v5529_v57 = vld [vmem:[%s10358_s3 + $0xa0] sm:$0xff] }
 0x30c   : > { %v3875_v37 = vpop.f32.mrf.mxu0  ;;  %7448 = vmatmul.mubr.msk.bf16.gmra.mxu0 %vm621_vm2, %v7841_v18  ;;  %v3504_v27 = vadd.f32 %v3301_v28, %v9109_v48  ;;  %7457 = vmatprep.mubr.msk.bf16.mxu1 %vm7977_vm0, %v10410_v4  ;;  %v4342_v18 = vrot.slane %v4340_v59, 1  ;;  %v6400_v48 = vcombine.low %v4942_v55, %v9517_v36  ;;  %v4348_v28 = vshll.u32 %v9578_v58, 16  ;;  %v5530_v36 = vld [vmem:[%s10358_s3 + $0xa8] sm:$0xff] }
 0x30d   : > { %v9568_v38 = vadd.f32 %v3875_v37, %v3502_v10  ;;  %7451 = vmatprep.mubr.msk.bf16.mxu0 %vm7977_vm0, %v10410_v4  ;;  %v7247_v37 = vpop.f32.mrf.mxu1 }
 0x30e   : > { %v7353_v15 = vpop.f32.mrf.mxu0  ;;  %5660 = vperm.xlu1 %7721, %v5528_v23   ;;  %5665 = vperm.xlu0 %7720, %v5529_v57   ;;  %v4343_v1 = vsel %vm394_vm1, %v4338_v3, %v4342_v18  ;;  %v4949_v55 = vrot.slane %v6400_v48, 1  ;;  %v4950_v3 = vrot.slane %v9547_v49, 1  ;;  %v4346_v57 = vor.u32 %v4344_v20, %v4342_v18  ;;  %v5532_v49 = vld [vmem:[%s10358_s3 + $0xb8] sm:$0xff]  ;;  %v5533_v48 = vld [vmem:[%s10358_s3 + $0xc0] sm:$0xff] }
 0x30f   : > { %v3304_v33 = vpop.f32.mrf.mxu1 }
 0x310   : > { %v3878_v10 = vpop.f32.mrf.mxu0  ;;  %v3505_v50 = vadd.f32 %v3304_v33, %v9119_v40  ;;  %v9611_v33 = vld [vmem:[%s8069_s7 + $0x30] sm:$0xff]  }
 0x311   : > { %v9587_v42 = vadd.f32 %v3878_v10, %v3503_v16  ;;  %v7248_v15 = vpop.f32.mrf.mxu1  ;;  %v5531_v16 = vld [vmem:[%s10358_s3 + $0xb0] sm:$0xff] }
 0x312   : > { %v7354_v59 = vpop.f32.mrf.mxu0  ;;  %5670 = vperm.xlu1 %7721, %v5530_v36   ;;  %5675 = vperm.xlu0 %7720, %v5531_v16   ;;  %v4352_v36 = vshrl.u32 %v9578_v58, 16  ;;  %v4356_v16 = vshll.u32 %v9611_v33, 16 }
 0x313   : > { %v3309_v10 = vpop.f32.mrf.mxu1  ;;  %7458 = vmatmul.mubr.msk.bf16.vlgmr.msra.gmra.mxu1 %vm621_vm2, %v4343_v1 }
 0x314   : > { %v3883_v37 = vpop.f32.mrf.mxu0  ;;  %7452 = vmatmul.mubr.msk.bf16.gmra.mxu0 %vm621_vm2, %v7842_v62  ;;  %v3506_v23 = vadd.f32 %v3309_v10, %v9127_v6  ;;  %7461 = vmatprep.mubr.msk.bf16.mxu1 %vm7977_vm0, %v10410_v4  ;;  %v4951_v6 = vsel %vm1268_vm3, %v4949_v55, %v4950_v3  ;;  %v5535_v55 = vld [vmem:[%s10358_s3 + $0xd0] sm:$0xff] }
 0x315   : > { %v9601_v40 = vadd.f32 %v3883_v37, %v3504_v27  ;;  %7567 = vmatprep.mubr.msk.bf16.mxu0 %vm7977_vm0, %v10410_v4  ;;  %v4350_v27 = vrot.slane %v4348_v28, 1  ;;  %v7251_v59 = vpop.f32.mrf.mxu1 }
 0x316   : > { %v7357_v62 = vpop.f32.mrf.mxu0  ;;  %5680 = vperm.xlu1 %7721, %v5532_v49   ;;  %5685 = vperm.xlu0 %7720, %v5533_v48  }
 0x317   : > { %v3312_v37 = vpop.f32.mrf.mxu1  ;;  %v4351_v28 = vsel %vm394_vm1, %v4346_v57, %v4350_v27  ;;  %v4952_v57 = vrot.slane %v9578_v58, 1  ;;  %v4354_v48 = vor.u32 %v4352_v36, %v4350_v27  ;;  %v5536_v58 = vld [vmem:[%s10358_s3 + $0xd8] sm:$0xff] }
 0x318   : > { %v3886_v15 = vpop.f32.mrf.mxu0  ;;  %v3507_v20 = vadd.f32 %v3312_v37, %v9137_v51 }
 0x319   : > { %v9619_v1 = vadd.f32 %v3886_v15, %v3505_v50  ;;  %v7252_v10 = vpop.f32.mrf.mxu1  ;;  %v5534_v50 = vld [vmem:[%s10358_s3 + $0xc8] sm:$0xff] }
 0x31a   : > { %v7358_v18 = vpop.f32.mrf.mxu0  ;;  %5690 = vperm.xlu1 %7721, %v5534_v50   ;;  %5695 = vperm.xlu0 %7720, %v5535_v55   ;;  %v4360_v50 = vshrl.u32 %v9611_v33, 16 }
 0x31b   : > { %v3317_v59 = vpop.f32.mrf.mxu1  ;;  %7462 = vmatmul.mubr.msk.bf16.gmra.mxu1 %vm621_vm2, %v4351_v28  ;;  %v5537_v28 = vld [vmem:[%s10358_s3 + $0xe0] sm:$0xff] }
 0x31c   : > { %v3891_v62 = vpop.f32.mrf.mxu0  ;;  %7568 = vmatmul.mubr.msk.bf16.vlgmr.msra.gmra.mxu0 %vm621_vm2, %v4951_v6  ;;  %v3508_v49 = vadd.f32 %v3317_v59, %v9142_v45  ;;  %7465 = vmatprep.mubr.msk.bf16.mxu1 %vm7977_vm0, %v10410_v4  ;;  %v4358_v6 = vrot.slane %v4356_v16, 1  ;;  %v4953_v45 = vsel %vm1268_vm3, %v4950_v3, %v4952_v57  ;;  %v5538_v3 = vld [vmem:[%s10358_s3 + $0xe8] sm:$0xff] }
 0x31d   : > { %v9633_v51 = vadd.f32 %v3891_v62, %v3506_v23  ;;  %7571 = vmatprep.mubr.msk.bf16.mxu0 %vm7977_vm0, %v10410_v4  ;;  %v9643_v23 = vld [vmem:[%s8069_s7 + $0x38] sm:$0xff]   ;;  %v7255_v37 = vpop.f32.mrf.mxu1 }
 0x31e   : > { %v7361_v15 = vpop.f32.mrf.mxu0  ;;  %5700 = vperm.xlu1 %7721, %v5536_v58   ;;  %5705 = vperm.xlu0 %7720, %v5537_v28   ;;  %v4359_v16 = vsel %vm394_vm1, %v4354_v48, %v4358_v6  ;;  %v4364_v55 = vshll.u32 %v9643_v23, 16  ;;  %v4954_v48 = vrot.slane %v9611_v33, 1  ;;  %v4362_v28 = vor.u32 %v4360_v50, %v4358_v6  ;;  %v5540_v33 = vld [vmem:[%s10358_s3 + $0xf8] sm:$0xff] }
 0x31f   : > { %v3320_v62 = vpop.f32.mrf.mxu1 }
 0x320   : > { %v3894_v18 = vpop.f32.mrf.mxu0  ;;  %v3509_v36 = vadd.f32 %v3320_v62, %v9152_v14 }
 0x321   : > { %v9651_v10 = vadd.f32 %v3894_v18, %v3507_v20  ;;  %v7256_v59 = vpop.f32.mrf.mxu1  ;;  %v5539_v20 = vld [vmem:[%s10358_s3 + $0xf0] sm:$0xff] }
 0x322   : > { %v7362_v27 = vpop.f32.mrf.mxu0  ;;  %5710 = vperm.xlu1 %7721, %v5538_v3   ;;  %5715 = vperm.xlu0 %7720, %v5539_v20   ;;  %v4368_v3 = vshrl.u32 %v9643_v23, 16 }
 0x323   : > { %v3325_v37 = vpop.f32.mrf.mxu1  ;;  %7466 = vmatmul.mubr.msk.bf16.gmra.mxu1 %vm621_vm2, %v4359_v16  ;;  %v5541_v16 = vld [vmem:[%s10358_s3 + $0x100] sm:$0xff] }
 0x324   : > { %v3899_v15 = vpop.f32.mrf.mxu0  ;;  %7572 = vmatmul.mubr.msk.bf16.gmra.mxu0 %vm621_vm2, %v4953_v45  ;;  %v3510_v58 = vadd.f32 %v3325_v37, %v9157_v35  ;;  %7469 = vmatprep.mubr.msk.bf16.mxu1 %vm7977_vm0, %v10410_v4  ;;  %v4366_v45 = vrot.slane %v4364_v55, 1  ;;  %v4955_v35 = vsel %vm1268_vm3, %v4952_v57, %v4954_v48  ;;  %v5542_v57 = vld [vmem:[%s10358_s3 + $0x108] sm:$0xff] }
 0x325   : > { %v9665_v14 = vadd.f32 %v3899_v15, %v3508_v49  ;;  %7575 = vmatprep.mubr.msk.bf16.mxu0 %vm7977_vm0, %v10410_v4  ;;  %v9675_v49 = vld [vmem:[%s8069_s7 + $0x40] sm:$0xff]   ;;  %v7259_v62 = vpop.f32.mrf.mxu1 }
 0x326   : > { %v7365_v18 = vpop.f32.mrf.mxu0  ;;  %5720 = vperm.xlu1 %7721, %v5540_v33   ;;  %5725 = vperm.xlu0 %7720, %v5541_v16   ;;  %v4367_v55 = vsel %vm394_vm1, %v4362_v28, %v4366_v45  ;;  %v4372_v20 = vshll.u32 %v9675_v49, 16  ;;  %v4956_v28 = vrot.slane %v9643_v23, 1  ;;  %v4370_v16 = vor.u32 %v4368_v3, %v4366_v45  ;;  %v5544_v23 = vld [vmem:[%s10358_s3 + $0x118] sm:$0xff] }
 0x327   : > { %v3328_v15 = vpop.f32.mrf.mxu1 }
 0x328   : > { %v3902_v27 = vpop.f32.mrf.mxu0  ;;  %v3511_v50 = vadd.f32 %v3328_v15, %v9167_v54 }
 0x329   : > { %v9683_v59 = vadd.f32 %v3902_v27, %v3509_v36  ;;  %v7260_v37 = vpop.f32.mrf.mxu1  ;;  %v5543_v36 = vld [vmem:[%s10358_s3 + $0x110] sm:$0xff] }
 0x32a   : > { %v7366_v6 = vpop.f32.mrf.mxu0  ;;  %5730 = vperm.xlu1 %7721, %v5542_v57   ;;  %5735 = vperm.xlu0 %7720, %v5543_v36   ;;  %v4376_v57 = vshrl.u32 %v9675_v49, 16 }
 0x32b   : > { %v3333_v62 = vpop.f32.mrf.mxu1  ;;  %7470 = vmatmul.mubr.msk.bf16.gmra.mxu1 %vm621_vm2, %v4367_v55  ;;  %v5545_v55 = vld [vmem:[%s10358_s3 + $0x120] sm:$0xff] }
 0x32c   : > { %v3907_v18 = vpop.f32.mrf.mxu0  ;;  %7576 = vmatmul.mubr.msk.bf16.gmra.mxu0 %vm621_vm2, %v4955_v35  ;;  %v3512_v33 = vadd.f32 %v3333_v62, %v9172_v7  ;;  %7473 = vmatprep.mubr.msk.bf16.mxu1 %vm7977_vm0, %v10410_v4  ;;  %v4374_v35 = vrot.slane %v4372_v20, 1  ;;  %v4957_v7 = vsel %vm1268_vm3, %v4954_v48, %v4956_v28  ;;  %v5546_v48 = vld [vmem:[%s10358_s3 + $0x128] sm:$0xff] }
 0x32d   : > { %v9697_v54 = vadd.f32 %v3907_v18, %v3510_v58  ;;  %7579 = vmatprep.mubr.msk.bf16.mxu0 %vm7977_vm0, %v10410_v4  ;;  %v9707_v58 = vld [vmem:[%s8069_s7 + $0x48] sm:$0xff]   ;;  %v7263_v15 = vpop.f32.mrf.mxu1 }
 0x32e   : > { %v7369_v27 = vpop.f32.mrf.mxu0  ;;  %5740 = vperm.xlu1 %7721, %v5544_v23   ;;  %5745 = vperm.xlu0 %7720, %v5545_v55   ;;  %v4375_v20 = vsel %vm394_vm1, %v4370_v16, %v4374_v35  ;;  %v4380_v36 = vshll.u32 %v9707_v58, 16  ;;  %v4958_v16 = vrot.slane %v9675_v49, 1  ;;  %v4378_v55 = vor.u32 %v4376_v57, %v4374_v35  ;;  %v5548_v49 = vld [vmem:[%s10358_s3 + $0x138] sm:$0xff] }
 0x32f   : > { %v3336_v18 = vpop.f32.mrf.mxu1 }
 0x330   : > { %v3910_v6 = vpop.f32.mrf.mxu0  ;;  %v3513_v3 = vadd.f32 %v3336_v18, %v9182_v11 }
 0x331   : > { %v9715_v37 = vadd.f32 %v3910_v6, %v3511_v50  ;;  %v7264_v62 = vpop.f32.mrf.mxu1  ;;  %v5547_v50 = vld [vmem:[%s10358_s3 + $0x130] sm:$0xff] }
 0x332   : > { %v7370_v45 = vpop.f32.mrf.mxu0  ;;  %5750 = vperm.xlu1 %7721, %v5546_v48   ;;  %5755 = vperm.xlu0 %7720, %v5547_v50   ;;  %v4384_v48 = vshrl.u32 %v9707_v58, 16 }
 0x333   : > { %v3341_v15 = vpop.f32.mrf.mxu1  ;;  %7474 = vmatmul.mubr.msk.bf16.gmra.mxu1 %vm621_vm2, %v4375_v20  ;;  %v5549_v20 = vld [vmem:[%s10358_s3 + $0x140] sm:$0xff] }
 0x334   : > { %v3915_v27 = vpop.f32.mrf.mxu0  ;;  %7580 = vmatmul.mubr.msk.bf16.gmra.mxu0 %vm621_vm2, %v4957_v7  ;;  %v3514_v23 = vadd.f32 %v3341_v15, %v9187_v2  ;;  %7477 = vmatprep.mubr.msk.bf16.mxu1 %vm7977_vm0, %v10410_v4  ;;  %v4382_v7 = vrot.slane %v4380_v36, 1  ;;  %v4959_v2 = vsel %vm1268_vm3, %v4956_v28, %v4958_v16  ;;  %v5550_v28 = vld [vmem:[%s10358_s3 + $0x148] sm:$0xff] }
 0x335   : > { %v9729_v11 = vadd.f32 %v3915_v27, %v3512_v33  ;;  %7583 = vmatprep.mubr.msk.bf16.mxu0 %vm7977_vm0, %v10410_v4  ;;  %v9739_v33 = vld [vmem:[%s8069_s7 + $0x50] sm:$0xff]   ;;  %v7267_v18 = vpop.f32.mrf.mxu1 }
 0x336   : > { %v7373_v6 = vpop.f32.mrf.mxu0  ;;  %5760 = vperm.xlu1 %7721, %v5548_v49   ;;  %5765 = vperm.xlu0 %7720, %v5549_v20   ;;  %v4383_v36 = vsel %vm394_vm1, %v4378_v55, %v4382_v7  ;;  %v4388_v50 = vshll.u32 %v9739_v33, 16  ;;  %v4960_v55 = vrot.slane %v9707_v58, 1  ;;  %v4386_v20 = vor.u32 %v4384_v48, %v4382_v7  ;;  %v5552_v58 = vld [vmem:[%s10358_s3 + $0x158] sm:$0xff] }
 0x337   : > { %v3344_v27 = vpop.f32.mrf.mxu1 }
 0x338   : > { %v3918_v45 = vpop.f32.mrf.mxu0  ;;  %v3515_v57 = vadd.f32 %v3344_v27, %v9197_v60 }
 0x339   : > { %v9747_v62 = vadd.f32 %v3918_v45, %v3513_v3  ;;  %v7268_v15 = vpop.f32.mrf.mxu1  ;;  %v5551_v3 = vld [vmem:[%s10358_s3 + $0x150] sm:$0xff] }
 0x33a   : > { %v7374_v35 = vpop.f32.mrf.mxu0  ;;  %5770 = vperm.xlu1 %7721, %v5550_v28   ;;  %5775 = vperm.xlu0 %7720, %v5551_v3   ;;  %v4392_v28 = vshrl.u32 %v9739_v33, 16 }
 0x33b   : > { %v3349_v18 = vpop.f32.mrf.mxu1  ;;  %7478 = vmatmul.mubr.msk.bf16.gmra.mxu1 %vm621_vm2, %v4383_v36  ;;  %v5553_v36 = vld [vmem:[%s10358_s3 + $0x160] sm:$0xff] }
 0x33c   : > { %v3923_v6 = vpop.f32.mrf.mxu0  ;;  %7584 = vmatmul.mubr.msk.bf16.gmra.mxu0 %vm621_vm2, %v4959_v2  ;;  %v3516_v49 = vadd.f32 %v3349_v18, %v9202_v17  ;;  %7481 = vmatprep.mubr.msk.bf16.mxu1 %vm7977_vm0, %v10410_v4  ;;  %v4390_v2 = vrot.slane %v4388_v50, 1  ;;  %v4961_v17 = vsel %vm1268_vm3, %v4958_v16, %v4960_v55  ;;  %v5554_v16 = vld [vmem:[%s10358_s3 + $0x168] sm:$0xff] }
 0x33d   : > { %v9761_v60 = vadd.f32 %v3923_v6, %v3514_v23  ;;  %7587 = vmatprep.mubr.msk.bf16.mxu0 %vm7977_vm0, %v10410_v4  ;;  %v9771_v23 = vld [vmem:[%s8069_s7 + $0x58] sm:$0xff]   ;;  %v7271_v27 = vpop.f32.mrf.mxu1 }
 0x33e   : > { %v7377_v45 = vpop.f32.mrf.mxu0  ;;  %5780 = vperm.xlu1 %7721, %v5552_v58   ;;  %5785 = vperm.xlu0 %7720, %v5553_v36   ;;  %v4391_v50 = vsel %vm394_vm1, %v4386_v20, %v4390_v2  ;;  %v4396_v3 = vshll.u32 %v9771_v23, 16  ;;  %v4962_v20 = vrot.slane %v9739_v33, 1  ;;  %v4394_v36 = vor.u32 %v4392_v28, %v4390_v2  ;;  %v5556_v33 = vld [vmem:[%s10358_s3 + $0x178] sm:$0xff] }
 0x33f   : > { %v3352_v6 = vpop.f32.mrf.mxu1 }
 0x340   : > { %v3926_v35 = vpop.f32.mrf.mxu0  ;;  %v3517_v48 = vadd.f32 %v3352_v6, %v9212_v63 }
 0x341   : > { %v9779_v15 = vadd.f32 %v3926_v35, %v3515_v57  ;;  %v7272_v18 = vpop.f32.mrf.mxu1  ;;  %v5555_v57 = vld [vmem:[%s10358_s3 + $0x170] sm:$0xff] }
 0x342   : > { %v7378_v7 = vpop.f32.mrf.mxu0  ;;  %5790 = vperm.xlu1 %7721, %v5554_v16   ;;  %5795 = vperm.xlu0 %7720, %v5555_v57   ;;  %v4400_v16 = vshrl.u32 %v9771_v23, 16 }
 0x343   : > { %v3357_v27 = vpop.f32.mrf.mxu1  ;;  %7482 = vmatmul.mubr.msk.bf16.gmra.mxu1 %vm621_vm2, %v4391_v50  ;;  %v5557_v50 = vld [vmem:[%s10358_s3 + $0x180] sm:$0xff] }
 0x344   : > { %v3931_v45 = vpop.f32.mrf.mxu0  ;;  %7588 = vmatmul.mubr.msk.bf16.gmra.mxu0 %vm621_vm2, %v4961_v17  ;;  %v3518_v58 = vadd.f32 %v3357_v27, %v9217_v32  ;;  %7485 = vmatprep.mubr.msk.bf16.mxu1 %vm7977_vm0, %v10410_v4  ;;  %v4398_v17 = vrot.slane %v4396_v3, 1  ;;  %v4963_v32 = vsel %vm1268_vm3, %v4960_v55, %v4962_v20  ;;  %v5558_v55 = vld [vmem:[%s10358_s3 + $0x188] sm:$0xff] }
 0x345   : > { %v9793_v63 = vadd.f32 %v3931_v45, %v3516_v49  ;;  %7591 = vmatprep.mubr.msk.bf16.mxu0 %vm7977_vm0, %v10410_v4  ;;  %v9803_v49 = vld [vmem:[%s8069_s7 + $0x60] sm:$0xff]   ;;  %v7275_v6 = vpop.f32.mrf.mxu1 }
 0x346   : > { %v7381_v35 = vpop.f32.mrf.mxu0  ;;  %5800 = vperm.xlu1 %7721, %v5556_v33   ;;  %5805 = vperm.xlu0 %7720, %v5557_v50   ;;  %v4399_v3 = vsel %vm394_vm1, %v4394_v36, %v4398_v17  ;;  %v4404_v57 = vshll.u32 %v9803_v49, 16  ;;  %v4964_v36 = vrot.slane %v9771_v23, 1  ;;  %v4402_v50 = vor.u32 %v4400_v16, %v4398_v17  ;;  %v5560_v23 = vld [vmem:[%s10358_s3 + $0x198] sm:$0xff] }
 0x347   : > { %v3360_v45 = vpop.f32.mrf.mxu1 }
 0x348   : > { %v3934_v7 = vpop.f32.mrf.mxu0  ;;  %v3519_v28 = vadd.f32 %v3360_v45, %v9227_v29 }
 0x349   : > { %v9811_v18 = vadd.f32 %v3934_v7, %v3517_v48  ;;  %v7276_v27 = vpop.f32.mrf.mxu1  ;;  %v5559_v48 = vld [vmem:[%s10358_s3 + $0x190] sm:$0xff] }
 0x34a   : > { %v7382_v2 = vpop.f32.mrf.mxu0  ;;  %5810 = vperm.xlu1 %7721, %v5558_v55   ;;  %5815 = vperm.xlu0 %7720, %v5559_v48   ;;  %v4408_v55 = vshrl.u32 %v9803_v49, 16 }
 0x34b   : > { %v3365_v6 = vpop.f32.mrf.mxu1  ;;  %7486 = vmatmul.mubr.msk.bf16.gmra.mxu1 %vm621_vm2, %v4399_v3  ;;  %v5561_v3 = vld [vmem:[%s10358_s3 + $0x1a0] sm:$0xff] }
 0x34c   : > { %v3939_v35 = vpop.f32.mrf.mxu0  ;;  %7592 = vmatmul.mubr.msk.bf16.gmra.mxu0 %vm621_vm2, %v4963_v32  ;;  %v3520_v33 = vadd.f32 %v3365_v6, %v9232_v30  ;;  %7489 = vmatprep.mubr.msk.bf16.mxu1 %vm7977_vm0, %v10410_v4  ;;  %v4406_v32 = vrot.slane %v4404_v57, 1  ;;  %v4965_v30 = vsel %vm1268_vm3, %v4962_v20, %v4964_v36  ;;  %v5562_v20 = vld [vmem:[%s10358_s3 + $0x1a8] sm:$0xff] }
 0x34d   : > { %v9825_v29 = vadd.f32 %v3939_v35, %v3518_v58  ;;  %7595 = vmatprep.mubr.msk.bf16.mxu0 %vm7977_vm0, %v10410_v4  ;;  %v9835_v58 = vld [vmem:[%s8069_s7 + $0x68] sm:$0xff]   ;;  %v7279_v45 = vpop.f32.mrf.mxu1 }
 0x34e   : > { %v7385_v7 = vpop.f32.mrf.mxu0  ;;  %5820 = vperm.xlu1 %7721, %v5560_v23   ;;  %5825 = vperm.xlu0 %7720, %v5561_v3   ;;  %v4407_v57 = vsel %vm394_vm1, %v4402_v50, %v4406_v32  ;;  %v4412_v48 = vshll.u32 %v9835_v58, 16  ;;  %v4410_v23 = vor.u32 %v4408_v55, %v4406_v32 }
 0x34f   : > { %v3368_v35 = vpop.f32.mrf.mxu1 }
 0x350   : > { %v3942_v2 = vpop.f32.mrf.mxu0  ;;  %v3521_v16 = vadd.f32 %v3368_v35, %v9242_v24  ;;  %v4966_v24 = vrot.slane %v9803_v49, 1  ;;  %v4414_v3 = vrot.slane %v4412_v48, 1 }
 0x351   : > { %v9843_v27 = vadd.f32 %v3942_v2, %v3519_v28  ;;  %v7280_v6 = vpop.f32.mrf.mxu1 }
 0x352   : > { %v7386_v17 = vpop.f32.mrf.mxu0  ;;  %5830 = vperm.xlu1 %7721, %v5562_v20   ;;  %v4967_v49 = vsel %vm1268_vm3, %v4964_v36, %v4966_v24  ;;  %v4415_v20 = vsel %vm394_vm1, %v4410_v23, %v4414_v3  ;;  %v4968_v36 = vrot.slane %v9835_v58, 1 }
 0x353   : > { %v3373_v50 = vpop.f32.mrf.mxu1  ;;  %7490 = vmatmul.mubr.msk.bf16.gmra.mxu1 %vm621_vm2, %v4407_v57 }
 0x354   : > { %v3947_v7 = vpop.f32.mrf.mxu0  ;;  %7596 = vmatmul.mubr.msk.bf16.gmra.mxu0 %vm621_vm2, %v4965_v30  ;;  %v3522_v2 = vadd.f32 %v3373_v50, %v9247_v52  ;;  %7493 = vmatprep.mubr.msk.bf16.mxu1 %vm7977_vm0, %v10410_v4  ;;  %v9864_v30 = vld [vmem:[%s8069_s7 + $0x70] sm:$0xff]   ;;  %v4416_v52 = vshrl.u32 %v9835_v58, 16 }
 0x355   : > { %v9854_v28 = vadd.f32 %v3947_v7, %v3520_v33  ;;  %7599 = vmatprep.mubr.msk.bf16.mxu0 %vm7977_vm0, %v10410_v4  ;;  %v7283_v33 = vpop.f32.mrf.mxu1  ;;  %v4420_v32 = vshll.u32 %v9864_v30, 16 }
 0x356   : > { %v7389_v45 = vpop.f32.mrf.mxu0  ;;  %v4418_v23 = vor.u32 %v4416_v52, %v4414_v3 }
 0x357   : > { %v3376_v6 = vpop.f32.mrf.mxu1  ;;  %v4422_v33 = vrot.slane %v4420_v32, 1 }
 0x358   : > { %v3950_v35 = vpop.f32.mrf.mxu0  ;;  %v3523_v57 = vadd.f32 %v3376_v6, %v9257_v31 }
 0x359   : > { %v9866_v17 = vadd.f32 %v3950_v35, %v3521_v16  ;;  %v7284_v55 = vpop.f32.mrf.mxu1  ;;  %v9884_v35 = vld [vmem:[%s8069_s7 + $0x78] sm:$0xff]  }
 0x35a   : > { %v7390_v7 = vpop.f32.mrf.mxu0  ;;  %v4428_v3 = vshll.u32 %v9884_v35, 16 }
 0x35b   : > { %v3381_v16 = vpop.f32.mrf.mxu1  ;;  %7494 = vmatmul.mubr.msk.bf16.gmra.mxu1 %vm621_vm2, %v4415_v20  ;;  %v4969_v7 = vsel %vm1268_vm3, %v4966_v24, %v4968_v36  ;;  %v4970_v24 = vrot.slane %v9864_v30, 1 }
 0x35c   : > { %v3955_v48 = vpop.f32.mrf.mxu0  ;;  %7600 = vmatmul.mubr.msk.bf16.gmra.mxu0 %vm621_vm2, %v4967_v49  ;;  %v3524_v45 = vadd.f32 %v3381_v16, %v9262_v13  ;;  %7497 = vmatprep.mubr.msk.bf16.mxu1 %vm7977_vm0, %v10410_v4  ;;  %v4424_v13 = vshrl.u32 %v9864_v30, 16 }
 0x35d   : > { %v9874_v50 = vadd.f32 %v3955_v48, %v3522_v2  ;;  %7603 = vmatprep.mubr.msk.bf16.mxu0 %vm7977_vm0, %v10410_v4  ;;  %v7287_v2 = vpop.f32.mrf.mxu1  ;;  %v4423_v48 = vsel %vm394_vm1, %v4418_v23, %v4422_v33 }
 0x35e   : > { %v7393_v31 = vpop.f32.mrf.mxu0  ;;  %v4426_v23 = vor.u32 %v4424_v13, %v4422_v33  ;;  %v4430_v2 = vrot.slane %v4428_v3, 1 }
 0x35f   : > { %v3384_v58 = vpop.f32.mrf.mxu1 }
 0x360   : > { %v3958_v49 = vpop.f32.mrf.mxu0  ;;  %v3525_v20 = vadd.f32 %v3384_v58, %v9272_v47 }
 0x361   : > { %v9886_v6 = vadd.f32 %v3958_v49, %v3523_v57  ;;  %v7288_v52 = vpop.f32.mrf.mxu1  ;;  %v9904_v49 = vld [vmem:[%s8069_s7 + $0x80] sm:$0xff]  }
 0x362   : > { %v7394_v55 = vpop.f32.mrf.mxu0  ;;  %v4436_v33 = vshll.u32 %v9904_v49, 16 }
 0x363   : > { %v3389_v57 = vpop.f32.mrf.mxu1  ;;  %7498 = vmatmul.mubr.msk.bf16.gmra.mxu1 %vm621_vm2, %v4423_v48  ;;  %v4971_v55 = vsel %vm1268_vm3, %v4968_v36, %v4970_v24  ;;  %v4972_v36 = vrot.slane %v9884_v35, 1 }
 0x364   : > { %v3963_v32 = vpop.f32.mrf.mxu0  ;;  %7604 = vmatmul.mubr.msk.bf16.gmra.mxu0 %vm621_vm2, %v4969_v7  ;;  %v3526_v31 = vadd.f32 %v3389_v57, %v9277_v26  ;;  %7501 = vmatprep.mubr.msk.bf16.mxu1 %vm7977_vm0, %v10410_v4  ;;  %v4432_v26 = vshrl.u32 %v9884_v35, 16 }
 0x365   : > { %v9894_v16 = vadd.f32 %v3963_v32, %v3524_v45  ;;  %7607 = vmatprep.mubr.msk.bf16.mxu0 %vm7977_vm0, %v10410_v4  ;;  %v7291_v45 = vpop.f32.mrf.mxu1  ;;  %v4431_v32 = vsel %vm394_vm1, %v4426_v23, %v4430_v2 }
 0x366   : > { %v7397_v47 = vpop.f32.mrf.mxu0  ;;  %v4434_v23 = vor.u32 %v4432_v26, %v4430_v2  ;;  %v4438_v45 = vrot.slane %v4436_v33, 1 }
 0x367   : > { %v3392_v30 = vpop.f32.mrf.mxu1 }
 0x368   : > { %v3966_v7 = vpop.f32.mrf.mxu0  ;;  %v3527_v48 = vadd.f32 %v3392_v30, %v9287_v19 }
 0x369   : > { %v9906_v58 = vadd.f32 %v3966_v7, %v3525_v20  ;;  %v7292_v13 = vpop.f32.mrf.mxu1  ;;  %v9924_v7 = vld [vmem:[%s8069_s7 + $0x88] sm:$0xff]  }
 0x36a   : > { %v7398_v52 = vpop.f32.mrf.mxu0  ;;  %v4444_v2 = vshll.u32 %v9924_v7, 16 }
 0x36b   : > { %v3397_v20 = vpop.f32.mrf.mxu1  ;;  %7502 = vmatmul.mubr.msk.bf16.gmra.mxu1 %vm621_vm2, %v4431_v32  ;;  %v4973_v52 = vsel %vm1268_vm3, %v4970_v24, %v4972_v36  ;;  %v4974_v24 = vrot.slane %v9904_v49, 1 }
 0x36c   : > { %v3971_v3 = vpop.f32.mrf.mxu0  ;;  %7608 = vmatmul.mubr.msk.bf16.gmra.mxu0 %vm621_vm2, %v4971_v55  ;;  %v3528_v47 = vadd.f32 %v3397_v20, %v9292_v46  ;;  %7505 = vmatprep.mubr.msk.bf16.mxu1 %vm7977_vm0, %v10410_v4  ;;  %v4440_v46 = vshrl.u32 %v9904_v49, 16 }
 0x36d   : > { %v9914_v57 = vadd.f32 %v3971_v3, %v3526_v31  ;;  %7611 = vmatprep.mubr.msk.bf16.mxu0 %vm7977_vm0, %v10410_v4  ;;  %v7295_v31 = vpop.f32.mrf.mxu1  ;;  %v4439_v3 = vsel %vm394_vm1, %v4434_v23, %v4438_v45 }
 0x36e   : > { %v7401_v19 = vpop.f32.mrf.mxu0  ;;  %v4442_v23 = vor.u32 %v4440_v46, %v4438_v45  ;;  %v4446_v31 = vrot.slane %v4444_v2, 1 }
 0x36f   : > { %v3400_v35 = vpop.f32.mrf.mxu1 }
 0x370   : > { %v3974_v55 = vpop.f32.mrf.mxu0  ;;  %v3529_v32 = vadd.f32 %v3400_v35, %v9302_v61 }
 0x371   : > { %v9926_v30 = vadd.f32 %v3974_v55, %v3527_v48  ;;  %v7296_v26 = vpop.f32.mrf.mxu1  ;;  %v9944_v55 = vld [vmem:[%s8069_s7 + $0x90] sm:$0xff]  }
 0x372   : > { %v7402_v13 = vpop.f32.mrf.mxu0  ;;  %v4452_v45 = vshll.u32 %v9944_v55, 16 }
 0x373   : > { %v3405_v48 = vpop.f32.mrf.mxu1  ;;  %7506 = vmatmul.mubr.msk.bf16.gmra.mxu1 %vm621_vm2, %v4439_v3  ;;  %v4975_v13 = vsel %vm1268_vm3, %v4972_v36, %v4974_v24  ;;  %v4976_v36 = vrot.slane %v9924_v7, 1 }
 0x374   : > { %v3979_v33 = vpop.f32.mrf.mxu0  ;;  %7612 = vmatmul.mubr.msk.bf16.gmra.mxu0 %vm621_vm2, %v4973_v52  ;;  %v3530_v19 = vadd.f32 %v3405_v48, %v9307_v21  ;;  %7509 = vmatprep.mubr.msk.bf16.mxu1 %vm7977_vm0, %v10410_v4  ;;  %v4448_v21 = vshrl.u32 %v9924_v7, 16 }
 0x375   : > { %v9934_v20 = vadd.f32 %v3979_v33, %v3528_v47  ;;  %7615 = vmatprep.mubr.msk.bf16.mxu0 %vm7977_vm0, %v10410_v4  ;;  %v7299_v47 = vpop.f32.mrf.mxu1  ;;  %v4447_v33 = vsel %vm394_vm1, %v4442_v23, %v4446_v31 }
 0x376   : > { %v7405_v61 = vpop.f32.mrf.mxu0  ;;  %v4450_v23 = vor.u32 %v4448_v21, %v4446_v31  ;;  %v4454_v47 = vrot.slane %v4452_v45, 1 }
 0x377   : > { %v3408_v49 = vpop.f32.mrf.mxu1 }
 0x378   : > { %v3982_v52 = vpop.f32.mrf.mxu0  ;;  %v3531_v3 = vadd.f32 %v3408_v49, %v9317_v9 }
 0x379   : > { %v9946_v35 = vadd.f32 %v3982_v52, %v3529_v32  ;;  %v7300_v46 = vpop.f32.mrf.mxu1  ;;  %v9964_v52 = vld [vmem:[%s8069_s7 + $0x98] sm:$0xff]  }
 0x37a   : > { %v7406_v26 = vpop.f32.mrf.mxu0  ;;  %v4460_v31 = vshll.u32 %v9964_v52, 16 }
 0x37b   : > { %v3413_v32 = vpop.f32.mrf.mxu1  ;;  %7510 = vmatmul.mubr.msk.bf16.gmra.mxu1 %vm621_vm2, %v4447_v33  ;;  %v4977_v26 = vsel %vm1268_vm3, %v4974_v24, %v4976_v36  ;;  %v4978_v24 = vrot.slane %v9944_v55, 1 }
 0x37c   : > { %v3987_v2 = vpop.f32.mrf.mxu0  ;;  %7616 = vmatmul.mubr.msk.bf16.gmra.mxu0 %vm621_vm2, %v4975_v13  ;;  %v3532_v61 = vadd.f32 %v3413_v32, %v9322_v43  ;;  %7513 = vmatprep.mubr.msk.bf16.mxu1 %vm7977_vm0, %v10410_v4  ;;  %v4456_v43 = vshrl.u32 %v9944_v55, 16 }
 0x37d   : > { %v9954_v48 = vadd.f32 %v3987_v2, %v3530_v19  ;;  %7619 = vmatprep.mubr.msk.bf16.mxu0 %vm7977_vm0, %v10410_v4  ;;  %v7303_v19 = vpop.f32.mrf.mxu1  ;;  %v4455_v2 = vsel %vm394_vm1, %v4450_v23, %v4454_v47 }
 0x37e   : > { %v7409_v9 = vpop.f32.mrf.mxu0  ;;  %v4458_v23 = vor.u32 %v4456_v43, %v4454_v47  ;;  %v4462_v19 = vrot.slane %v4460_v31, 1 }
 0x37f   : > { %v3416_v7 = vpop.f32.mrf.mxu1 }
 0x380   : > { %v3990_v13 = vpop.f32.mrf.mxu0  ;;  %v3533_v33 = vadd.f32 %v3416_v7, %v9332_v22 }
 0x381   : > { %v9966_v49 = vadd.f32 %v3990_v13, %v3531_v3  ;;  %v7304_v21 = vpop.f32.mrf.mxu1  ;;  %v9984_v13 = vld [vmem:[%s8069_s7 + $0xa0] sm:$0xff]  }
 0x382   : > { %v7410_v46 = vpop.f32.mrf.mxu0  ;;  %v4468_v47 = vshll.u32 %v9984_v13, 16 }
 0x383   : > { %v3421_v3 = vpop.f32.mrf.mxu1  ;;  %7514 = vmatmul.mubr.msk.bf16.gmra.mxu1 %vm621_vm2, %v4455_v2  ;;  %v4979_v46 = vsel %vm1268_vm3, %v4976_v36, %v4978_v24  ;;  %v4980_v36 = vrot.slane %v9964_v52, 1 }
 0x384   : > { %v3995_v45 = vpop.f32.mrf.mxu0  ;;  %7620 = vmatmul.mubr.msk.bf16.gmra.mxu0 %vm621_vm2, %v4977_v26  ;;  %v3534_v9 = vadd.f32 %v3421_v3, %v9337_v41  ;;  %7517 = vmatprep.mubr.msk.bf16.mxu1 %vm7977_vm0, %v10410_v4  ;;  %v4464_v41 = vshrl.u32 %v9964_v52, 16 }
 0x385   : > { %v9974_v32 = vadd.f32 %v3995_v45, %v3532_v61  ;;  %7623 = vmatprep.mubr.msk.bf16.mxu0 %vm7977_vm0, %v10410_v4  ;;  %v7307_v61 = vpop.f32.mrf.mxu1  ;;  %v4463_v45 = vsel %vm394_vm1, %v4458_v23, %v4462_v19 }
 0x386   : > { %v7413_v22 = vpop.f32.mrf.mxu0  ;;  %v4466_v23 = vor.u32 %v4464_v41, %v4462_v19  ;;  %v4470_v61 = vrot.slane %v4468_v47, 1 }
 0x387   : > { %v3424_v55 = vpop.f32.mrf.mxu1 }
 0x388   : > { %v3998_v26 = vpop.f32.mrf.mxu0  ;;  %v3535_v2 = vadd.f32 %v3424_v55, %v9347_v5 }
 0x389   : > { %v9986_v7 = vadd.f32 %v3998_v26, %v3533_v33  ;;  %v7308_v43 = vpop.f32.mrf.mxu1  ;;  %v10004_v26 = vld [vmem:[%s8069_s7 + $0xa8] sm:$0xff]  }
 0x38a   : > { %v7414_v21 = vpop.f32.mrf.mxu0  ;;  %v4476_v19 = vshll.u32 %v10004_v26, 16 }
 0x38b   : > { %v3429_v33 = vpop.f32.mrf.mxu1  ;;  %7518 = vmatmul.mubr.msk.bf16.gmra.mxu1 %vm621_vm2, %v4463_v45  ;;  %v4981_v21 = vsel %vm1268_vm3, %v4978_v24, %v4980_v36  ;;  %v4982_v24 = vrot.slane %v9984_v13, 1 }
 0x38c   : > { %v4003_v31 = vpop.f32.mrf.mxu0  ;;  %7624 = vmatmul.mubr.msk.bf16.gmra.mxu0 %vm621_vm2, %v4979_v46  ;;  %v3536_v22 = vadd.f32 %v3429_v33, %v9352_v34  ;;  %7521 = vmatprep.mubr.msk.bf16.mxu1 %vm7977_vm0, %v10410_v4  ;;  %v4472_v34 = vshrl.u32 %v9984_v13, 16 }
 0x38d   : > { %v9994_v3 = vadd.f32 %v4003_v31, %v3534_v9  ;;  %7627 = vmatprep.mubr.msk.bf16.mxu0 %vm7977_vm0, %v10410_v4  ;;  %v7311_v9 = vpop.f32.mrf.mxu1  ;;  %v4471_v31 = vsel %vm394_vm1, %v4466_v23, %v4470_v61 }
 0x38e   : > { %v7417_v5 = vpop.f32.mrf.mxu0  ;;  %v4474_v23 = vor.u32 %v4472_v34, %v4470_v61  ;;  %v4478_v9 = vrot.slane %v4476_v19, 1 }
 0x38f   : > { %v3432_v52 = vpop.f32.mrf.mxu1 }
 0x390   : > { %v4006_v46 = vpop.f32.mrf.mxu0  ;;  %v3537_v45 = vadd.f32 %v3432_v52, %v9362_v56 }
 0x391   : > { %v10006_v55 = vadd.f32 %v4006_v46, %v3535_v2  ;;  %v7312_v41 = vpop.f32.mrf.mxu1  ;;  %v10024_v46 = vld [vmem:[%s8069_s7 + $0xb0] sm:$0xff]  }
 0x392   : > { %v7418_v43 = vpop.f32.mrf.mxu0  ;;  %v4484_v61 = vshll.u32 %v10024_v46, 16 }
 0x393   : > { %v3437_v2 = vpop.f32.mrf.mxu1  ;;  %7522 = vmatmul.mubr.msk.bf16.gmra.mxu1 %vm621_vm2, %v4471_v31  ;;  %v4983_v43 = vsel %vm1268_vm3, %v4980_v36, %v4982_v24  ;;  %v4984_v36 = vrot.slane %v10004_v26, 1 }
 0x394   : > { %v4011_v47 = vpop.f32.mrf.mxu0  ;;  %7628 = vmatmul.mubr.msk.bf16.gmra.mxu0 %vm621_vm2, %v4981_v21  ;;  %v3538_v5 = vadd.f32 %v3437_v2, %v9367_v39  ;;  %7525 = vmatprep.mubr.msk.bf16.mxu1 %vm7977_vm0, %v10410_v4  ;;  %v4480_v39 = vshrl.u32 %v10004_v26, 16 }
 0x395   : > { %v10014_v33 = vadd.f32 %v4011_v47, %v3536_v22  ;;  %7631 = vmatprep.mubr.msk.bf16.mxu0 %vm7977_vm0, %v10410_v4  ;;  %v7315_v22 = vpop.f32.mrf.mxu1  ;;  %v4479_v47 = vsel %vm394_vm1, %v4474_v23, %v4478_v9 }
 0x396   : > { %v7421_v56 = vpop.f32.mrf.mxu0  ;;  %v4482_v23 = vor.u32 %v4480_v39, %v4478_v9  ;;  %v4486_v22 = vrot.slane %v4484_v61, 1 }
 0x397   : > { %v3440_v13 = vpop.f32.mrf.mxu1 }
 0x398   : > { %v4014_v21 = vpop.f32.mrf.mxu0  ;;  %v3539_v31 = vadd.f32 %v3440_v13, %v9377_v44 }
 0x399   : > { %v10026_v52 = vadd.f32 %v4014_v21, %v3537_v45  ;;  %v7316_v34 = vpop.f32.mrf.mxu1  ;;  %v10044_v21 = vld [vmem:[%s8069_s7 + $0xb8] sm:$0xff]  }
 0x39a   : > { %v7422_v41 = vpop.f32.mrf.mxu0  ;;  %v4492_v9 = vshll.u32 %v10044_v21, 16 }
 0x39b   : > { %v3445_v45 = vpop.f32.mrf.mxu1  ;;  %7526 = vmatmul.mubr.msk.bf16.gmra.mxu1 %vm621_vm2, %v4479_v47  ;;  %v4985_v41 = vsel %vm1268_vm3, %v4982_v24, %v4984_v36  ;;  %v4986_v24 = vrot.slane %v10024_v46, 1 }
 0x39c   : > { %v4019_v19 = vpop.f32.mrf.mxu0  ;;  %7632 = vmatmul.mubr.msk.bf16.gmra.mxu0 %vm621_vm2, %v4983_v43  ;;  %v3540_v56 = vadd.f32 %v3445_v45, %v9382_v53  ;;  %7529 = vmatprep.mubr.msk.bf16.mxu1 %vm7977_vm0, %v10410_v4  ;;  %v4488_v53 = vshrl.u32 %v10024_v46, 16 }
 0x39d   : > { %v10034_v2 = vadd.f32 %v4019_v19, %v3538_v5  ;;  %7635 = vmatprep.mubr.msk.bf16.mxu0 %vm7977_vm0, %v10410_v4  ;;  %v7319_v5 = vpop.f32.mrf.mxu1  ;;  %v4487_v19 = vsel %vm394_vm1, %v4482_v23, %v4486_v22 }
 0x39e   : > { %v7425_v44 = vpop.f32.mrf.mxu0  ;;  %v4490_v23 = vor.u32 %v4488_v53, %v4486_v22  ;;  %v4494_v5 = vrot.slane %v4492_v9, 1 }
 0x39f   : > { %v3448_v26 = vpop.f32.mrf.mxu1 }
 0x3a0   : > { %v4022_v43 = vpop.f32.mrf.mxu0  ;;  %v3541_v47 = vadd.f32 %v3448_v26, %v9392_v12 }
 0x3a1   : > { %v10046_v13 = vadd.f32 %v4022_v43, %v3539_v31  ;;  %v7320_v39 = vpop.f32.mrf.mxu1  ;;  %v10064_v43 = vld [vmem:[%s8069_s7 + $0xc0] sm:$0xff]  }
 0x3a2   : > { %v7426_v34 = vpop.f32.mrf.mxu0  ;;  %v4500_v22 = vshll.u32 %v10064_v43, 16 }
 0x3a3   : > { %v3453_v31 = vpop.f32.mrf.mxu1  ;;  %7530 = vmatmul.mubr.msk.bf16.gmra.mxu1 %vm621_vm2, %v4487_v19  ;;  %v4987_v34 = vsel %vm1268_vm3, %v4984_v36, %v4986_v24  ;;  %v4988_v36 = vrot.slane %v10044_v21, 1 }
 0x3a4   : > { %v4027_v61 = vpop.f32.mrf.mxu0  ;;  %7636 = vmatmul.mubr.msk.bf16.gmra.mxu0 %vm621_vm2, %v4985_v41  ;;  %v3542_v44 = vadd.f32 %v3453_v31, %v9397_v0  ;;  %7533 = vmatprep.mubr.msk.bf16.mxu1 %vm7977_vm0, %v10410_v4  ;;  %v4496_v0 = vshrl.u32 %v10044_v21, 16 }
 0x3a5   : > { %v10054_v45 = vadd.f32 %v4027_v61, %v3540_v56  ;;  %7639 = vmatprep.mubr.msk.bf16.mxu0 %vm7977_vm0, %v10410_v4  ;;  %v7323_v56 = vpop.f32.mrf.mxu1  ;;  %v4495_v61 = vsel %vm394_vm1, %v4490_v23, %v4494_v5 }
 0x3a6   : > { %v7429_v12 = vpop.f32.mrf.mxu0  ;;  %v4498_v56 = vor.u32 %v4496_v0, %v4494_v5 }
 0x3a7   : > { %10418 = vst [vmem:[#allocation13_spill] sm:$0xff] %v10054_v45  ;;  %v3456_v46 = vpop.f32.mrf.mxu1  ;;  %v10421_v12 = vld [vmem:[#allocation14_spill] sm:$0xff] }
 0x3a8   : > { %v4030_v41 = vpop.f32.mrf.mxu0  ;;  %v3543_v19 = vadd.f32 %v3456_v46, %v9407_v25  ;;  %v10084_v46 = vld [vmem:[%s8069_s7 + $0xc8] sm:$0xff]  }
 0x3a9   : > { %v10066_v26 = vadd.f32 %v4030_v41, %v3541_v47  ;;  %v7324_v53 = vpop.f32.mrf.mxu1  ;;  %v4502_v41 = vrot.slane %v4500_v22, 1  ;;  %v4508_v5 = vshll.u32 %v10084_v46, 16 }
 0x3aa   : > { %v7430_v39 = vpop.f32.mrf.mxu0  ;;  %v4989_v53 = vsel %vm1268_vm3, %v4986_v24, %v4988_v36  ;;  %v4990_v24 = vrot.slane %v10064_v43, 1 }
 0x3ab   : > { %10419 = vst [vmem:[#allocation17_spill] sm:$0xff] %v10066_v26  ;;  %v3461_v47 = vpop.f32.mrf.mxu1  ;;  %7534 = vmatmul.mubr.msk.bf16.gmra.mxu1 %vm621_vm2, %v4495_v61 }
 0x3ac   : > { %v4035_v9 = vpop.f32.mrf.mxu0  ;;  %7640 = vmatmul.mubr.msk.bf16.gmra.mxu0 %vm621_vm2, %v4987_v34  ;;  %v3544_v23 = vadd.f32 %v3461_v47, %v10421_v12  ;;  %7537 = vmatprep.mubr.msk.bf16.mxu1 %vm7977_vm0, %v10410_v4  ;;  %v4504_v47 = vshrl.u32 %v10064_v43, 16 }
 0x3ad   : > { %v10074_v31 = vadd.f32 %v4035_v9, %v3542_v44  ;;  %7643 = vmatprep.mubr.msk.bf16.mxu0 %vm7977_vm0, %v10410_v4  ;;  %v7327_v44 = vpop.f32.mrf.mxu1 }
 0x3ae   : > { %v7433_v25 = vpop.f32.mrf.mxu0 }
 0x3af   : > { %10420 = vst [vmem:[#allocation18_spill] sm:$0xff] %v10074_v31  ;;  %v3464_v21 = vpop.f32.mrf.mxu1  ;;  %v10423_v31 = vld [vmem:[#allocation15_spill] sm:$0xff]  ;;  %v4503_v25 = vsel %vm394_vm1, %v4498_v56, %v4502_v41  ;;  %v10425_v56 = vld [vmem:[#allocation16_spill] sm:$0xff] }
 0x3b0   : > { %v4038_v34 = vpop.f32.mrf.mxu0  ;;  %v3545_v61 = vadd.f32 %v3464_v21, %v10423_v31  ;;  %v4510_v21 = vrot.slane %v4508_v5, 1 }
 0x3b1   : > { %v10086_v39 = vadd.f32 %v4038_v34, %v3543_v19  ;;  %v7328_v0 = vpop.f32.mrf.mxu1  ;;  %v4506_v34 = vor.u32 %v4504_v47, %v4502_v41 }
 0x3b2   : > { %v7434_v9 = vpop.f32.mrf.mxu0 }
 0x3b3   : > { %10422 = vst [vmem:[#allocation14_spill] sm:$0xff] %v10086_v39  ;;  %v3469_v19 = vpop.f32.mrf.mxu1  ;;  %7538 = vmatmul.mubr.msk.bf16.gmra.mxu1 %vm621_vm2, %v4503_v25  ;;  %v10104_v9 = vld [vmem:[%s8069_s7 + $0xd0] sm:$0xff]   ;;  %v10427_v39 = vld [vmem:[#allocation5_spill] sm:$0xff] }
 0x3b4   : > { %v4043_v22 = vpop.f32.mrf.mxu0  ;;  %7644 = vmatmul.mubr.msk.bf16.gmra.mxu0 %vm621_vm2, %v4989_v53  ;;  %v3546_v44 = vadd.f32 %v3469_v19, %v10425_v56  ;;  %7541 = vmatprep.mubr.msk.bf16.mxu1 %vm7977_vm0, %v10410_v4  ;;  %v4512_v19 = vshrl.u32 %v10084_v46, 16  ;;  %v4516_v41 = vshll.u32 %v10104_v9, 16 }
 0x3b5   : > { %v10094_v12 = vadd.f32 %v4043_v22, %v3544_v23  ;;  %7647 = vmatprep.mubr.msk.bf16.mxu0 %vm7977_vm0, %v10410_v4  ;;  %v7331_v23 = vpop.f32.mrf.mxu1  ;;  %v4991_v22 = vsel %vm1268_vm3, %v4988_v36, %v4990_v24  ;;  %v4992_v36 = vrot.slane %v10084_v46, 1 }
 0x3b6   : > { %v7437_v31 = vpop.f32.mrf.mxu0  ;;  %v4514_v23 = vor.u32 %v4512_v19, %v4510_v21 }
 0x3b7   : > { %10424 = vst [vmem:[#allocation15_spill] sm:$0xff] %v10094_v12  ;;  %v3472_v43 = vpop.f32.mrf.mxu1  ;;  %v4511_v31 = vsel %vm394_vm1, %v4506_v34, %v4510_v21 }
 0x3b8   : > { %v4046_v53 = vpop.f32.mrf.mxu0  ;;  %v3547_v25 = vadd.f32 %v3472_v43, %v10427_v39  ;;  %v10124_v43 = vld [vmem:[%s8069_s7 + $0xd8] sm:$0xff]  }
 0x3b9   : > { %v10106_v0 = vadd.f32 %v4046_v53, %v3545_v61  ;;  %v7332_v47 = vpop.f32.mrf.mxu1  ;;  %v4518_v53 = vrot.slane %v4516_v41, 1  ;;  %v4524_v21 = vshll.u32 %v10124_v43, 16 }
 0x3ba   : > { %v7438_v12 = vpop.f32.mrf.mxu0 }
 0x3bb   : > { %10426 = vst [vmem:[#allocation16_spill] sm:$0xff] %v10106_v0  ;;  %v3477_v61 = vpop.f32.mrf.mxu1  ;;  %7542 = vmatmul.mubr.msk.bf16.gmra.mxu1 %vm621_vm2, %v4511_v31  ;;  %v10429_v12 = vld [vmem:[#allocation6_spill] sm:$0xff]  ;;  %v10431_v0 = vld [vmem:[#allocation7_spill] sm:$0xff] }
 0x3bc   : > { %v4051_v5 = vpop.f32.mrf.mxu0  ;;  %7648 = vmatmul.mubr.msk.bf16.gmra.mxu0 %vm621_vm2, %v4991_v22  ;;  %v3548_v34 = vadd.f32 %v3477_v61, %v10429_v12  ;;  %7545 = vmatprep.mubr.msk.bf16.mxu1 %vm7977_vm0, %v10410_v4  ;;  %v4520_v61 = vshrl.u32 %v10104_v9, 16 }
 0x3bd   : > { %v10114_v56 = vadd.f32 %v4051_v5, %v3546_v44  ;;  %7651 = vmatprep.mubr.msk.bf16.mxu0 %vm7977_vm0, %v10410_v4  ;;  %v7335_v44 = vpop.f32.mrf.mxu1  ;;  %v4993_v5 = vsel %vm1268_vm3, %v4990_v24, %v4992_v36  ;;  %v4994_v24 = vrot.slane %v10104_v9, 1 }
 0x3be   : > { %v7441_v39 = vpop.f32.mrf.mxu0  ;;  %v4522_v44 = vor.u32 %v4520_v61, %v4518_v53 }
 0x3bf   : > { %10428 = vst [vmem:[#allocation5_spill] sm:$0xff] %v10114_v56  ;;  %v3480_v46 = vpop.f32.mrf.mxu1  ;;  %v4519_v39 = vsel %vm394_vm1, %v4514_v23, %v4518_v53 }
 0x3c0   : > { %v4054_v22 = vpop.f32.mrf.mxu0  ;;  %v3549_v31 = vadd.f32 %v3480_v46, %v10431_v0  ;;  %v10144_v46 = vld [vmem:[%s8069_s7 + $0xe0] sm:$0xff]  }
 0x3c1   : > { %v10126_v47 = vadd.f32 %v4054_v22, %v3547_v25  ;;  %v7336_v19 = vpop.f32.mrf.mxu1  ;;  %v4526_v22 = vrot.slane %v4524_v21, 1  ;;  %v4532_v53 = vshll.u32 %v10144_v46, 16 }
 0x3c2   : > { %v7442_v56 = vpop.f32.mrf.mxu0 }
 0x3c3   : > { %10430 = vst [vmem:[#allocation6_spill] sm:$0xff] %v10126_v47  ;;  %v3485_v25 = vpop.f32.mrf.mxu1  ;;  %7546 = vmatmul.mubr.msk.bf16.gmra.mxu1 %vm621_vm2, %v4519_v39  ;;  %v10433_v56 = vld [vmem:[#allocation8_spill] sm:$0xff]  ;;  %v10435_v47 = vld [vmem:[#allocation9_spill] sm:$0xff] }
 0x3c4   : > { %v4059_v41 = vpop.f32.mrf.mxu0  ;;  %7652 = vmatmul.mubr.msk.bf16.gmra.mxu0 %vm621_vm2, %v4993_v5  ;;  %v3550_v23 = vadd.f32 %v3485_v25, %v10433_v56  ;;  %7549 = vmatprep.mubr.msk.bf16.mxu1 %vm7977_vm0, %v10410_v4  ;;  %v4528_v25 = vshrl.u32 %v10124_v43, 16 }
 0x3c5   : > { %v10134_v12 = vadd.f32 %v4059_v41, %v3548_v34  ;;  %7655 = vmatprep.mubr.msk.bf16.mxu0 %vm7977_vm0, %v10410_v4  ;;  %v7339_v34 = vpop.f32.mrf.mxu1  ;;  %v4995_v41 = vsel %vm1268_vm3, %v4992_v36, %v4994_v24  ;;  %v4996_v36 = vrot.slane %v10124_v43, 1 }
 0x3c6   : > { %v7445_v0 = vpop.f32.mrf.mxu0  ;;  %v4530_v34 = vor.u32 %v4528_v25, %v4526_v22 }
 0x3c7   : > { %10432 = vst [vmem:[#allocation7_spill] sm:$0xff] %v10134_v12  ;;  %v3488_v9 = vpop.f32.mrf.mxu1  ;;  %v4527_v0 = vsel %vm394_vm1, %v4522_v44, %v4526_v22 }
 0x3c8   : > { %v4062_v5 = vpop.f32.mrf.mxu0  ;;  %v3551_v39 = vadd.f32 %v3488_v9, %v10435_v47  ;;  %v10164_v9 = vld [vmem:[%s8069_s7 + $0xe8] sm:$0xff]  }
 0x3c9   : > { %v10146_v19 = vadd.f32 %v4062_v5, %v3549_v31  ;;  %v7340_v61 = vpop.f32.mrf.mxu1  ;;  %v4534_v5 = vrot.slane %v4532_v53, 1  ;;  %v4540_v22 = vshll.u32 %v10164_v9, 16 }
 0x3ca   : > { %v7446_v12 = vpop.f32.mrf.mxu0 }
 0x3cb   : > { %10434 = vst [vmem:[#allocation8_spill] sm:$0xff] %v10146_v19  ;;  %v3493_v31 = vpop.f32.mrf.mxu1  ;;  %7550 = vmatmul.mubr.msk.bf16.gmra.mxu1 %vm621_vm2, %v4527_v0  ;;  %v10437_v12 = vld [vmem:[#allocation10_spill] sm:$0xff]  ;;  %v10439_v19 = vld [vmem:[#allocation11_spill] sm:$0xff] }
 0x3cc   : > { %v4067_v21 = vpop.f32.mrf.mxu0  ;;  %7656 = vmatmul.mubr.msk.bf16.gmra.mxu0 %vm621_vm2, %v4995_v41  ;;  %v3552_v44 = vadd.f32 %v3493_v31, %v10437_v12  ;;  %7553 = vmatprep.mubr.msk.bf16.mxu1 %vm7977_vm0, %v10410_v4  ;;  %v4536_v31 = vshrl.u32 %v10144_v46, 16 }
 0x3cd   : > { %v10154_v56 = vadd.f32 %v4067_v21, %v3550_v23  ;;  %7659 = vmatprep.mubr.msk.bf16.mxu0 %vm7977_vm0, %v10410_v4  ;;  %v7343_v23 = vpop.f32.mrf.mxu1  ;;  %v4997_v21 = vsel %vm1268_vm3, %v4994_v24, %v4996_v36  ;;  %v4998_v24 = vrot.slane %v10144_v46, 1 }
 0x3ce   : > { %v7449_v47 = vpop.f32.mrf.mxu0  ;;  %v4538_v23 = vor.u32 %v4536_v31, %v4534_v5 }
 0x3cf   : > { %10436 = vst [vmem:[#allocation9_spill] sm:$0xff] %v10154_v56  ;;  %v3496_v43 = vpop.f32.mrf.mxu1  ;;  %v4535_v47 = vsel %vm394_vm1, %v4530_v34, %v4534_v5  ;;  %v10193_v5 = vld [vmem:[%s10357_s2] ss:$0 sm:$0xff] }
 0x3d0   : > { %v4070_v41 = vpop.f32.mrf.mxu0  ;;  %v3553_v0 = vadd.f32 %v3496_v43, %v10439_v19  ;;  %v7871_v43 = vld [vmem:[%s8069_s7 + $0xf0] ss:$0 sps:$4 sm:$0x11]  }
 0x3d1   : > { %v10166_v61 = vadd.f32 %v4070_v41, %v3551_v39  ;;  %v7344_v25 = vpop.f32.mrf.mxu1  ;;  %v4542_v41 = vrot.slane %v4540_v22, 1 }
 0x3d2   : > { %v7450_v56 = vpop.f32.mrf.mxu0 }
 0x3d3   : > { %10438 = vst [vmem:[#allocation10_spill] sm:$0xff] %v10166_v61  ;;  %v4673_v39 = vpop.f32.mrf.mxu1  ;;  %7554 = vmatmul.mubr.msk.bf16.gmra.mxu1 %vm621_vm2, %v4535_v47  ;;  %v10441_v56 = vld [vmem:[#allocation12_spill] sm:$0xff]  ;;  %v4543_v47 = vsel %vm394_vm1, %v4538_v23, %v4542_v41 }
 0x3d4   : > { %v4075_v53 = vpop.f32.mrf.mxu0  ;;  %7660 = vmatmul.mubr.msk.bf16.gmra.mxu0 %vm621_vm2, %v4997_v21  ;;  %v4888_v34 = vadd.f32 %v4673_v39, %v10441_v56  ;;  %7557 = vmatprep.mubr.msk.bf16.mxu1 %vm7977_vm0, %v10410_v4  ;;  %v4544_v39 = vshrl.u32 %v10164_v9, 16 }
 0x3d5   : > { %v10174_v12 = vadd.f32 %v4075_v53, %v3552_v44  ;;  %7663 = vmatprep.mubr.msk.bf16.mxu0 %vm7977_vm0, %v10410_v4  ;;  %v7459_v21 = vpop.f32.mrf.mxu1  ;;  %v4999_v53 = vsel %vm1268_vm3, %v4996_v36, %v4998_v24  ;;  %v5566_v36 = vpop.permute.xlu0 %5565 }
 0x3d6   : > { %v7453_v19 = vpop.f32.mrf.mxu0  ;;  %v4546_v21 = vor.u32 %v4544_v39, %v4542_v41 }
 0x3d7   : > { %10440 = vst [vmem:[#allocation11_spill] sm:$0xff] %v10174_v12  ;;  %v4676_v12 = vpop.f32.mrf.mxu1  ;;  %v4548_v19 = vshll.u32 %v7871_v43, 16 }
 0x3d8   : > { %v4078_v44 = vpop.f32.mrf.mxu0  ;;  %v4889_v61 = vadd.f32 %v4676_v12, %v9556_v8  ;;  %v5000_v8 = vrot.slane %v10164_v9, 1 }
 0x3d9   : > { %v10184_v25 = vadd.f32 %v4078_v44, %v3553_v0  ;;  %v7460_v56 = vpop.f32.mrf.mxu1  ;;  %v4550_v44 = vrot.slane %v4548_v19, 1 }
 0x3da   : > { %v7454_v46 = vpop.f32.mrf.mxu0 }
 0x3db   : > { %10442 = vst [vmem:[#allocation12_spill] sm:$0xff] %v10184_v25  ;;  %v4681_v31 = vpop.f32.mrf.mxu1  ;;  %7558 = vmatmul.mubr.msk.bf16.gmra.mxu1 %vm621_vm2, %v4543_v47  ;;  %v5001_v46 = vsel %vm1268_vm3, %v4998_v24, %v5000_v8 }
 0x3dc   : > { %v5125_v26 = vpop.f32.mrf.mxu0  ;;  %7664 = vmatmul.mubr.msk.bf16.gmra.mxu0 %vm621_vm2, %v4999_v53  ;;  %v4890_v12 = vadd.f32 %v4681_v31, %v9568_v38  ;;  %7561 = vmatprep.mubr.msk.bf16.mxu1 %vm7977_vm0, %v10410_v4  ;;  %v4551_v38 = vsel %vm394_vm1, %v4546_v21, %v4550_v44  ;;  %v5576_v44 = vpop.permute.xlu1 %5575 }
 0x3dd   : > { %v5340_v0 = vadd.f32 %v5125_v26, %v4888_v34  ;;  %7667 = vmatprep.mubr.msk.bf16.mxu0 %vm7977_vm0, %v10410_v4  ;;  %v7463_v26 = vpop.f32.mrf.mxu1 }
 0x3de   : > { %v7569_v22 = vpop.f32.mrf.mxu0 }
 0x3df   : > { %v5401_v23 = vadd.f32 %v10193_v5, %v5340_v0  ;;  %v4684_v56 = vpop.f32.mrf.mxu1  ;;  %v5571_v0 = vpop.permute.xlu0 %5570 }
 0x3e0   : > { %v5128_v34 = vpop.f32.mrf.mxu0  ;;  %v4891_v25 = vadd.f32 %v4684_v56, %v9587_v42 }
 0x3e1   : > { %v5341_v53 = vadd.f32 %v5128_v34, %v4889_v61  ;;  %v5455_v22 = vmax.f32 %v5401_v23, 0.0  ;;  %v7464_v31 = vpop.f32.mrf.mxu1  ;;  %v5002_v61 = vrot.slane %v7871_v43, 1 }
 0x3e2   : > { %v7570_v9 = vpop.f32.mrf.mxu0 }
 0x3e3   : > { %v5402_v47 = vadd.f32 %v10193_v5, %v5341_v53  ;;  %v4689_v24 = vpop.f32.mrf.mxu1  ;;  %7562 = vmatmul.mubr.msk.bf16.gmra.mxu1 %vm621_vm2, %v4551_v38  ;;  %v5833_v19 = vmul.f32 %v5566_v36, %v5455_v22  ;;  %v5003_v56 = vsel %vm1268_vm3, %v5000_v8, %v5002_v61  ;;  %v5581_v38 = vpop.permute.xlu1 %5580 }
 0x3e4   : > { %v5133_v45 = vpop.f32.mrf.mxu0  ;;  %7668 = vmatmul.mubr.msk.bf16.gmra.mxu0 %vm621_vm2, %v5001_v46  ;;  %v4892_v23 = vadd.f32 %v4689_v24, %v9601_v40 }
 0x3e5   : > { %v5342_v41 = vadd.f32 %v5133_v45, %v4890_v12  ;;  %v5456_v39 = vmax.f32 %v5402_v47, 0.0  ;;  %7671 = vmatprep.mubr.msk.bf16.mxu0 %vm7977_vm0, %v10410_v4  ;;  %v7467_v34 = vpop.f32.mrf.mxu1 }
 0x3e6   : > { %v7573_v42 = vpop.f32.mrf.mxu0 }
 0x3e7   : > { %v5403_v21 = vadd.f32 %v10193_v5, %v5342_v41  ;;  %v5834_v26 = vmul.f32 %v5571_v0, %v5456_v39  ;;  %v4692_v4 = vpop.f32.mrf.mxu1 }
 0x3e8   : > { %v5136_v53 = vpop.f32.mrf.mxu0  ;;  %v4893_v47 = vadd.f32 %v4692_v4, %v9619_v1 }
 0x3e9   : > { %v5457_v46 = vmax.f32 %v5403_v21, 0.0  ;;  %v5887_v45 = vadd.f32 %v5834_v26, %v5833_v19  ;;  %v5343_v12 = vadd.f32 %v5136_v53, %v4891_v25  ;;  %v7468_v22 = vpop.f32.mrf.mxu1  ;;  %v5586_v21 = vpop.permute.xlu0 %5585 }
 0x3ea   : > { %v7574_v43 = vpop.f32.mrf.mxu0 }
 0x3eb   : > { %v5835_v9 = vmul.f32 %v5576_v44, %v5457_v46  ;;  %v5404_v36 = vadd.f32 %v10193_v5, %v5343_v12  ;;  %v4697_v39 = vpop.f32.mrf.mxu1  ;;  %v5591_v43 = vpop.permute.xlu1 %5590 }
 0x3ec   : > { %v5141_v40 = vpop.f32.mrf.mxu0  ;;  %7672 = vmatmul.mubr.msk.bf16.gmra.mxu0 %vm621_vm2, %v5003_v56  ;;  %v4894_v8 = vadd.f32 %v4697_v39, %v9633_v51 }
 0x3ed   : > { %v5458_v0 = vmax.f32 %v5404_v36, 0.0  ;;  %v5888_v31 = vadd.f32 %v5887_v45, %v5835_v9  ;;  %v5344_v41 = vadd.f32 %v5141_v40, %v4892_v23  ;;  %v7471_v42 = vpop.f32.mrf.mxu1 }
 0x3ee   : > { %v7577_v24 = vpop.f32.mrf.mxu0 }
 0x3ef   : > { %v5836_v25 = vmul.f32 %v5581_v38, %v5458_v0  ;;  %v5405_v61 = vadd.f32 %v10193_v5, %v5344_v41  ;;  %v4700_v34 = vpop.f32.mrf.mxu1  ;;  %v5596_v41 = vpop.permute.xlu0 %5595 }
 0x3f0   : > { %v5144_v19 = vpop.f32.mrf.mxu0  ;;  %v4895_v12 = vadd.f32 %v4700_v34, %v9651_v10 }
 0x3f1   : > { %v5889_v1 = vadd.f32 %v5888_v31, %v5836_v25  ;;  %v5459_v44 = vmax.f32 %v5405_v61, 0.0  ;;  %v5345_v26 = vadd.f32 %v5144_v19, %v4893_v47  ;;  %v7472_v45 = vpop.f32.mrf.mxu1 }
 0x3f2   : > { %v7578_v53 = vpop.f32.mrf.mxu0 }
 0x3f3   : > { %v5837_v46 = vmul.f32 %v5586_v21, %v5459_v44  ;;  %v5406_v23 = vadd.f32 %v10193_v5, %v5345_v26  ;;  %v4705_v36 = vpop.f32.mrf.mxu1  ;;  %v5601_v44 = vpop.permute.xlu1 %5600 }
 0x3f4   : > { %v5149_v56 = vpop.f32.mrf.mxu0  ;;  %v4896_v38 = vadd.f32 %v4705_v36, %v9665_v14 }
 0x3f5   : > { %v5890_v4 = vadd.f32 %v5889_v1, %v5837_v46  ;;  %v5460_v51 = vmax.f32 %v5406_v23, 0.0  ;;  %v5346_v9 = vadd.f32 %v5149_v56, %v4894_v8  ;;  %v7475_v0 = vpop.f32.mrf.mxu1 }
 0x3f6   : > { %v7581_v22 = vpop.f32.mrf.mxu0 }
 0x3f7   : > { %v5838_v40 = vmul.f32 %v5591_v43, %v5460_v51  ;;  %v5407_v47 = vadd.f32 %v10193_v5, %v5346_v9  ;;  %v4708_v25 = vpop.f32.mrf.mxu1  ;;  %v5606_v43 = vpop.permute.xlu0 %5605 }
 0x3f8   : > { %v5152_v31 = vpop.f32.mrf.mxu0  ;;  %v4897_v19 = vadd.f32 %v4708_v25, %v9683_v59 }
 0x3f9   : > { %v5891_v39 = vadd.f32 %v5890_v4, %v5838_v40  ;;  %v5461_v10 = vmax.f32 %v5407_v47, 0.0  ;;  %v5347_v24 = vadd.f32 %v5152_v31, %v4895_v12  ;;  %v7476_v1 = vpop.f32.mrf.mxu1 }
 0x3fa   : > { %v7582_v61 = vpop.f32.mrf.mxu0 }
 0x3fb   : > { %v5839_v42 = vmul.f32 %v5596_v41, %v5461_v10  ;;  %v5408_v8 = vadd.f32 %v10193_v5, %v5347_v24  ;;  %v4713_v53 = vpop.f32.mrf.mxu1  ;;  %v5611_v41 = vpop.permute.xlu1 %5610 }
 0x3fc   : > { %v5157_v21 = vpop.f32.mrf.mxu0  ;;  %v4898_v45 = vadd.f32 %v4713_v53, %v9697_v54 }
 0x3fd   : > { %v5892_v26 = vadd.f32 %v5891_v39, %v5839_v42  ;;  %v5462_v14 = vmax.f32 %v5408_v8, 0.0  ;;  %v5348_v34 = vadd.f32 %v5157_v21, %v4896_v38  ;;  %v7479_v56 = vpop.f32.mrf.mxu1  ;;  %v5616_v21 = vpop.permute.xlu0 %5615 }
 0x3fe   : > { %v7585_v46 = vpop.f32.mrf.mxu0 }
 0x3ff   : > { %v5840_v23 = vmul.f32 %v5601_v44, %v5462_v14  ;;  %v5409_v12 = vadd.f32 %v10193_v5, %v5348_v34  ;;  %v4716_v36 = vpop.f32.mrf.mxu1  ;;  %v5621_v56 = vpop.permute.xlu1 %5620 }
 0x400   : > { %v5160_v4 = vpop.f32.mrf.mxu0  ;;  %v4899_v47 = vadd.f32 %v4716_v36, %v9715_v37 }
 0x401   : > { %v5893_v51 = vadd.f32 %v5892_v26, %v5840_v23  ;;  %v5463_v59 = vmax.f32 %v5409_v12, 0.0  ;;  %v5349_v9 = vadd.f32 %v5160_v4, %v4897_v19  ;;  %v7480_v0 = vpop.f32.mrf.mxu1 }
 0x402   : > { %v7586_v22 = vpop.f32.mrf.mxu0 }
 0x403   : > { %v5841_v40 = vmul.f32 %v5606_v43, %v5463_v59  ;;  %v5410_v38 = vadd.f32 %v10193_v5, %v5349_v9  ;;  %v4721_v24 = vpop.f32.mrf.mxu1 }
 0x404   : > { %v5165_v31 = vpop.f32.mrf.mxu0  ;;  %v4900_v42 = vadd.f32 %v4721_v24, %v9729_v11 }
 0x405   : > { %v5894_v39 = vadd.f32 %v5893_v51, %v5841_v40  ;;  %v5464_v54 = vmax.f32 %v5410_v38, 0.0  ;;  %v5350_v10 = vadd.f32 %v5165_v31, %v4898_v45  ;;  %v7483_v8 = vpop.f32.mrf.mxu1  ;;  %v5626_v38 = vpop.permute.xlu0 %5625 }
 0x406   : > { %v7589_v25 = vpop.f32.mrf.mxu0 }
 0x407   : > { %v5842_v61 = vmul.f32 %v5611_v41, %v5464_v54  ;;  %v5411_v19 = vadd.f32 %v10193_v5, %v5350_v10  ;;  %v4724_v14 = vpop.f32.mrf.mxu1 }
 0x408   : > { %v5168_v1 = vpop.f32.mrf.mxu0  ;;  %v4901_v46 = vadd.f32 %v4724_v14, %v9747_v62 }
 0x409   : > { %v5895_v44 = vadd.f32 %v5894_v39, %v5842_v61  ;;  %v5465_v37 = vmax.f32 %v5411_v19, 0.0  ;;  %v5351_v26 = vadd.f32 %v5168_v1, %v4899_v47  ;;  %v7484_v45 = vpop.f32.mrf.mxu1 }
 0x40a   : > { %v7590_v34 = vpop.f32.mrf.mxu0 }
 0x40b   : > { %v5843_v53 = vmul.f32 %v5616_v21, %v5465_v37  ;;  %v5412_v23 = vadd.f32 %v10193_v5, %v5351_v26  ;;  %v4729_v51 = vpop.f32.mrf.mxu1 }
 0x40c   : > { %v5173_v12 = vpop.f32.mrf.mxu0  ;;  %v4902_v36 = vadd.f32 %v4729_v51, %v9761_v60 }
 0x40d   : > { %v5896_v4 = vadd.f32 %v5895_v44, %v5843_v53  ;;  %v5466_v11 = vmax.f32 %v5412_v23, 0.0  ;;  %v5352_v43 = vadd.f32 %v5173_v12, %v4900_v42  ;;  %v7487_v40 = vpop.f32.mrf.mxu1  ;;  %v5631_v42 = vpop.permute.xlu1 %5630 }
 0x40e   : > { %v7593_v59 = vpop.f32.mrf.mxu0  ;;  %v5636_v53 = vpop.permute.xlu0 %5635 }
 0x40f   : > { %v5844_v9 = vmul.f32 %v5621_v56, %v5466_v11  ;;  %v5413_v22 = vadd.f32 %v10193_v5, %v5352_v43  ;;  %v4732_v41 = vpop.f32.mrf.mxu1 }
 0x410   : > { %v5176_v47 = vpop.f32.mrf.mxu0  ;;  %v4903_v10 = vadd.f32 %v4732_v41, %v9779_v15 }
 0x411   : > { %v5897_v0 = vadd.f32 %v5896_v4, %v5844_v9  ;;  %v5467_v62 = vmax.f32 %v5413_v22, 0.0  ;;  %v5353_v31 = vadd.f32 %v5176_v47, %v4901_v46  ;;  %v7488_v25 = vpop.f32.mrf.mxu1  ;;  %v5641_v59 = vpop.permute.xlu1 %5640 }
 0x412   : > { %v7594_v39 = vpop.f32.mrf.mxu0  ;;  %v5646_v41 = vpop.permute.xlu0 %5645 }
 0x413   : > { %v5845_v54 = vmul.f32 %v5626_v38, %v5467_v62  ;;  %v5414_v24 = vadd.f32 %v10193_v5, %v5353_v31  ;;  %v4737_v1 = vpop.f32.mrf.mxu1 }
 0x414   : > { %v5181_v61 = vpop.f32.mrf.mxu0  ;;  %v4904_v37 = vadd.f32 %v4737_v1, %v9793_v63 }
 0x415   : > { %v5898_v19 = vadd.f32 %v5897_v0, %v5845_v54  ;;  %v5468_v60 = vmax.f32 %v5414_v24, 0.0  ;;  %v5354_v8 = vadd.f32 %v5181_v61, %v4902_v36  ;;  %v7491_v14 = vpop.f32.mrf.mxu1 }
 0x416   : > { %v7597_v21 = vpop.f32.mrf.mxu0 }
 0x417   : > { %v5846_v44 = vmul.f32 %v5631_v42, %v5468_v60  ;;  %v5415_v26 = vadd.f32 %v10193_v5, %v5354_v8  ;;  %v4740_v45 = vpop.f32.mrf.mxu1  ;;  %v5651_v8 = vpop.permute.xlu1 %5650 }
 0x418   : > { %v5184_v34 = vpop.f32.mrf.mxu0  ;;  %v4905_v4 = vadd.f32 %v4740_v45, %v9811_v18 }
 0x419   : > { %v5899_v46 = vadd.f32 %v5898_v19, %v5846_v44  ;;  %v5469_v15 = vmax.f32 %v5415_v26, 0.0  ;;  %v5355_v23 = vadd.f32 %v5184_v34, %v4903_v10  ;;  %v7492_v43 = vpop.f32.mrf.mxu1 }
 0x41a   : > { %v7598_v12 = vpop.f32.mrf.mxu0 }
 0x41b   : > { %v5847_v56 = vmul.f32 %v5636_v53, %v5469_v15  ;;  %v5416_v11 = vadd.f32 %v10193_v5, %v5355_v23  ;;  %v4745_v22 = vpop.f32.mrf.mxu1  ;;  %v5656_v15 = vpop.permute.xlu0 %5655 }
 0x41c   : > { %v5189_v51 = vpop.f32.mrf.mxu0  ;;  %v4906_v38 = vadd.f32 %v4745_v22, %v9825_v29 }
 0x41d   : > { %v5900_v9 = vadd.f32 %v5899_v46, %v5847_v56  ;;  %v5470_v63 = vmax.f32 %v5416_v11, 0.0  ;;  %v5356_v36 = vadd.f32 %v5189_v51, %v4904_v37  ;;  %v7495_v62 = vpop.f32.mrf.mxu1 }
 0x41e   : > { %v7601_v40 = vpop.f32.mrf.mxu0 }
 0x41f   : > { %v5848_v47 = vmul.f32 %v5641_v59, %v5470_v63  ;;  %v5417_v0 = vadd.f32 %v10193_v5, %v5356_v36  ;;  %v4748_v10 = vpop.f32.mrf.mxu1 }
 0x420   : > { %v5192_v31 = vpop.f32.mrf.mxu0  ;;  %v4907_v61 = vadd.f32 %v4748_v10, %v9843_v27 }
 0x421   : > { %v5901_v39 = vadd.f32 %v5900_v9, %v5848_v47  ;;  %v5471_v18 = vmax.f32 %v5417_v0, 0.0  ;;  %v5357_v54 = vadd.f32 %v5192_v31, %v4905_v4  ;;  %v7496_v19 = vpop.f32.mrf.mxu1  ;;  %v5661_v9 = vpop.permute.xlu1 %5660 }
 0x422   : > { %v7602_v24 = vpop.f32.mrf.mxu0 }
 0x423   : > { %v5849_v25 = vmul.f32 %v5646_v41, %v5471_v18  ;;  %v5418_v42 = vadd.f32 %v10193_v5, %v5357_v54  ;;  %v4753_v44 = vpop.f32.mrf.mxu1  ;;  %v5666_v41 = vpop.permute.xlu0 %5665 }
 0x424   : > { %v5197_v60 = vpop.f32.mrf.mxu0  ;;  %v4908_v14 = vadd.f32 %v4753_v44, %v9854_v28 }
 0x425   : > { %v5902_v1 = vadd.f32 %v5901_v39, %v5849_v25  ;;  %v5472_v29 = vmax.f32 %v5418_v42, 0.0  ;;  %v5358_v21 = vadd.f32 %v5197_v60, %v4906_v38  ;;  %v7499_v53 = vpop.f32.mrf.mxu1  ;;  %v5671_v60 = vpop.permute.xlu1 %5670 }
 0x426   : > { %v7605_v37 = vpop.f32.mrf.mxu0 }
 0x427   : > { %v5850_v26 = vmul.f32 %v5651_v8, %v5472_v29  ;;  %v5419_v34 = vadd.f32 %v10193_v5, %v5358_v21  ;;  %v4756_v12 = vpop.f32.mrf.mxu1 }
 0x428   : > { %v5200_v46 = vpop.f32.mrf.mxu0  ;;  %v4909_v11 = vadd.f32 %v4756_v12, %v9866_v17 }
 0x429   : > { %v5903_v23 = vadd.f32 %v5902_v1, %v5850_v26  ;;  %v5473_v27 = vmax.f32 %v5419_v34, 0.0  ;;  %v5359_v45 = vadd.f32 %v5200_v46, %v4907_v61  ;;  %v7500_v51 = vpop.f32.mrf.mxu1  ;;  %v5676_v34 = vpop.permute.xlu0 %5675 }
 0x42a   : > { %v7606_v56 = vpop.f32.mrf.mxu0 }
 0x42b   : > { %v5851_v4 = vmul.f32 %v5656_v15, %v5473_v27  ;;  %v5420_v43 = vadd.f32 %v10193_v5, %v5359_v45  ;;  %v4761_v22 = vpop.f32.mrf.mxu1 }
 0x42c   : > { %v5205_v59 = vpop.f32.mrf.mxu0  ;;  %v4910_v38 = vadd.f32 %v4761_v22, %v9874_v50 }
 0x42d   : > { %v5904_v63 = vadd.f32 %v5903_v23, %v5851_v4  ;;  %v5474_v28 = vmax.f32 %v5420_v43, 0.0  ;;  %v5360_v36 = vadd.f32 %v5205_v59, %v4908_v14  ;;  %v7503_v62 = vpop.f32.mrf.mxu1 }
 0x42e   : > { %v7609_v40 = vpop.f32.mrf.mxu0 }
 0x42f   : > { %v5852_v47 = vmul.f32 %v5661_v9, %v5474_v28  ;;  %v5421_v0 = vadd.f32 %v10193_v5, %v5360_v36  ;;  %v4764_v54 = vpop.f32.mrf.mxu1 }
 0x430   : > { %v5208_v31 = vpop.f32.mrf.mxu0  ;;  %v4911_v25 = vadd.f32 %v4764_v54, %v9886_v6 }
 0x431   : > { %v5905_v39 = vadd.f32 %v5904_v63, %v5852_v47  ;;  %v5475_v17 = vmax.f32 %v5421_v0, 0.0  ;;  %v5361_v18 = vadd.f32 %v5208_v31, %v4909_v11  ;;  %v7504_v42 = vpop.f32.mrf.mxu1  ;;  %v5681_v11 = vpop.permute.xlu1 %5680 }
 0x432   : > { %v7610_v10 = vpop.f32.mrf.mxu0 }
 0x433   : > { %v5853_v24 = vmul.f32 %v5666_v41, %v5475_v17  ;;  %v5422_v61 = vadd.f32 %v10193_v5, %v5361_v18  ;;  %v4769_v29 = vpop.f32.mrf.mxu1 }
 0x434   : > { %v5213_v19 = vpop.f32.mrf.mxu0  ;;  %v4912_v27 = vadd.f32 %v4769_v29, %v9894_v16 }
 0x435   : > { %v5906_v8 = vadd.f32 %v5905_v39, %v5853_v24  ;;  %v5476_v50 = vmax.f32 %v5422_v61, 0.0  ;;  %v5362_v1 = vadd.f32 %v5213_v19, %v4910_v38  ;;  %v7507_v26 = vpop.f32.mrf.mxu1  ;;  %v5686_v38 = vpop.permute.xlu0 %5685 }
 0x436   : > { %v7613_v21 = vpop.f32.mrf.mxu0  ;;  %v5691_v24 = vpop.permute.xlu1 %5690 }
 0x437   : > { %v5854_v44 = vmul.f32 %v5671_v60, %v5476_v50  ;;  %v5423_v37 = vadd.f32 %v10193_v5, %v5362_v1  ;;  %v4772_v6 = vpop.f32.mrf.mxu1 }
 0x438   : > { %v5216_v14 = vpop.f32.mrf.mxu0  ;;  %v4913_v28 = vadd.f32 %v4772_v6, %v9906_v58 }
 0x439   : > { %v5907_v53 = vadd.f32 %v5906_v8, %v5854_v44  ;;  %v5477_v46 = vmax.f32 %v5423_v37, 0.0  ;;  %v5363_v15 = vadd.f32 %v5216_v14, %v4911_v25  ;;  %v7508_v56 = vpop.f32.mrf.mxu1  ;;  %v5696_v21 = vpop.permute.xlu0 %5695 }
 0x43a   : > { %v7614_v23 = vpop.f32.mrf.mxu0 }
 0x43b   : > { %v5855_v45 = vmul.f32 %v5676_v34, %v5477_v46  ;;  %v5424_v12 = vadd.f32 %v10193_v5, %v5363_v15  ;;  %v4777_v9 = vpop.f32.mrf.mxu1  ;;  %v5701_v23 = vpop.permute.xlu1 %5700 }
 0x43c   : > { %v5221_v4 = vpop.f32.mrf.mxu0  ;;  %v4914_v39 = vadd.f32 %v4777_v9, %v9914_v57 }
 0x43d   : > { %v5908_v43 = vadd.f32 %v5907_v53, %v5855_v45  ;;  %v5478_v51 = vmax.f32 %v5424_v12, 0.0  ;;  %v5364_v59 = vadd.f32 %v5221_v4, %v4912_v27  ;;  %v7511_v40 = vpop.f32.mrf.mxu1  ;;  %v5706_v9 = vpop.permute.xlu0 %5705 }
 0x43e   : > { %v7617_v63 = vpop.f32.mrf.mxu0 }
 0x43f   : > { %v5856_v36 = vmul.f32 %v5681_v11, %v5478_v51  ;;  %v5425_v22 = vadd.f32 %v10193_v5, %v5364_v59  ;;  %v4780_v31 = vpop.f32.mrf.mxu1 }
 0x440   : > { %v5224_v47 = vpop.f32.mrf.mxu0  ;;  %v4915_v60 = vadd.f32 %v4780_v31, %v9926_v30 }
 0x441   : > { %v5909_v16 = vadd.f32 %v5908_v43, %v5856_v36  ;;  %v5479_v0 = vmax.f32 %v5425_v22, 0.0  ;;  %v5365_v62 = vadd.f32 %v5224_v47, %v4913_v28  ;;  %v7512_v54 = vpop.f32.mrf.mxu1 }
 0x442   : > { %v7618_v41 = vpop.f32.mrf.mxu0 }
 0x443   : > { %v5857_v17 = vmul.f32 %v5686_v38, %v5479_v0  ;;  %v5426_v18 = vadd.f32 %v10193_v5, %v5365_v62  ;;  %v4785_v42 = vpop.f32.mrf.mxu1  ;;  %v5711_v62 = vpop.permute.xlu1 %5710 }
 0x444   : > { %v5229_v10 = vpop.f32.mrf.mxu0  ;;  %v4916_v34 = vadd.f32 %v4785_v42, %v9934_v20 }
 0x445   : > { %v5910_v58 = vadd.f32 %v5909_v16, %v5857_v17  ;;  %v5480_v25 = vmax.f32 %v5426_v18, 0.0  ;;  %v5366_v61 = vadd.f32 %v5229_v10, %v4914_v39  ;;  %v7515_v1 = vpop.f32.mrf.mxu1 }
 0x446   : > { %v7621_v19 = vpop.f32.mrf.mxu0 }
 0x447   : > { %v5858_v8 = vmul.f32 %v5691_v24, %v5480_v25  ;;  %v5427_v50 = vadd.f32 %v10193_v5, %v5366_v61  ;;  %v4788_v26 = vpop.f32.mrf.mxu1  ;;  %v5716_v25 = vpop.permute.xlu0 %5715 }
 0x448   : > { %v5232_v29 = vpop.f32.mrf.mxu0  ;;  %v4917_v4 = vadd.f32 %v4788_v26, %v9946_v35 }
 0x449   : > { %v5911_v57 = vadd.f32 %v5910_v58, %v5858_v8  ;;  %v5481_v44 = vmax.f32 %v5427_v50, 0.0  ;;  %v5367_v37 = vadd.f32 %v5232_v29, %v4915_v60  ;;  %v7516_v15 = vpop.f32.mrf.mxu1 }
 0x44a   : > { %v7622_v14 = vpop.f32.mrf.mxu0 }
 0x44b   : > { %v5859_v53 = vmul.f32 %v5696_v21, %v5481_v44  ;;  %v5428_v46 = vadd.f32 %v10193_v5, %v5367_v37  ;;  %v4793_v12 = vpop.f32.mrf.mxu1 }
 0x44c   : > { %v5237_v6 = vpop.f32.mrf.mxu0  ;;  %v4918_v40 = vadd.f32 %v4793_v12, %v9954_v48 }
 0x44d   : > { %v5912_v30 = vadd.f32 %v5911_v57, %v5859_v53  ;;  %v5482_v27 = vmax.f32 %v5428_v46, 0.0  ;;  %v5368_v45 = vadd.f32 %v5237_v6, %v4916_v34  ;;  %v7519_v51 = vpop.f32.mrf.mxu1  ;;  %v5721_v57 = vpop.permute.xlu1 %5720 }
 0x44e   : > { %v7625_v56 = vpop.f32.mrf.mxu0 }
 0x44f   : > { %v5860_v11 = vmul.f32 %v5701_v23, %v5482_v27  ;;  %v5429_v43 = vadd.f32 %v10193_v5, %v5368_v45  ;;  %v4796_v36 = vpop.f32.mrf.mxu1  ;;  %v5726_v23 = vpop.permute.xlu0 %5725 }
 0x450   : > { %v5240_v59 = vpop.f32.mrf.mxu0  ;;  %v4919_v18 = vadd.f32 %v4796_v36, %v9966_v49 }
 0x451   : > { %v5913_v20 = vadd.f32 %v5912_v30, %v5860_v11  ;;  %v5483_v63 = vmax.f32 %v5429_v43, 0.0  ;;  %v5369_v28 = vadd.f32 %v5240_v59, %v4917_v4  ;;  %v7520_v16 = vpop.f32.mrf.mxu1  ;;  %v5731_v59 = vpop.permute.xlu1 %5730 }
 0x452   : > { %v7626_v22 = vpop.f32.mrf.mxu0 }
 0x453   : > { %v5861_v47 = vmul.f32 %v5706_v9, %v5483_v63  ;;  %v5430_v38 = vadd.f32 %v10193_v5, %v5369_v28  ;;  %v4801_v39 = vpop.f32.mrf.mxu1  ;;  %v5736_v16 = vpop.permute.xlu0 %5735 }
 0x454   : > { %v5245_v0 = vpop.f32.mrf.mxu0  ;;  %v4920_v8 = vadd.f32 %v4801_v39, %v9974_v32 }
 0x455   : > { %v5914_v35 = vadd.f32 %v5913_v20, %v5861_v47  ;;  %v5484_v31 = vmax.f32 %v5430_v38, 0.0  ;;  %v5370_v41 = vadd.f32 %v5245_v0, %v4918_v40  ;;  %v7523_v24 = vpop.f32.mrf.mxu1 }
 0x456   : > { %v7629_v17 = vpop.f32.mrf.mxu0 }
 0x457   : > { %v5862_v54 = vmul.f32 %v5711_v62, %v5484_v31  ;;  %v5431_v10 = vadd.f32 %v10193_v5, %v5370_v41  ;;  %v4804_v19 = vpop.f32.mrf.mxu1 }
 0x458   : > { %v5248_v58 = vpop.f32.mrf.mxu0  ;;  %v4921_v34 = vadd.f32 %v4804_v19, %v9986_v7 }
 0x459   : > { %v5915_v48 = vadd.f32 %v5914_v35, %v5862_v54  ;;  %v5485_v61 = vmax.f32 %v5431_v10, 0.0  ;;  %v5371_v42 = vadd.f32 %v5248_v58, %v4919_v18  ;;  %v7524_v29 = vpop.f32.mrf.mxu1  ;;  %v5741_v10 = vpop.permute.xlu1 %5740 }
 0x45a   : > { %v7630_v60 = vpop.f32.mrf.mxu0 }
 0x45b   : > { %v5863_v50 = vmul.f32 %v5716_v25, %v5485_v61  ;;  %v5432_v1 = vadd.f32 %v10193_v5, %v5371_v42  ;;  %v4809_v26 = vpop.f32.mrf.mxu1 }
 0x45c   : > { %v5253_v21 = vpop.f32.mrf.mxu0  ;;  %v4922_v56 = vadd.f32 %v4809_v26, %v9994_v3 }
 0x45d   : > { %v5916_v49 = vadd.f32 %v5915_v48, %v5863_v50  ;;  %v5486_v44 = vmax.f32 %v5432_v1, 0.0  ;;  %v5372_v37 = vadd.f32 %v5253_v21, %v4920_v8  ;;  %v7527_v15 = vpop.f32.mrf.mxu1  ;;  %v5746_v50 = vpop.permute.xlu0 %5745 }
 0x45e   : > { %v7633_v14 = vpop.f32.mrf.mxu0 }
 0x45f   : > { %v5864_v53 = vmul.f32 %v5721_v57, %v5486_v44  ;;  %v5433_v46 = vadd.f32 %v10193_v5, %v5372_v37  ;;  %v4812_v45 = vpop.f32.mrf.mxu1 }
 0x460   : > { %v5256_v6 = vpop.f32.mrf.mxu0  ;;  %v4923_v36 = vadd.f32 %v4812_v45, %v10006_v55 }
 0x461   : > { %v5917_v32 = vadd.f32 %v5916_v49, %v5864_v53  ;;  %v5487_v30 = vmax.f32 %v5433_v46, 0.0  ;;  %v5373_v27 = vadd.f32 %v5256_v6, %v4921_v34  ;;  %v7528_v43 = vpop.f32.mrf.mxu1  ;;  %v5751_v34 = vpop.permute.xlu1 %5750 }
 0x462   : > { %v7634_v12 = vpop.f32.mrf.mxu0 }
 0x463   : > { %v5865_v4 = vmul.f32 %v5726_v23, %v5487_v30  ;;  %v5434_v11 = vadd.f32 %v10193_v5, %v5373_v27  ;;  %v4817_v63 = vpop.f32.mrf.mxu1  ;;  %v5756_v12 = vpop.permute.xlu0 %5755 }
 0x464   : > { %v5261_v51 = vpop.f32.mrf.mxu0  ;;  %v4924_v41 = vadd.f32 %v4817_v63, %v10014_v33 }
 0x465   : > { %v5918_v7 = vadd.f32 %v5917_v32, %v5865_v4  ;;  %v5488_v9 = vmax.f32 %v5434_v11, 0.0  ;;  %v5374_v20 = vadd.f32 %v5261_v51, %v4922_v56  ;;  %v7531_v47 = vpop.f32.mrf.mxu1  ;;  %v10443_v51 = vld [vmem:[#allocation13_spill] sm:$0xff] }
 0x466   : > { %v7637_v28 = vpop.f32.mrf.mxu0 }
 0x467   : > { %v5866_v22 = vmul.f32 %v5731_v59, %v5488_v9  ;;  %v5435_v40 = vadd.f32 %v10193_v5, %v5374_v20  ;;  %v4820_v35 = vpop.f32.mrf.mxu1  ;;  %v5761_v28 = vpop.permute.xlu1 %5760 }
 0x468   : > { %v5264_v38 = vpop.f32.mrf.mxu0  ;;  %v4925_v61 = vadd.f32 %v4820_v35, %v10026_v52 }
 0x469   : > { %v5919_v3 = vadd.f32 %v5918_v7, %v5866_v22  ;;  %v5489_v0 = vmax.f32 %v5435_v40, 0.0  ;;  %v5375_v62 = vadd.f32 %v5264_v38, %v4923_v36  ;;  %v7532_v18 = vpop.f32.mrf.mxu1  ;;  %v10444_v38 = vld [vmem:[#allocation17_spill] sm:$0xff] }
 0x46a   : > { %v7638_v31 = vpop.f32.mrf.mxu0 }
 0x46b   : > { %v5867_v39 = vmul.f32 %v5736_v16, %v5489_v0  ;;  %v5436_v17 = vadd.f32 %v10193_v5, %v5375_v62  ;;  %v4825_v25 = vpop.f32.mrf.mxu1  ;;  %v5766_v31 = vpop.permute.xlu0 %5765 }
 0x46c   : > { %v5269_v54 = vpop.f32.mrf.mxu0  ;;  %v4926_v49 = vadd.f32 %v4825_v25, %v10034_v2 }
 0x46d   : > { %v5920_v55 = vadd.f32 %v5919_v3, %v5867_v39  ;;  %v5490_v24 = vmax.f32 %v5436_v17, 0.0  ;;  %v5376_v58 = vadd.f32 %v5269_v54, %v4924_v41  ;;  %v7535_v60 = vpop.f32.mrf.mxu1 }
 0x46e   : > { %v7641_v48 = vpop.f32.mrf.mxu0 }
 0x46f   : > { %v5868_v42 = vmul.f32 %v5741_v10, %v5490_v24  ;;  %v5437_v19 = vadd.f32 %v10193_v5, %v5376_v58  ;;  %v4828_v21 = vpop.f32.mrf.mxu1  ;;  %v10445_v10 = vld [vmem:[#allocation18_spill] sm:$0xff] }
 0x470   : > { %v5272_v8 = vpop.f32.mrf.mxu0  ;;  %v4927_v23 = vadd.f32 %v4828_v21, %v10046_v13 }
 0x471   : > { %v5921_v33 = vadd.f32 %v5920_v55, %v5868_v42  ;;  %v5491_v1 = vmax.f32 %v5437_v19, 0.0  ;;  %v5377_v29 = vadd.f32 %v5272_v8, %v4925_v61  ;;  %v7536_v26 = vpop.f32.mrf.mxu1  ;;  %v5771_v61 = vpop.permute.xlu1 %5770 }
 0x472   : > { %v7642_v57 = vpop.f32.mrf.mxu0 }
 0x473   : > { %v5869_v44 = vmul.f32 %v5746_v50, %v5491_v1  ;;  %v5438_v37 = vadd.f32 %v10193_v5, %v5377_v29  ;;  %v4833_v15 = vpop.f32.mrf.mxu1 }
 0x474   : > { %v5277_v14 = vpop.f32.mrf.mxu0  ;;  %v4928_v59 = vadd.f32 %v4833_v15, %v10443_v51 }
 0x475   : > { %v5922_v52 = vadd.f32 %v5921_v33, %v5869_v44  ;;  %v5492_v53 = vmax.f32 %v5438_v37, 0.0  ;;  %v5378_v46 = vadd.f32 %v5277_v14, %v4926_v49  ;;  %v7539_v27 = vpop.f32.mrf.mxu1  ;;  %v10446_v33 = vld [vmem:[#allocation14_spill] sm:$0xff]  ;;  %v5776_v44 = vpop.permute.xlu0 %5775 }
 0x476   : > { %v7645_v6 = vpop.f32.mrf.mxu0 }
 0x477   : > { %v5870_v32 = vmul.f32 %v5751_v34, %v5492_v53  ;;  %v5439_v30 = vadd.f32 %v10193_v5, %v5378_v46  ;;  %v4836_v11 = vpop.f32.mrf.mxu1  ;;  %v10447_v53 = vld [vmem:[#allocation15_spill] sm:$0xff] }
 0x478   : > { %v5280_v45 = vpop.f32.mrf.mxu0  ;;  %v4929_v16 = vadd.f32 %v4836_v11, %v10444_v38  ;;  %v10303_v38 = vld [vmem:[%s10357_s2] ss:$0 sm:$0xff] }
 0x479   : > { %v5923_v2 = vadd.f32 %v5922_v52, %v5870_v32  ;;  %v5493_v56 = vmax.f32 %v5439_v30, 0.0  ;;  %v5379_v4 = vadd.f32 %v5280_v45, %v4927_v23  ;;  %v7540_v20 = vpop.f32.mrf.mxu1  ;;  %v5781_v30 = vpop.permute.xlu1 %5780 }
 0x47a   : > { %v7646_v43 = vpop.f32.mrf.mxu0 }
 0x47b   : > { %v5871_v7 = vmul.f32 %v5756_v12, %v5493_v56  ;;  %v5440_v9 = vadd.f32 %v10193_v5, %v5379_v4  ;;  %v4841_v40 = vpop.f32.mrf.mxu1  ;;  %v10448_v4 = vld [vmem:[#allocation16_spill] sm:$0xff] }
 0x47c   : > { %v5285_v63 = vpop.f32.mrf.mxu0  ;;  %v4930_v55 = vadd.f32 %v4841_v40, %v10445_v10 }
 0x47d   : > { %v5924_v13 = vadd.f32 %v5923_v2, %v5871_v7  ;;  %v5494_v36 = vmax.f32 %v5440_v9, 0.0  ;;  %v5380_v22 = vadd.f32 %v5285_v63, %v4928_v59  ;;  %v7543_v62 = vpop.f32.mrf.mxu1  ;;  %v5786_v9 = vpop.permute.xlu0 %5785 }
 0x47e   : > { %v7649_v47 = vpop.f32.mrf.mxu0 }
 0x47f   : > { %v5872_v3 = vmul.f32 %v5761_v28, %v5494_v36  ;;  %v5441_v0 = vadd.f32 %v10193_v5, %v5380_v22  ;;  %v4844_v18 = vpop.f32.mrf.mxu1  ;;  %v10449_v22 = vld [vmem:[#allocation5_spill] sm:$0xff] }
 0x480   : > { %v5288_v35 = vpop.f32.mrf.mxu0  ;;  %v4931_v1 = vadd.f32 %v4844_v18, %v10446_v33 }
 0x481   : > { %v5925_v41 = vadd.f32 %v5924_v13, %v5872_v3  ;;  %v5495_v39 = vmax.f32 %v5441_v0, 0.0  ;;  %v5381_v17 = vadd.f32 %v5288_v35, %v4929_v16  ;;  %v7544_v25 = vpop.f32.mrf.mxu1  ;;  %v5791_v0 = vpop.permute.xlu1 %5790 }
 0x482   : > { %v7650_v54 = vpop.f32.mrf.mxu0 }
 0x483   : > { %v5873_v24 = vmul.f32 %v5766_v31, %v5495_v39  ;;  %v5442_v58 = vadd.f32 %v10193_v5, %v5381_v17  ;;  %v4849_v8 = vpop.f32.mrf.mxu1  ;;  %v10450_v17 = vld [vmem:[#allocation6_spill] sm:$0xff] }
 0x484   : > { %v5293_v48 = vpop.f32.mrf.mxu0  ;;  %v4932_v46 = vadd.f32 %v4849_v8, %v10447_v53 }
 0x485   : > { %v5926_v42 = vadd.f32 %v5925_v41, %v5873_v24  ;;  %v5496_v19 = vmax.f32 %v5442_v58, 0.0  ;;  %v5382_v60 = vadd.f32 %v5293_v48, %v4930_v55  ;;  %v7547_v57 = vpop.f32.mrf.mxu1  ;;  %v5796_v58 = vpop.permute.xlu0 %5795 }
 0x486   : > { %v7653_v50 = vpop.f32.mrf.mxu0 }
 0x487   : > { %v5874_v29 = vmul.f32 %v5771_v61, %v5496_v19  ;;  %v5443_v21 = vadd.f32 %v10193_v5, %v5382_v60  ;;  %v4852_v34 = vpop.f32.mrf.mxu1  ;;  %v10451_v60 = vld [vmem:[#allocation7_spill] sm:$0xff] }
 0x488   : > { %v5296_v49 = vpop.f32.mrf.mxu0  ;;  %v4933_v11 = vadd.f32 %v4852_v34, %v10448_v4 }
 0x489   : > { %v5927_v37 = vadd.f32 %v5926_v42, %v5874_v29  ;;  %v5497_v26 = vmax.f32 %v5443_v21, 0.0  ;;  %v5383_v14 = vadd.f32 %v5296_v49, %v4931_v1  ;;  %v7548_v23 = vpop.f32.mrf.mxu1  ;;  %v5801_v21 = vpop.permute.xlu1 %5800 }
 0x48a   : > { %v7654_v52 = vpop.f32.mrf.mxu0 }
 0x48b   : > { %v5875_v15 = vmul.f32 %v5776_v44, %v5497_v26  ;;  %v5444_v6 = vadd.f32 %v10193_v5, %v5383_v14  ;;  %v4857_v2 = vpop.f32.mrf.mxu1  ;;  %v10452_v14 = vld [vmem:[#allocation8_spill] sm:$0xff] }
 0x48c   : > { %v5301_v32 = vpop.f32.mrf.mxu0  ;;  %v4934_v40 = vadd.f32 %v4857_v2, %v10449_v22 }
 0x48d   : > { %v5928_v27 = vadd.f32 %v5927_v37, %v5875_v15  ;;  %v5498_v45 = vmax.f32 %v5444_v6, 0.0  ;;  %v5384_v12 = vadd.f32 %v5301_v32, %v4932_v46  ;;  %v7551_v59 = vpop.f32.mrf.mxu1  ;;  %v5806_v6 = vpop.permute.xlu0 %5805 }
 0x48e   : > { %v7657_v56 = vpop.f32.mrf.mxu0 }
 0x48f   : > { %v5876_v43 = vmul.f32 %v5781_v30, %v5498_v45  ;;  %v5445_v51 = vadd.f32 %v10193_v5, %v5384_v12  ;;  %v4860_v13 = vpop.f32.mrf.mxu1  ;;  %v10453_v12 = vld [vmem:[#allocation9_spill] sm:$0xff] }
 0x490   : > { %v5304_v7 = vpop.f32.mrf.mxu0  ;;  %v4935_v18 = vadd.f32 %v4860_v13, %v10450_v17 }
 0x491   : > { %v5929_v20 = vadd.f32 %v5928_v27, %v5876_v43  ;;  %v5499_v63 = vmax.f32 %v5445_v51, 0.0  ;;  %v5385_v28 = vadd.f32 %v5304_v7, %v4933_v11  ;;  %v7552_v3 = vpop.f32.mrf.mxu1  ;;  %v5811_v51 = vpop.permute.xlu1 %5810 }
 0x492   : > { %v7658_v36 = vpop.f32.mrf.mxu0 }
 0x493   : > { %v5877_v47 = vmul.f32 %v5786_v9, %v5499_v63  ;;  %v5446_v16 = vadd.f32 %v10303_v38, %v5385_v28  ;;  %v4865_v41 = vpop.f32.mrf.mxu1  ;;  %v10454_v28 = vld [vmem:[#allocation10_spill] sm:$0xff] }
 0x494   : > { %v5309_v5 = vpop.f32.mrf.mxu0  ;;  %v4936_v8 = vadd.f32 %v4865_v41, %v10451_v60 }
 0x495   : > { %v5930_v62 = vadd.f32 %v5929_v20, %v5877_v47  ;;  %v5500_v35 = vmax.f32 %v5446_v16, 0.0  ;;  %v5386_v31 = vadd.f32 %v5309_v5, %v4934_v40  ;;  %v7555_v55 = vpop.f32.mrf.mxu1  ;;  %v5816_v16 = vpop.permute.xlu0 %5815 }
 0x496   : > { %v7661_v39 = vpop.f32.mrf.mxu0 }
 0x497   : > { %v5878_v54 = vmul.f32 %v5791_v0, %v5500_v35  ;;  %v5447_v10 = vadd.f32 %v10303_v38, %v5386_v31  ;;  %v4868_v42 = vpop.f32.mrf.mxu1  ;;  %v10455_v31 = vld [vmem:[#allocation11_spill] sm:$0xff] }
 0x498   : > { %v5312_v24 = vpop.f32.mrf.mxu0  ;;  %v4937_v34 = vadd.f32 %v4868_v42, %v10452_v14 }
 0x499   : > { %v5931_v25 = vadd.f32 %v5930_v62, %v5878_v54  ;;  %v5501_v48 = vmax.f32 %v5447_v10, 0.0  ;;  %v5387_v61 = vadd.f32 %v5312_v24, %v4935_v18  ;;  %v7556_v1 = vpop.f32.mrf.mxu1 }
 0x49a   : > { %v7662_v19 = vpop.f32.mrf.mxu0  ;;  %v5826_v1 = vpop.permute.xlu0 %5825 }
 0x49b   : > { %v5879_v50 = vmul.f32 %v5796_v58, %v5501_v48  ;;  %v5448_v33 = vadd.f32 %v10303_v38, %v5387_v61  ;;  %v4873_v37 = vpop.f32.mrf.mxu1  ;;  %v5821_v58 = vpop.permute.xlu1 %5820  ;;  %v10456_v48 = vld [vmem:[#allocation12_spill] sm:$0xff] }
 0x49c   : > { %v5317_v29 = vpop.f32.mrf.mxu0  ;;  %v4938_v2 = vadd.f32 %v4873_v37, %v10453_v12 }
 0x49d   : > { %v5932_v57 = vadd.f32 %v5931_v25, %v5879_v50  ;;  %v5502_v49 = vmax.f32 %v5448_v33, 0.0  ;;  %v5388_v44 = vadd.f32 %v5317_v29, %v4936_v8  ;;  %v7559_v46 = vpop.f32.mrf.mxu1 }
 0x49e   : > { %v7665_v26 = vpop.f32.mrf.mxu0 }
 0x49f   : > { %v5880_v52 = vmul.f32 %v5801_v21, %v5502_v49  ;;  %v5449_v53 = vadd.f32 %v10303_v38, %v5388_v44  ;;  %v4876_v27 = vpop.f32.mrf.mxu1  ;;  %v5831_v37 = vpop.permute.xlu1 %5830 }
 0x4a0   : > { %v5320_v15 = vpop.f32.mrf.mxu0  ;;  %v4939_v13 = vadd.f32 %v4876_v27, %v10454_v28 }
 0x4a1   : > { %v5933_v23 = vadd.f32 %v5932_v57, %v5880_v52  ;;  %v5503_v32 = vmax.f32 %v5449_v53, 0.0  ;;  %v5389_v30 = vadd.f32 %v5320_v15, %v4937_v34  ;;  %v7560_v11 = vpop.f32.mrf.mxu1 }
 0x4a2   : > { %v7666_v45 = vpop.f32.mrf.mxu0 }
 0x4a3   : > { %v5881_v56 = vmul.f32 %v5806_v6, %v5503_v32  ;;  %v5450_v4 = vadd.f32 %v10303_v38, %v5389_v30  ;;  %v4881_v20 = vpop.f32.mrf.mxu1 }
 0x4a4   : > { %v5325_v43 = vpop.f32.mrf.mxu0  ;;  %v4940_v41 = vadd.f32 %v4881_v20, %v10455_v31 }
 0x4a5   : > { %v5934_v59 = vadd.f32 %v5933_v23, %v5881_v56  ;;  %v5504_v7 = vmax.f32 %v5450_v4, 0.0  ;;  %v5390_v9 = vadd.f32 %v5325_v43, %v4938_v2  ;;  %v7563_v40 = vpop.f32.mrf.mxu1 }
 0x4a6   : > { %v7669_v63 = vpop.f32.mrf.mxu0 }
 0x4a7   : > { %v5882_v36 = vmul.f32 %v5811_v51, %v5504_v7  ;;  %v5451_v22 = vadd.f32 %v10303_v38, %v5390_v9  ;;  %v4884_v62 = vpop.f32.mrf.mxu1 }
 0x4a8   : > { %v5328_v47 = vpop.f32.mrf.mxu0  ;;  %v4941_v61 = vadd.f32 %v4884_v62, %v10456_v48 }
 0x4a9   : > { %v5935_v3 = vadd.f32 %v5934_v59, %v5882_v36  ;;  %v5505_v5 = vmax.f32 %v5451_v22, 0.0  ;;  %v5391_v0 = vadd.f32 %v5328_v47, %v4939_v13  ;;  %v7564_v18 = vpop.f32.mrf.mxu1 }
 0x4aa   : > { %v7670_v35 = vpop.f32.mrf.mxu0 }
 0x4ab   : > { %v5883_v39 = vmul.f32 %v5816_v16, %v5505_v5  ;;  %v5452_v17 = vadd.f32 %v10303_v38, %v5391_v0 }
 0x4ac   : > { %v5333_v54 = vpop.f32.mrf.mxu0 }
 0x4ad   : > { %v5936_v10 = vadd.f32 %v5935_v3, %v5883_v39  ;;  %v5506_v55 = vmax.f32 %v5452_v17, 0.0  ;;  %v5392_v24 = vadd.f32 %v5333_v54, %v4940_v41 }
 0x4ae   : > { %v7673_v25 = vpop.f32.mrf.mxu0 }
 0x4af   : > { %v5884_v42 = vmul.f32 %v5821_v58, %v5506_v55  ;;  %v5453_v19 = vadd.f32 %v10303_v38, %v5392_v24 }
 0x4b0   : > { %v5336_v60 = vpop.f32.mrf.mxu0 }
 0x4b1   : > { %v5937_v8 = vadd.f32 %v5936_v10, %v5884_v42  ;;  %v5507_v50 = vmax.f32 %v5453_v19, 0.0  ;;  %v5393_v33 = vadd.f32 %v5336_v60, %v4941_v61 }
 0x4b2   : > { %v7674_v29 = vpop.f32.mrf.mxu0 }
 0x4b3   : > { %v5885_v21 = vmul.f32 %v5826_v1, %v5507_v50  ;;  %v5454_v57 = vadd.f32 %v10303_v38, %v5393_v33 }
 0x4b5   : > { %v5938_v49 = vadd.f32 %v5937_v8, %v5885_v21  ;;  %v5508_v44 = vmax.f32 %v5454_v57, 0.0 }
 0x4b7   : > { %v5886_v26 = vmul.f32 %v5831_v37, %v5508_v44 }
 0x4b9   : > { %v5939_v14 = vadd.f32 %v5938_v49, %v5886_v26 }
 0x4bb   : > { %v5940_v34 = vrot.slane %v5939_v14, 4 }
 0x4bd   : > { %v5941_v52 = vadd.f32 %v5940_v34, %v5939_v14 }
 0x4bf   : > { %v5942_v53 = vrot.slane %v5941_v52, 2 }
 0x4c1   : > { %v5943_v46 = vadd.f32 %v5942_v53, %v5941_v52 }
 0x4c3   : > { %v5944_v15 = vrot.slane %v5943_v46, 1 }
 0x4c5   : > { %v5945_v6 = vadd.f32 %v5944_v15, %v5943_v46 }
 0x4c7   : > { %5946 = vst [vmem:[%s189_s9] sm:$0x1] %v5945_v6 }
 0x4c8   : > { %7927 = shalt.err (!%p7924_p3)
}
 0x4c9   : > { %s7928_s27 = scalar_lea.hbm %s5958_s13, 16  ;;  %s7932_s30 = scalar_lea.hbm %s10359_s4, 32 }
 0x4ca   : > { %p7929_p4 = scmp.ne.s32.totalorder %s5958_s13, %s7928_s27  ;;  %p7933_p9 = scmp.lt.s32.totalorder %s5958_s13, %s10359_s4 }
 0x4cb   : > { %p7934_p10 = scmp.lt.s32.totalorder %s7932_s30, %s7928_s27 }
 0x4cc   : > { %p7930_p7 = pnand %p7929_p4, %p8043_p5 }
 0x4cd   : > { %p7935_p11 = por %p7934_p10, %p7933_p9 }
 0x4ce   : > { %p7931_p8 = pneg %p7930_p7 }
 0x4d0   : > { %p7936_p12 = pnand %p7935_p11, %p7931_p8 }
 0x4d2   : > { %7939 = shalt.err (!%p7936_p12)
}
 0x4d3   : > { %7678 = dma.vmem_to_hbm [thread:$0]  (%p8043_p5), %s5961_s10, 16, %s5958_s13, %s5948_s14  }
 0x4d4 PF: > { %p7684_p13 = scmp.ge.s32.totalorder %s7974_s18, 2  ;;  %s5972_s6 = sand.u32 1, %s7962_s15  }
 0x4d5   : > { %s5973_s8 = scalar_lea.sflag [#allocation3], %s5972_s6 }
 0x4d6   : > { %p7681_p0 = pnand %p7684_p13, %p8047_p6 }
 0x4d8   : > { %p7682_p1 = pneg %p7681_p0 }
 0x4da   : > { %7957 = dma.done.wait (%p7682_p1), %s5973_s8, 16  }
 0x4db   : > { %7959 = vsyncadd (%p7682_p1), %s5973_s8, 4294967280  ;;  %p14_p2 = scmp.ge.s32.totalorder %s8030_s21, 4   ;;  %s10457_s15 = smov %s7966_s16 }
 0x4dc   : > { %s10458_s16 = smov %s7970_s17  ;;  %s10459_s17 = smov %s8041_s24 }
 0x4dd   : > { %s10460_s18 = smov %s8030_s21  ;;  %16 = sbr.rel (!%p14_p2) target bundleno = 3 (0x3), region = 79 }
 0x4e2   :  { %5977 = vsyncpa [#allocation3], 1 }
 0x4e3   :  { %5979 = vsyncpa [#allocation3 + $0x1], 1 }

</bundles_post_ra>
